<compile_context>
chip_gen: v7x
topology: tpu7x:2x2x1
jax: 0.10.0
libtpu: 0.0.40
codegen_flags: <defaults>
</compile_context>

<pallas_src>
import functools

import jax
import jax.numpy as jnp
from jax import lax
from jax.experimental import pallas as pl
from jax.experimental.pallas import tpu as pltpu


def _round_up(x, m):
    return (x + m - 1) // m * m


def _fold_bn(gamma, beta, mean, var, eps=1e-5):
    scale = gamma / jnp.sqrt(var + eps)
    shift = beta - mean * scale
    return (scale.reshape(1, -1).astype(jnp.float32),
            shift.reshape(1, -1).astype(jnp.float32))


# ---------------------------------------------------------------------------
# Fused Bottleneck kernel (one image per grid step)
# ---------------------------------------------------------------------------
def _bottleneck_kernel(H, W, planes,
                       x_ref, w1_ref, w2_ref, w3_ref,
                       s1_ref, b1_ref, s2_ref, b2_ref, s3_ref, b3_ref,
                       ml_ref, mr_ref,
                       o_ref, p1_ref):
    HW = H * W
    LPAD = _round_up(W + 1, 8)          # zero band on each side of the flat image

    # ---- conv1 (1x1) + bn1 + relu  -> f32 (HW, planes) ----
    x_bf = x_ref[...]                                            # (HW, Cin) bf16
    y1 = jnp.dot(x_bf, w1_ref[...], preferred_element_type=jnp.float32)
    y1 = jnp.maximum(y1 * s1_ref[...] + b1_ref[...], 0.0)

    # Write conv1 output into the zero-banded flat scratch (aligned stores).
    p1_ref[pl.ds(0, LPAD), :] = jnp.zeros((LPAD, planes), jnp.float32)
    p1_ref[pl.ds(LPAD + HW, LPAD), :] = jnp.zeros((LPAD, planes), jnp.float32)
    p1_ref[pl.ds(LPAD, HW), :] = y1

    ml = ml_ref[...]                                             # (HW, 1) f32
    mr = mr_ref[...]

    # ---- conv2 (3x3, pad=1) as 9 shifted, accumulated matmuls ----
    acc = jnp.zeros((HW, planes), jnp.float32)
    for k in range(9):
        dh = k // 3 - 1
        dw = k % 3 - 1
        sh = p1_ref[pl.ds(LPAD + dh * W + dw, HW), :]            # (HW, planes) f32
        if dw == -1:
            sh = sh * ml                                         # mask column wrap
        elif dw == 1:
            sh = sh * mr
        acc = acc + jnp.dot(sh.astype(jnp.bfloat16), w2_ref[k],
                            preferred_element_type=jnp.float32)
    y2 = jnp.maximum(acc * s2_ref[...] + b2_ref[...], 0.0)       # (HW, planes) f32

    # ---- conv3 (1x1) + bn3 + residual + relu ----
    y3 = jnp.dot(y2.astype(jnp.bfloat16), w3_ref[...],
                 preferred_element_type=jnp.float32)
    y3 = y3 * s3_ref[...] + b3_ref[...] + x_bf.astype(jnp.float32)
    o_ref[...] = jnp.maximum(y3, 0.0)


# ---------------------------------------------------------------------------
# Wrapper
# ---------------------------------------------------------------------------
def bottleneck_forward(x_nchw, params, stride=1):
    N, Cin, H, W = x_nchw.shape
    w1, w2, w3 = params["w1"], params["w2"], params["w3"]
    planes = w1.shape[0]
    cout = w3.shape[0]
    assert stride == 1 and Cin == cout, \
        "identity residual path (downsample=None) requires stride=1, inplanes=4*planes"

    HW = H * W
    LPAD = _round_up(W + 1, 8)

    # NCHW -> NHWC -> (N, H*W, C); activations as bf16 MXU inputs.
    x_flat = jnp.transpose(x_nchw, (0, 2, 3, 1)).reshape(N, HW, Cin)
    x_flat = x_flat.astype(jnp.bfloat16)

    # Conv weights in channels-last matmul form, bf16.
    w1_mat = w1.reshape(planes, Cin).T.astype(jnp.bfloat16)                 # (Cin, planes)
    w2_mat = jnp.transpose(w2, (2, 3, 1, 0)).reshape(9, planes, planes)     # (k, cin, cout)
    w2_mat = w2_mat.astype(jnp.bfloat16)
    w3_mat = w3.reshape(cout, planes).T.astype(jnp.bfloat16)                # (planes, cout)

    s1, b1 = _fold_bn(*params["bn1"])
    s2, b2 = _fold_bn(*params["bn2"])
    s3, b3 = _fold_bn(*params["bn3"])

    # Column-wrap masks for the flattened horizontal shifts (built once, tiny).
    col = jnp.arange(HW, dtype=jnp.int32) % W
    mask_l = (col > 0).astype(jnp.float32).reshape(HW, 1)
    mask_r = (col < W - 1).astype(jnp.float32).reshape(HW, 1)

    kernel = functools.partial(_bottleneck_kernel, H, W, planes)

    flops = 2 * N * HW * (Cin * planes + 9 * planes * planes + planes * cout)
    bytes_accessed = (
        N * HW * Cin * 2                                   # x (bf16)
        + (w1_mat.size + w2_mat.size + w3_mat.size) * 2    # weights (bf16)
        + (s1.size + b1.size + s2.size + b2.size + s3.size + b3.size) * 4
        + 2 * HW * 4                                       # masks
        + N * HW * cout * 4                                # output (f32)
    )

    out = pl.pallas_call(
        kernel,
        out_shape=jax.ShapeDtypeStruct((N, HW, cout), jnp.float32),
        grid=(N,),
        in_specs=[
            pl.BlockSpec((None, HW, Cin), lambda n: (n, 0, 0)),
            pl.BlockSpec((Cin, planes), lambda n: (0, 0)),
            pl.BlockSpec((9, planes, planes), lambda n: (0, 0, 0)),
            pl.BlockSpec((planes, cout), lambda n: (0, 0)),
            pl.BlockSpec((1, planes), lambda n: (0, 0)),
            pl.BlockSpec((1, planes), lambda n: (0, 0)),
            pl.BlockSpec((1, planes), lambda n: (0, 0)),
            pl.BlockSpec((1, planes), lambda n: (0, 0)),
            pl.BlockSpec((1, cout), lambda n: (0, 0)),
            pl.BlockSpec((1, cout), lambda n: (0, 0)),
            pl.BlockSpec((HW, 1), lambda n: (0, 0)),
            pl.BlockSpec((HW, 1), lambda n: (0, 0)),
        ],
        out_specs=pl.BlockSpec((None, HW, cout), lambda n: (n, 0, 0)),
        scratch_shapes=[pltpu.VMEM((HW + 2 * LPAD, planes), jnp.float32)],
        compiler_params=pltpu.CompilerParams(
            dimension_semantics=("parallel",),
            vmem_limit_bytes=48 * 1024 * 1024,
        ),
        cost_estimate=pl.CostEstimate(flops=flops, transcendentals=0,
                                      bytes_accessed=bytes_accessed),
    )(x_flat, w1_mat, w2_mat, w3_mat, s1, b1, s2, b2, s3, b3, mask_l, mask_r)

    # (N, H*W, C) -> NHWC -> NCHW
    return jnp.transpose(out.reshape(N, H, W, cout), (0, 3, 1, 2))


# ---------------------------------------------------------------------------
# Pure-JAX f32 reference (eval-mode BN) for a numerical sanity check
# ---------------------------------------------------------------------------
def _reference_forward(x, params, eps=1e-5):
    def conv(a, w, pad):
        return lax.conv_general_dilated(
            a, w, (1, 1), pad, dimension_numbers=("NCHW", "OIHW", "NCHW"))

    def bn(a, p):
        g, b, m, v = (t.reshape(1, -1, 1, 1) for t in p)
        return (a - m) / jnp.sqrt(v + eps) * g + b

    out = jax.nn.relu(bn(conv(x, params["w1"], "VALID"), params["bn1"]))
    out = jax.nn.relu(bn(conv(out, params["w2"], ((1, 1), (1, 1))), params["bn2"]))
    out = bn(conv(out, params["w3"], "VALID"), params["bn3"]) + x
    return jax.nn.relu(out)


# ---------------------------------------------------------------------------
# Deterministic parameter construction (shapes from Bottleneck.__init__)
# ---------------------------------------------------------------------------
def make_params(key, inplanes, planes):
    ks = jax.random.split(key, 6)
    out_ch = planes * 4

    def bn_params(k, c):
        k1, k2, k3, k4 = jax.random.split(k, 4)
        gamma = 0.5 + jax.random.uniform(k1, (c,), jnp.float32)
        beta = 0.1 * jax.random.normal(k2, (c,), jnp.float32)
        mean = 0.1 * jax.random.normal(k3, (c,), jnp.float32)
        var = 0.5 + jax.random.uniform(k4, (c,), jnp.float32)
        return gamma, beta, mean, var

    return {
        "w1": 0.1 * jax.random.normal(ks[0], (planes, inplanes, 1, 1), jnp.float32),
        "w2": 0.1 * jax.random.normal(ks[1], (planes, planes, 3, 3), jnp.float32),
        "w3": 0.1 * jax.random.normal(ks[2], (out_ch, planes, 1, 1), jnp.float32),
        "bn1": bn_params(ks[3], planes),
        "bn2": bn_params(ks[4], planes),
        "bn3": bn_params(ks[5], out_ch),
    }


if __name__ == "__main__":
    key = jax.random.PRNGKey(0)
    k_x, k_p = jax.random.split(key)

    # Identity residual requires inplanes == planes * expansion (= 4 * planes).
    N, inplanes, planes, H, W = 2, 16, 4, 16, 16
    x = jax.random.normal(k_x, (N, inplanes, H, W), jnp.float32)   # NCHW input
    params = make_params(k_p, inplanes, planes)

    fwd = jax.jit(functools.partial(bottleneck_forward, stride=1))
    out = fwd(x, params)
    jax.block_until_ready(out)

    assert out.shape == (N, planes * 4, H, W)
    assert bool(jnp.all(out >= 0.0))   # final ReLU

    ref = _reference_forward(x, params)
    assert bool(jnp.allclose(out, ref, atol=5e-2, rtol=5e-2)), \
        float(jnp.max(jnp.abs(out - ref)))

    print("KERNEL_OK")
</pallas_src>

<mosaic_0001>
module attributes {stable_mosaic.version = 11 : i64} {
  func.func @_bottleneck_kernel(%arg0: i32, %arg1: memref<1x256x16xbf16, #tpu.memory_space<vmem>>, %arg2: memref<16x4xbf16, #tpu.memory_space<vmem>>, %arg3: memref<9x4x4xbf16, #tpu.memory_space<vmem>>, %arg4: memref<4x16xbf16, #tpu.memory_space<vmem>>, %arg5: memref<1x4xf32, #tpu.memory_space<vmem>>, %arg6: memref<1x4xf32, #tpu.memory_space<vmem>>, %arg7: memref<1x4xf32, #tpu.memory_space<vmem>>, %arg8: memref<1x4xf32, #tpu.memory_space<vmem>>, %arg9: memref<1x16xf32, #tpu.memory_space<vmem>>, %arg10: memref<1x16xf32, #tpu.memory_space<vmem>>, %arg11: memref<256x1xf32, #tpu.memory_space<vmem>>, %arg12: memref<256x1xf32, #tpu.memory_space<vmem>>, %arg13: memref<1x256x16xf32, #tpu.memory_space<vmem>>, %arg14: memref<304x4xf32, #tpu.memory_space<vmem>>) attributes {dimension_semantics = [#tpu.dimension_semantics<parallel>], iteration_bounds = array<i64: 2>, scalar_prefetch = 0 : i64, scratch_operands = 1 : i64, tpu.core_type = #tpu.core_type<tc>, window_params = [{transform_indices = @transform_0, window_bounds = array<i64: 1, 256, 16>}, {pipeline_mode = #tpu.pipeline_mode<synchronous>, transform_indices = @transform_1, window_bounds = array<i64: 16, 4>}, {pipeline_mode = #tpu.pipeline_mode<synchronous>, transform_indices = @transform_2, window_bounds = array<i64: 9, 4, 4>}, {pipeline_mode = #tpu.pipeline_mode<synchronous>, transform_indices = @transform_3, window_bounds = array<i64: 4, 16>}, {pipeline_mode = #tpu.pipeline_mode<synchronous>, transform_indices = @transform_4, window_bounds = array<i64: 1, 4>}, {pipeline_mode = #tpu.pipeline_mode<synchronous>, transform_indices = @transform_5, window_bounds = array<i64: 1, 4>}, {pipeline_mode = #tpu.pipeline_mode<synchronous>, transform_indices = @transform_6, window_bounds = array<i64: 1, 4>}, {pipeline_mode = #tpu.pipeline_mode<synchronous>, transform_indices = @transform_7, window_bounds = array<i64: 1, 4>}, {pipeline_mode = #tpu.pipeline_mode<synchronous>, transform_indices = @transform_8, window_bounds = array<i64: 1, 16>}, {pipeline_mode = #tpu.pipeline_mode<synchronous>, transform_indices = @transform_9, window_bounds = array<i64: 1, 16>}, {pipeline_mode = #tpu.pipeline_mode<synchronous>, transform_indices = @transform_10, window_bounds = array<i64: 256, 1>}, {pipeline_mode = #tpu.pipeline_mode<synchronous>, transform_indices = @transform_11, window_bounds = array<i64: 256, 1>}, {transform_indices = @transform_12, window_bounds = array<i64: 1, 256, 16>}]} {
    %c0 = arith.constant 0 : index
    %c0_0 = arith.constant 0 : index
    %c0_1 = arith.constant 0 : index
    %0 = vector.load %arg1[%c0, %c0_0, %c0_1] : memref<1x256x16xbf16, #tpu.memory_space<vmem>>, vector<1x256x16xbf16>
    %1 = vector.shape_cast %0 : vector<1x256x16xbf16> to vector<256x16xbf16>
    %c0_2 = arith.constant 0 : index
    %c0_3 = arith.constant 0 : index
    %2 = vector.load %arg2[%c0_2, %c0_3] : memref<16x4xbf16, #tpu.memory_space<vmem>>, vector<16x4xbf16>
    %cst = arith.constant dense<0.000000e+00> : vector<256x4xf32>
    %3 = tpu.matmul %1, %2, %cst {dimension_numbers = #tpu.dot_dimension_numbers<[1], [0], [0], [1], [0, 0, 1, 1], [], []>} : vector<256x16xbf16>, vector<16x4xbf16>, vector<256x4xf32> -> vector<256x4xf32>
    %c0_4 = arith.constant 0 : index
    %c0_5 = arith.constant 0 : index
    %4 = vector.load %arg5[%c0_4, %c0_5] : memref<1x4xf32, #tpu.memory_space<vmem>>, vector<1x4xf32>
    %5 = vector.broadcast %4 : vector<1x4xf32> to vector<256x4xf32>
    %6 = arith.mulf %3, %5 : vector<256x4xf32>
    %c0_6 = arith.constant 0 : index
    %c0_7 = arith.constant 0 : index
    %7 = vector.load %arg6[%c0_6, %c0_7] : memref<1x4xf32, #tpu.memory_space<vmem>>, vector<1x4xf32>
    %8 = vector.broadcast %7 : vector<1x4xf32> to vector<256x4xf32>
    %9 = arith.addf %6, %8 : vector<256x4xf32>
    %cst_8 = arith.constant 0.000000e+00 : f32
    %10 = vector.broadcast %cst_8 : f32 to vector<256x4xf32>
    %11 = arith.maximumf %9, %10 : vector<256x4xf32>
    %cst_9 = arith.constant 0.000000e+00 : f32
    %12 = vector.broadcast %cst_9 : f32 to vector<24x4xf32>
    %c0_10 = arith.constant 0 : index
    %c0_11 = arith.constant 0 : index
    %13 = vector.load %arg14[%c0_10, %c0_11] : memref<304x4xf32, #tpu.memory_space<vmem>>, vector<24x4xf32>
    tpu.vector_store %arg14[%c0_10, %c0_11], %12 {strides = array<i32>} : memref<304x4xf32, #tpu.memory_space<vmem>>, vector<24x4xf32>,
    %cst_12 = arith.constant 0.000000e+00 : f32
    %14 = vector.broadcast %cst_12 : f32 to vector<24x4xf32>
    %c280 = arith.constant 280 : index
    %c0_13 = arith.constant 0 : index
    %15 = vector.load %arg14[%c280, %c0_13] : memref<304x4xf32, #tpu.memory_space<vmem>>, vector<24x4xf32>
    tpu.vector_store %arg14[%c280, %c0_13], %14 {strides = array<i32>} : memref<304x4xf32, #tpu.memory_space<vmem>>, vector<24x4xf32>,
    %c24 = arith.constant 24 : index
    %c0_14 = arith.constant 0 : index
    %16 = vector.load %arg14[%c24, %c0_14] : memref<304x4xf32, #tpu.memory_space<vmem>>, vector<256x4xf32>
    tpu.vector_store %arg14[%c24, %c0_14], %11 {strides = array<i32>} : memref<304x4xf32, #tpu.memory_space<vmem>>, vector<256x4xf32>,
    %c0_15 = arith.constant 0 : index
    %c0_16 = arith.constant 0 : index
    %17 = vector.load %arg11[%c0_15, %c0_16] : memref<256x1xf32, #tpu.memory_space<vmem>>, vector<256x1xf32>
    %c0_17 = arith.constant 0 : index
    %c0_18 = arith.constant 0 : index
    %18 = vector.load %arg12[%c0_17, %c0_18] : memref<256x1xf32, #tpu.memory_space<vmem>>, vector<256x1xf32>
    %cst_19 = arith.constant 0.000000e+00 : f32
    %19 = vector.broadcast %cst_19 : f32 to vector<256x4xf32>
    %c7 = arith.constant 7 : index
    %c0_20 = arith.constant 0 : index
    %20 = vector.load %arg14[%c7, %c0_20] : memref<304x4xf32, #tpu.memory_space<vmem>>, vector<256x4xf32>
    %21 = vector.broadcast %17 : vector<256x1xf32> to vector<256x4xf32>
    %22 = arith.mulf %20, %21 : vector<256x4xf32>
    %23 = arith.truncf %22 : vector<256x4xf32> to vector<256x4xbf16>
    %c0_21 = arith.constant 0 : index
    %c0_22 = arith.constant 0 : index
    %c0_23 = arith.constant 0 : index
    %24 = vector.load %arg3[%c0_21, %c0_22, %c0_23] : memref<9x4x4xbf16, #tpu.memory_space<vmem>>, vector<1x4x4xbf16>
    %25 = vector.shape_cast %24 : vector<1x4x4xbf16> to vector<4x4xbf16>
    %cst_24 = arith.constant dense<0.000000e+00> : vector<256x4xf32>
    %26 = tpu.matmul %23, %25, %cst_24 {dimension_numbers = #tpu.dot_dimension_numbers<[1], [0], [0], [1], [0, 0, 1, 1], [], []>} : vector<256x4xbf16>, vector<4x4xbf16>, vector<256x4xf32> -> vector<256x4xf32>
    %27 = arith.addf %19, %26 : vector<256x4xf32>
    %c8 = arith.constant 8 : index
    %c0_25 = arith.constant 0 : index
    %28 = vector.load %arg14[%c8, %c0_25] : memref<304x4xf32, #tpu.memory_space<vmem>>, vector<256x4xf32>
    %29 = arith.truncf %28 : vector<256x4xf32> to vector<256x4xbf16>
    %c1 = arith.constant 1 : index
    %c0_26 = arith.constant 0 : index
    %c0_27 = arith.constant 0 : index
    %30 = vector.load %arg3[%c1, %c0_26, %c0_27] : memref<9x4x4xbf16, #tpu.memory_space<vmem>>, vector<1x4x4xbf16>
    %31 = vector.shape_cast %30 : vector<1x4x4xbf16> to vector<4x4xbf16>
    %cst_28 = arith.constant dense<0.000000e+00> : vector<256x4xf32>
    %32 = tpu.matmul %29, %31, %cst_28 {dimension_numbers = #tpu.dot_dimension_numbers<[1], [0], [0], [1], [0, 0, 1, 1], [], []>} : vector<256x4xbf16>, vector<4x4xbf16>, vector<256x4xf32> -> vector<256x4xf32>
    %33 = arith.addf %27, %32 : vector<256x4xf32>
    %c9 = arith.constant 9 : index
    %c0_29 = arith.constant 0 : index
    %34 = vector.load %arg14[%c9, %c0_29] : memref<304x4xf32, #tpu.memory_space<vmem>>, vector<256x4xf32>
    %35 = vector.broadcast %18 : vector<256x1xf32> to vector<256x4xf32>
    %36 = arith.mulf %34, %35 : vector<256x4xf32>
    %37 = arith.truncf %36 : vector<256x4xf32> to vector<256x4xbf16>
    %c2 = arith.constant 2 : index
    %c0_30 = arith.constant 0 : index
    %c0_31 = arith.constant 0 : index
    %38 = vector.load %arg3[%c2, %c0_30, %c0_31] : memref<9x4x4xbf16, #tpu.memory_space<vmem>>, vector<1x4x4xbf16>
    %39 = vector.shape_cast %38 : vector<1x4x4xbf16> to vector<4x4xbf16>
    %cst_32 = arith.constant dense<0.000000e+00> : vector<256x4xf32>
    %40 = tpu.matmul %37, %39, %cst_32 {dimension_numbers = #tpu.dot_dimension_numbers<[1], [0], [0], [1], [0, 0, 1, 1], [], []>} : vector<256x4xbf16>, vector<4x4xbf16>, vector<256x4xf32> -> vector<256x4xf32>
    %41 = arith.addf %33, %40 : vector<256x4xf32>
    %c23 = arith.constant 23 : index
    %c0_33 = arith.constant 0 : index
    %42 = vector.load %arg14[%c23, %c0_33] : memref<304x4xf32, #tpu.memory_space<vmem>>, vector<256x4xf32>
    %43 = vector.broadcast %17 : vector<256x1xf32> to vector<256x4xf32>
    %44 = arith.mulf %42, %43 : vector<256x4xf32>
    %45 = arith.truncf %44 : vector<256x4xf32> to vector<256x4xbf16>
    %c3 = arith.constant 3 : index
    %c0_34 = arith.constant 0 : index
    %c0_35 = arith.constant 0 : index
    %46 = vector.load %arg3[%c3, %c0_34, %c0_35] : memref<9x4x4xbf16, #tpu.memory_space<vmem>>, vector<1x4x4xbf16>
    %47 = vector.shape_cast %46 : vector<1x4x4xbf16> to vector<4x4xbf16>
    %cst_36 = arith.constant dense<0.000000e+00> : vector<256x4xf32>
    %48 = tpu.matmul %45, %47, %cst_36 {dimension_numbers = #tpu.dot_dimension_numbers<[1], [0], [0], [1], [0, 0, 1, 1], [], []>} : vector<256x4xbf16>, vector<4x4xbf16>, vector<256x4xf32> -> vector<256x4xf32>
    %49 = arith.addf %41, %48 : vector<256x4xf32>
    %c24_37 = arith.constant 24 : index
    %c0_38 = arith.constant 0 : index
    %50 = vector.load %arg14[%c24_37, %c0_38] : memref<304x4xf32, #tpu.memory_space<vmem>>, vector<256x4xf32>
    %51 = arith.truncf %50 : vector<256x4xf32> to vector<256x4xbf16>
    %c4 = arith.constant 4 : index
    %c0_39 = arith.constant 0 : index
    %c0_40 = arith.constant 0 : index
    %52 = vector.load %arg3[%c4, %c0_39, %c0_40] : memref<9x4x4xbf16, #tpu.memory_space<vmem>>, vector<1x4x4xbf16>
    %53 = vector.shape_cast %52 : vector<1x4x4xbf16> to vector<4x4xbf16>
    %cst_41 = arith.constant dense<0.000000e+00> : vector<256x4xf32>
    %54 = tpu.matmul %51, %53, %cst_41 {dimension_numbers = #tpu.dot_dimension_numbers<[1], [0], [0], [1], [0, 0, 1, 1], [], []>} : vector<256x4xbf16>, vector<4x4xbf16>, vector<256x4xf32> -> vector<256x4xf32>
    %55 = arith.addf %49, %54 : vector<256x4xf32>
    %c25 = arith.constant 25 : index
    %c0_42 = arith.constant 0 : index
    %56 = vector.load %arg14[%c25, %c0_42] : memref<304x4xf32, #tpu.memory_space<vmem>>, vector<256x4xf32>
    %57 = vector.broadcast %18 : vector<256x1xf32> to vector<256x4xf32>
    %58 = arith.mulf %56, %57 : vector<256x4xf32>
    %59 = arith.truncf %58 : vector<256x4xf32> to vector<256x4xbf16>
    %c5 = arith.constant 5 : index
    %c0_43 = arith.constant 0 : index
    %c0_44 = arith.constant 0 : index
    %60 = vector.load %arg3[%c5, %c0_43, %c0_44] : memref<9x4x4xbf16, #tpu.memory_space<vmem>>, vector<1x4x4xbf16>
    %61 = vector.shape_cast %60 : vector<1x4x4xbf16> to vector<4x4xbf16>
    %cst_45 = arith.constant dense<0.000000e+00> : vector<256x4xf32>
    %62 = tpu.matmul %59, %61, %cst_45 {dimension_numbers = #tpu.dot_dimension_numbers<[1], [0], [0], [1], [0, 0, 1, 1], [], []>} : vector<256x4xbf16>, vector<4x4xbf16>, vector<256x4xf32> -> vector<256x4xf32>
    %63 = arith.addf %55, %62 : vector<256x4xf32>
    %c39 = arith.constant 39 : index
    %c0_46 = arith.constant 0 : index
    %64 = vector.load %arg14[%c39, %c0_46] : memref<304x4xf32, #tpu.memory_space<vmem>>, vector<256x4xf32>
    %65 = vector.broadcast %17 : vector<256x1xf32> to vector<256x4xf32>
    %66 = arith.mulf %64, %65 : vector<256x4xf32>
    %67 = arith.truncf %66 : vector<256x4xf32> to vector<256x4xbf16>
    %c6 = arith.constant 6 : index
    %c0_47 = arith.constant 0 : index
    %c0_48 = arith.constant 0 : index
    %68 = vector.load %arg3[%c6, %c0_47, %c0_48] : memref<9x4x4xbf16, #tpu.memory_space<vmem>>, vector<1x4x4xbf16>
    %69 = vector.shape_cast %68 : vector<1x4x4xbf16> to vector<4x4xbf16>
    %cst_49 = arith.constant dense<0.000000e+00> : vector<256x4xf32>
    %70 = tpu.matmul %67, %69, %cst_49 {dimension_numbers = #tpu.dot_dimension_numbers<[1], [0], [0], [1], [0, 0, 1, 1], [], []>} : vector<256x4xbf16>, vector<4x4xbf16>, vector<256x4xf32> -> vector<256x4xf32>
    %71 = arith.addf %63, %70 : vector<256x4xf32>
    %c40 = arith.constant 40 : index
    %c0_50 = arith.constant 0 : index
    %72 = vector.load %arg14[%c40, %c0_50] : memref<304x4xf32, #tpu.memory_space<vmem>>, vector<256x4xf32>
    %73 = arith.truncf %72 : vector<256x4xf32> to vector<256x4xbf16>
    %c7_51 = arith.constant 7 : index
    %c0_52 = arith.constant 0 : index
    %c0_53 = arith.constant 0 : index
    %74 = vector.load %arg3[%c7_51, %c0_52, %c0_53] : memref<9x4x4xbf16, #tpu.memory_space<vmem>>, vector<1x4x4xbf16>
    %75 = vector.shape_cast %74 : vector<1x4x4xbf16> to vector<4x4xbf16>
    %cst_54 = arith.constant dense<0.000000e+00> : vector<256x4xf32>
    %76 = tpu.matmul %73, %75, %cst_54 {dimension_numbers = #tpu.dot_dimension_numbers<[1], [0], [0], [1], [0, 0, 1, 1], [], []>} : vector<256x4xbf16>, vector<4x4xbf16>, vector<256x4xf32> -> vector<256x4xf32>
    %77 = arith.addf %71, %76 : vector<256x4xf32>
    %c41 = arith.constant 41 : index
    %c0_55 = arith.constant 0 : index
    %78 = vector.load %arg14[%c41, %c0_55] : memref<304x4xf32, #tpu.memory_space<vmem>>, vector<256x4xf32>
    %79 = vector.broadcast %18 : vector<256x1xf32> to vector<256x4xf32>
    %80 = arith.mulf %78, %79 : vector<256x4xf32>
    %81 = arith.truncf %80 : vector<256x4xf32> to vector<256x4xbf16>
    %c8_56 = arith.constant 8 : index
    %c0_57 = arith.constant 0 : index
    %c0_58 = arith.constant 0 : index
    %82 = vector.load %arg3[%c8_56, %c0_57, %c0_58] : memref<9x4x4xbf16, #tpu.memory_space<vmem>>, vector<1x4x4xbf16>
    %83 = vector.shape_cast %82 : vector<1x4x4xbf16> to vector<4x4xbf16>
    %cst_59 = arith.constant dense<0.000000e+00> : vector<256x4xf32>
    %84 = tpu.matmul %81, %83, %cst_59 {dimension_numbers = #tpu.dot_dimension_numbers<[1], [0], [0], [1], [0, 0, 1, 1], [], []>} : vector<256x4xbf16>, vector<4x4xbf16>, vector<256x4xf32> -> vector<256x4xf32>
    %85 = arith.addf %77, %84 : vector<256x4xf32>
    %c0_60 = arith.constant 0 : index
    %c0_61 = arith.constant 0 : index
    %86 = vector.load %arg7[%c0_60, %c0_61] : memref<1x4xf32, #tpu.memory_space<vmem>>, vector<1x4xf32>
    %87 = vector.broadcast %86 : vector<1x4xf32> to vector<256x4xf32>
    %88 = arith.mulf %85, %87 : vector<256x4xf32>
    %c0_62 = arith.constant 0 : index
    %c0_63 = arith.constant 0 : index
    %89 = vector.load %arg8[%c0_62, %c0_63] : memref<1x4xf32, #tpu.memory_space<vmem>>, vector<1x4xf32>
    %90 = vector.broadcast %89 : vector<1x4xf32> to vector<256x4xf32>
    %91 = arith.addf %88, %90 : vector<256x4xf32>
    %cst_64 = arith.constant 0.000000e+00 : f32
    %92 = vector.broadcast %cst_64 : f32 to vector<256x4xf32>
    %93 = arith.maximumf %91, %92 : vector<256x4xf32>
    %94 = arith.truncf %93 : vector<256x4xf32> to vector<256x4xbf16>
    %c0_65 = arith.constant 0 : index
    %c0_66 = arith.constant 0 : index
    %95 = vector.load %arg4[%c0_65, %c0_66] : memref<4x16xbf16, #tpu.memory_space<vmem>>, vector<4x16xbf16>
    %cst_67 = arith.constant dense<0.000000e+00> : vector<256x16xf32>
    %96 = tpu.matmul %94, %95, %cst_67 {dimension_numbers = #tpu.dot_dimension_numbers<[1], [0], [0], [1], [0, 0, 1, 1], [], []>} : vector<256x4xbf16>, vector<4x16xbf16>, vector<256x16xf32> -> vector<256x16xf32>
    %c0_68 = arith.constant 0 : index
    %c0_69 = arith.constant 0 : index
    %97 = vector.load %arg9[%c0_68, %c0_69] : memref<1x16xf32, #tpu.memory_space<vmem>>, vector<1x16xf32>
    %98 = vector.broadcast %97 : vector<1x16xf32> to vector<256x16xf32>
    %99 = arith.mulf %96, %98 : vector<256x16xf32>
    %c0_70 = arith.constant 0 : index
    %c0_71 = arith.constant 0 : index
    %100 = vector.load %arg10[%c0_70, %c0_71] : memref<1x16xf32, #tpu.memory_space<vmem>>, vector<1x16xf32>
    %101 = vector.broadcast %100 : vector<1x16xf32> to vector<256x16xf32>
    %102 = arith.addf %99, %101 : vector<256x16xf32>
    %103 = arith.extf %1 : vector<256x16xbf16> to vector<256x16xf32>
    %104 = arith.addf %102, %103 : vector<256x16xf32>
    %cst_72 = arith.constant 0.000000e+00 : f32
    %105 = vector.broadcast %cst_72 : f32 to vector<256x16xf32>
    %106 = arith.maximumf %104, %105 : vector<256x16xf32>
    %c0_73 = arith.constant 0 : index
    %c0_74 = arith.constant 0 : index
    %c0_75 = arith.constant 0 : index
    %107 = vector.load %arg13[%c0_73, %c0_74, %c0_75] : memref<1x256x16xf32, #tpu.memory_space<vmem>>, vector<1x256x16xf32>
    %108 = vector.shape_cast %107 : vector<1x256x16xf32> to vector<256x16xf32>
    %109 = vector.shape_cast %106 : vector<256x16xf32> to vector<1x256x16xf32>
    tpu.vector_store %arg13[%c0_73, %c0_74, %c0_75], %109 {strides = array<i32>} : memref<1x256x16xf32, #tpu.memory_space<vmem>>, vector<1x256x16xf32>,
    return
  }
  func.func @transform_0(%arg0: i32) -> (i32, i32, i32) {
    %c0_i32 = arith.constant 0 : i32
    %c0_i32_0 = arith.constant 0 : i32
    %c0_i32_1 = arith.constant 0 : i32
    return %arg0, %c0_i32, %c0_i32_0 : i32, i32, i32
  }
  func.func @transform_1(%arg0: i32) -> (i32, i32) {
    %c0_i32 = arith.constant 0 : i32
    %c0_i32_0 = arith.constant 0 : i32
    %c0_i32_1 = arith.constant 0 : i32
    return %c0_i32, %c0_i32_0 : i32, i32
  }
  func.func @transform_2(%arg0: i32) -> (i32, i32, i32) {
    %c0_i32 = arith.constant 0 : i32
    %c0_i32_0 = arith.constant 0 : i32
    %c0_i32_1 = arith.constant 0 : i32
    %c0_i32_2 = arith.constant 0 : i32
    return %c0_i32, %c0_i32_0, %c0_i32_1 : i32, i32, i32
  }
  func.func @transform_3(%arg0: i32) -> (i32, i32) {
    %c0_i32 = arith.constant 0 : i32
    %c0_i32_0 = arith.constant 0 : i32
    %c0_i32_1 = arith.constant 0 : i32
    return %c0_i32, %c0_i32_0 : i32, i32
  }
  func.func @transform_4(%arg0: i32) -> (i32, i32) {
    %c0_i32 = arith.constant 0 : i32
    %c0_i32_0 = arith.constant 0 : i32
    %c0_i32_1 = arith.constant 0 : i32
    return %c0_i32, %c0_i32_0 : i32, i32
  }
  func.func @transform_5(%arg0: i32) -> (i32, i32) {
    %c0_i32 = arith.constant 0 : i32
    %c0_i32_0 = arith.constant 0 : i32
    %c0_i32_1 = arith.constant 0 : i32
    return %c0_i32, %c0_i32_0 : i32, i32
  }
  func.func @transform_6(%arg0: i32) -> (i32, i32) {
    %c0_i32 = arith.constant 0 : i32
    %c0_i32_0 = arith.constant 0 : i32
    %c0_i32_1 = arith.constant 0 : i32
    return %c0_i32, %c0_i32_0 : i32, i32
  }
  func.func @transform_7(%arg0: i32) -> (i32, i32) {
    %c0_i32 = arith.constant 0 : i32
    %c0_i32_0 = arith.constant 0 : i32
    %c0_i32_1 = arith.constant 0 : i32
    return %c0_i32, %c0_i32_0 : i32, i32
  }
  func.func @transform_8(%arg0: i32) -> (i32, i32) {
    %c0_i32 = arith.constant 0 : i32
    %c0_i32_0 = arith.constant 0 : i32
    %c0_i32_1 = arith.constant 0 : i32
    return %c0_i32, %c0_i32_0 : i32, i32
  }
  func.func @transform_9(%arg0: i32) -> (i32, i32) {
    %c0_i32 = arith.constant 0 : i32
    %c0_i32_0 = arith.constant 0 : i32
    %c0_i32_1 = arith.constant 0 : i32
    return %c0_i32, %c0_i32_0 : i32, i32
  }
  func.func @transform_10(%arg0: i32) -> (i32, i32) {
    %c0_i32 = arith.constant 0 : i32
    %c0_i32_0 = arith.constant 0 : i32
    %c0_i32_1 = arith.constant 0 : i32
    return %c0_i32, %c0_i32_0 : i32, i32
  }
  func.func @transform_11(%arg0: i32) -> (i32, i32) {
    %c0_i32 = arith.constant 0 : i32
    %c0_i32_0 = arith.constant 0 : i32
    %c0_i32_1 = arith.constant 0 : i32
    return %c0_i32, %c0_i32_0 : i32, i32
  }
  func.func @transform_12(%arg0: i32) -> (i32, i32, i32) {
    %c0_i32 = arith.constant 0 : i32
    %c0_i32_0 = arith.constant 0 : i32
    %c0_i32_1 = arith.constant 0 : i32
    return %arg0, %c0_i32, %c0_i32_0 : i32, i32, i32
  }
}

</mosaic_0001>

<bundles_post_ra>
// kernel: bottleneck_forward.1
= control target key start
LH: loop header
LB: loop body
LE: loop exit
PB: predicated region body
PF: predicated region fallthrough
CT: control target
= control target key end

     0   :  { %s5838_s21 = smov 0   ;;  %s7817_s0 = inlined_call_operand.vmem [shape: bf16[2,256,16], index: 0, kind: input, shape index: {}]   ;;  %s7818_s1 = inlined_call_operand.vmem [shape: bf16[16,4], index: 1, kind: input, shape index: {}]   ;;  %s7819_s2 = inlined_call_operand.vmem [shape: bf16[9,4,4], index: 2, kind: input, shape index: {}]   ;;  %s7820_s3 = inlined_call_operand.vmem [shape: bf16[4,16], index: 3, kind: input, shape index: {}]   ;;  %s7821_s4 = inlined_call_operand.vmem [shape: f32[1,4], index: 4, kind: input, shape index: {}]   ;;  %s7822_s5 = inlined_call_operand.vmem [shape: f32[1,4], index: 5, kind: input, shape index: {}]   ;;  %s7823_s6 = inlined_call_operand.vmem [shape: f32[1,4], index: 6, kind: input, shape index: {}]   ;;  %s7824_s7 = inlined_call_operand.vmem [shape: f32[1,4], index: 7, kind: input, shape index: {}]   ;;  %s7825_s8 = inlined_call_operand.vmem [shape: f32[1,16], index: 8, kind: input, shape index: {}]   ;;  %s7826_s9 = inlined_call_operand.vmem [shape: f32[1,16], index: 9, kind: input, shape index: {}]   ;;  %s7827_s10 = inlined_call_operand.vmem [shape: f32[256,1], index: 10, kind: input, shape index: {}]   ;;  %s7828_s11 = inlined_call_operand.vmem [shape: f32[256,1], index: 11, kind: input, shape index: {}]   ;;  %s7829_s12 = inlined_call_operand.vmem [shape: f32[2,256,16], index: 12, kind: output, shape index: {}]  }
   0x1 LB: > { %s4652_s22 = sadd.s32 4294967295, %s5769_s21   ;;  %p4656_p0 = scmp.ge.s32.totalorder %s5769_s21, 1  ;;  %s5769_s21 = sphi %s5838_s21, %s22_s21  }
   0x2   : > { %p362_p1 = scmp.lt.s32.totalorder %s5769_s21, 3 }
   0x4   : > { %p363_p2 = pnand %p4656_p0, %p362_p1 }
   0x6   : > { %366 = sbr.rel (%p363_p2) target bundleno = 1095 (0x447), region = 68 }
   0xd   : > { %v912_v0 = vld [vmem:[%s7827_s10 + $0x90] sm:$0xff]  ;;  %v5771_v1 = vmov 0   ;;  %v5714_v2 = vld [vmem:[%s7818_s1] sm:$0xff]   ;;  %p404_p3 = scmp.lt.s32.totalorder %s4652_s22, 1  ;;  %v913_v4 = vld [vmem:[%s7827_s10 + $0x98] sm:$0xff]  ;;  %vm535_vm0 = vcmask 130048  }
   0xe   : > { %5713 = vset.pattern.permute.xlu1 %v5771_v1  ;;  %5712 = vset.pattern.permute.xlu0 %v5771_v1  ;;  %v910_v3 = vld [vmem:[%s7827_s10 + $0x80] sm:$0xff]  ;;  %v911_v5 = vld [vmem:[%s7827_s10 + $0x88] sm:$0xff]  ;;  %v917_v11 = vld [vmem:[%s7827_s10 + $0xb8] sm:$0xff]  ;;  %vm855_vm1 = vcmask 31744   ;;  %v5772_v27 = vmov 0.0   ;;  %vm1297_vm2 = vcmask 1041408  }
   0xf   : > { %1082 = vperm.xlu1 %5713, %v912_v0   ;;  %1072 = vperm.xlu0 %5712, %v910_v3   ;;  %s8400_s22 = smov (!%p404_p3, %s4652_s22), 1  ;;  %v915_v6 = vld [vmem:[%s7827_s10 + $0xa8] sm:$0xff]  ;;  %v914_v10 = vld [vmem:[%s7827_s10 + $0xa0] sm:$0xff]  ;;  %v916_v13 = vld [vmem:[%s7827_s10 + $0xb0] sm:$0xff]  ;;  %859 = vst.msk [vmem:[#allocation2 + $0x118] sm:$0xff] %vm855_vm1, %v5772_v27 }
  0x10   : > { %5059 = vmatprep.subr.bf16.mxu0 %v5714_v2  ;;  %s4870_s15 = sshll.u32 %s8400_s22, 7  ;;  %v919_v15 = vld [vmem:[%s7827_s10 + $0xc8] sm:$0xff]  ;;  %v918_v16 = vld [vmem:[%s7827_s10 + $0xc0] sm:$0xff]  ;;  %v921_v17 = vld [vmem:[%s7827_s10 + $0xd8] sm:$0xff]  ;;  %860 = vst.msk [vmem:[#allocation2 + $0x120] sm:$0xff] %vm855_vm1, %v5772_v27  ;;  %s4871_s23 = sshll.u32 %s8400_s22, 8 }
  0x11   : > { %5060 = vmatpush3.bf16.msra.mxu0 %v5714_v2  ;;  %s5867_s18 = scalar_lea.vmem %s7817_s0, %s4870_s15  ;;  %v920_v19 = vld [vmem:[%s7827_s10 + $0xd0] sm:$0xff]  ;;  %v923_v21 = vld [vmem:[%s7827_s10 + $0xe8] sm:$0xff]  ;;  %v922_v22 = vld [vmem:[%s7827_s10 + $0xe0] sm:$0xff]  ;;  %856 = vst.msk [vmem:[#allocation2] sm:$0xff] %vm855_vm1, %v5772_v27  ;;  %s7677_s26 = scalar_lea.vmem %s7829_s12, %s4871_s23 }
  0x12   : > { %v415_v7 = vld [vmem:[%s5867_s18] sm:$0xff]   ;;  %v417_v8 = vld [vmem:[%s5867_s18 + $0x8] sm:$0xff]   ;;  %v419_v9 = vld [vmem:[%s5867_s18 + $0x10] sm:$0xff]   ;;  %857 = vst.msk [vmem:[#allocation2 + $0x8] sm:$0xff] %vm855_vm1, %v5772_v27 }
  0x13   : > { %1087 = vperm.xlu1 %5713, %v913_v4   ;;  %1077 = vperm.xlu0 %5712, %v911_v5   ;;  %v421_v12 = vld [vmem:[%s5867_s18 + $0x18] sm:$0xff]   ;;  %v423_v14 = vld [vmem:[%s5867_s18 + $0x20] sm:$0xff]   ;;  %v425_v18 = vld [vmem:[%s5867_s18 + $0x28] sm:$0xff]   ;;  %858 = vst.msk [vmem:[#allocation2 + $0x10] sm:$0xff] %vm855_vm1, %v5772_v27 }
  0x14   : > { %5061 = vmatprep.mubr.msk.bf16.mxu0 %vm535_vm0, %v415_v7  ;;  %v427_v20 = vld [vmem:[%s5867_s18 + $0x30] sm:$0xff]   ;;  %v925_v23 = vld [vmem:[%s7827_s10 + $0xf8] sm:$0xff]  ;;  %v431_v26 = vld [vmem:[%s5867_s18 + $0x40] sm:$0xff]   ;;  %861 = vst.msk [vmem:[#allocation2 + $0x128] sm:$0xff] %vm855_vm1, %v5772_v27 }
  0x15   : > { %5062 = vmatmul.mubr.msk.bf16.vlgmr.msra.gmra.mrb[0].mxu0 %vm535_vm0, %v417_v8  ;;  %v429_v24 = vld [vmem:[%s5867_s18 + $0x38] sm:$0xff]   ;;  %v924_v25 = vld [vmem:[%s7827_s10 + $0xf0] sm:$0xff]  ;;  %v927_v28 = vld [vmem:[%s7828_s11 + $0x8] sm:$0xff] }
  0x16   : > { %5065 = vmatprep.mubr.msk.bf16.mxu0 %vm535_vm0, %v419_v9  ;;  %v926_v29 = vld [vmem:[%s7828_s11] sm:$0xff]  ;;  %v929_v30 = vld [vmem:[%s7828_s11 + $0x18] sm:$0xff]  ;;  %v433_v31 = vld [vmem:[%s5867_s18 + $0x48] sm:$0xff]  }
  0x17   : > { %1097 = vperm.xlu1 %5713, %v915_v6   ;;  %1092 = vperm.xlu0 %5712, %v914_v10   ;;  %v928_v32 = vld [vmem:[%s7828_s11 + $0x10] sm:$0xff]  ;;  %v931_v34 = vld [vmem:[%s7828_s11 + $0x28] sm:$0xff]  ;;  %v930_v35 = vld [vmem:[%s7828_s11 + $0x20] sm:$0xff] }
  0x18   : > { %v435_v33 = vld [vmem:[%s5867_s18 + $0x50] sm:$0xff]   ;;  %v933_v36 = vld [vmem:[%s7828_s11 + $0x38] sm:$0xff]  ;;  %v439_v39 = vld [vmem:[%s5867_s18 + $0x60] sm:$0xff]  }
  0x19   : > { %v437_v37 = vld [vmem:[%s5867_s18 + $0x58] sm:$0xff]   ;;  %v932_v38 = vld [vmem:[%s7828_s11 + $0x30] sm:$0xff]  ;;  %v935_v40 = vld [vmem:[%s7828_s11 + $0x48] sm:$0xff] }
  0x1a   : > { %v934_v41 = vld [vmem:[%s7828_s11 + $0x40] sm:$0xff]  ;;  %v937_v42 = vld [vmem:[%s7828_s11 + $0x58] sm:$0xff]  ;;  %v441_v43 = vld [vmem:[%s5867_s18 + $0x68] sm:$0xff]  }
  0x1b   : > { %1107 = vperm.xlu1 %5713, %v917_v11   ;;  %1102 = vperm.xlu0 %5712, %v916_v13   ;;  %v936_v44 = vld [vmem:[%s7828_s11 + $0x50] sm:$0xff]  ;;  %v939_v46 = vld [vmem:[%s7828_s11 + $0x68] sm:$0xff]  ;;  %v938_v47 = vld [vmem:[%s7828_s11 + $0x60] sm:$0xff] }
  0x1c   : > { %v443_v45 = vld [vmem:[%s5867_s18 + $0x70] sm:$0xff]   ;;  %v941_v48 = vld [vmem:[%s7828_s11 + $0x78] sm:$0xff]  ;;  %v943_v51 = vld [vmem:[%s7828_s11 + $0x88] sm:$0xff] }
  0x1d   : > { %5066 = vmatmul.mubr.msk.bf16.gmra.mrb[4].mxu0 %vm535_vm0, %v421_v12  ;;  %v445_v49 = vld [vmem:[%s5867_s18 + $0x78] sm:$0xff]   ;;  %v940_v50 = vld [vmem:[%s7828_s11 + $0x70] sm:$0xff]  ;;  %v942_v52 = vld [vmem:[%s7828_s11 + $0x80] sm:$0xff] }
  0x1e   : > { %5069 = vmatprep.mubr.msk.bf16.mxu0 %vm535_vm0, %v423_v14  ;;  %v945_v53 = vld [vmem:[%s7828_s11 + $0x98] sm:$0xff]  ;;  %v944_v54 = vld [vmem:[%s7828_s11 + $0x90] sm:$0xff]  ;;  %v947_v55 = vld [vmem:[%s7828_s11 + $0xa8] sm:$0xff] }
  0x1f   : > { %1117 = vperm.xlu1 %5713, %v919_v15   ;;  %1112 = vperm.xlu0 %5712, %v918_v16   ;;  %v946_v56 = vld [vmem:[%s7828_s11 + $0xa0] sm:$0xff]  ;;  %v949_v57 = vld [vmem:[%s7828_s11 + $0xb8] sm:$0xff]  ;;  %v948_v58 = vld [vmem:[%s7828_s11 + $0xb0] sm:$0xff] }
  0x20   : > { %v951_v59 = vld [vmem:[%s7828_s11 + $0xc8] sm:$0xff]  ;;  %v950_v60 = vld [vmem:[%s7828_s11 + $0xc0] sm:$0xff]  ;;  %v953_v61 = vld [vmem:[%s7828_s11 + $0xd8] sm:$0xff] }
  0x21   : > { %v952_v62 = vld [vmem:[%s7828_s11 + $0xd0] sm:$0xff]  ;;  %v955_v63 = vld [vmem:[%s7828_s11 + $0xe8] sm:$0xff]  ;;  %v954_v0 = vld [vmem:[%s7828_s11 + $0xe0] sm:$0xff] }
  0x22   : > { %v957_v1 = vld [vmem:[%s7828_s11 + $0xf8] sm:$0xff]  ;;  %v956_v2 = vld [vmem:[%s7828_s11 + $0xf0] sm:$0xff]  ;;  %v895_v3 = vld [vmem:[%s7827_s10 + $0x8] sm:$0xff] }
  0x23   : > { %1127 = vperm.xlu1 %5713, %v921_v17   ;;  %1122 = vperm.xlu0 %5712, %v920_v19   ;;  %v894_v4 = vld [vmem:[%s7827_s10] sm:$0xff]  ;;  %v897_v5 = vld [vmem:[%s7827_s10 + $0x18] sm:$0xff]  ;;  %v896_v6 = vld [vmem:[%s7827_s10 + $0x10] sm:$0xff] }
  0x24   : > { %v899_v7 = vld [vmem:[%s7827_s10 + $0x28] sm:$0xff]  ;;  %v898_v8 = vld [vmem:[%s7827_s10 + $0x20] sm:$0xff]  ;;  %v901_v9 = vld [vmem:[%s7827_s10 + $0x38] sm:$0xff] }
  0x25   : > { %5070 = vmatmul.mubr.msk.bf16.gmra.mrb[8].mxu0 %vm535_vm0, %v425_v18  ;;  %v900_v10 = vld [vmem:[%s7827_s10 + $0x30] sm:$0xff]  ;;  %v4696_v11 = vld [vmem:[%s7819_s2 + $0x2] sm:$0x3]  ;;  %v903_v12 = vld [vmem:[%s7827_s10 + $0x48] sm:$0xff] }
  0x26   : > { %5073 = vmatprep.mubr.msk.bf16.mxu0 %vm535_vm0, %v427_v20  ;;  %5691 = vmatprep.subr.msk.bf16.mxu0 %vm1297_vm2, %v4696_v11  ;;  %v1299_v13 = vsel %vm1297_vm2, %v4696_v11, 0  ;;  %v902_v14 = vld [vmem:[%s7827_s10 + $0x40] sm:$0xff]  ;;  %v1199_v15 = vld [vmem:[#allocation2 + $0x8] sm:$0xff]  ;;  %v1200_v16 = vld [vmem:[#allocation2 + $0x10] sm:$0xff] }
  0x27   : > { %1137 = vperm.xlu1 %5713, %v923_v21   ;;  %1132 = vperm.xlu0 %5712, %v922_v22   ;;  %v1231_v17 = vpack.c.bf16 %v1200_v16, %v1199_v15  ;;  %v905_v18 = vld [vmem:[%s7827_s10 + $0x58] sm:$0xff]  ;;  %v904_v19 = vld [vmem:[%s7827_s10 + $0x50] sm:$0xff]  ;;  %v907_v20 = vld [vmem:[%s7827_s10 + $0x68] sm:$0xff] }
  0x28   : > { %5094 = vmatpush3.bf16.msra.mxu0 %v1299_v13  ;;  %v906_v21 = vld [vmem:[%s7827_s10 + $0x60] sm:$0xff]  ;;  %v909_v22 = vld [vmem:[%s7827_s10 + $0x78] sm:$0xff] }
  0x29   : > { %v6221_v13 = vld [vmem:[%s7822_s5] ss:$0 sm:$0xff] }
  0x2b   : > { %1147 = vperm.xlu1 %5713, %v925_v23   ;;  %1142 = vperm.xlu0 %5712, %v924_v25   ;;  %v908_v23 = vld [vmem:[%s7827_s10 + $0x70] sm:$0xff] }
  0x2d   : > { %5074 = vmatmul.mubr.msk.bf16.gmra.mrb[12].mxu0 %vm535_vm0, %v429_v24 }
  0x2e   : > { %5077 = vmatprep.mubr.msk.bf16.mxu0 %vm535_vm0, %v431_v26 }
  0x2f   : > { %1713 = vperm.xlu1 %5713, %v927_v28   ;;  %1708 = vperm.xlu0 %5712, %v926_v29  }
  0x33   : > { %1723 = vperm.xlu1 %5713, %v929_v30   ;;  %1718 = vperm.xlu0 %5712, %v928_v32  }
  0x35   : > { %5078 = vmatmul.mubr.msk.bf16.gmra.mrb[16].mxu0 %vm535_vm0, %v433_v31 }
  0x36   : > { %5081 = vmatprep.mubr.msk.bf16.mxu0 %vm535_vm0, %v435_v33 }
  0x37   : > { %1733 = vperm.xlu1 %5713, %v931_v34   ;;  %1728 = vperm.xlu0 %5712, %v930_v35  }
  0x3b   : > { %1743 = vperm.xlu1 %5713, %v933_v36   ;;  %1738 = vperm.xlu0 %5712, %v932_v38   ;;  %v6120_v36 = vld [vmem:[%s7819_s2 + $0x6] sm:$0x3] }
  0x3c   : > { %8021 = vst [vmem:[#allocation3_spill] sm:$0xff] %v6120_v36  ;;  %5695 = vmatprep.subr.msk.bf16.mxu1 %vm1297_vm2, %v6120_v36 }
  0x3d   : > { %5082 = vmatmul.mubr.msk.bf16.gmra.mrb[20].mxu0 %vm535_vm0, %v437_v37  ;;  %v6126_v37 = vsel %vm1297_vm2, %v6120_v36, 0 }
  0x3e   : > { %5085 = vmatprep.mubr.msk.bf16.mxu0 %vm535_vm0, %v439_v39  ;;  %8022 = vst [vmem:[#allocation4_spill] sm:$0xff] %v6126_v37  ;;  %5434 = vmatpush3.bf16.msra.mxu1 %v6126_v37  ;;  %v6134_v39 = vld [vmem:[%s7819_s2 + $0x8] sm:$0x3] }
  0x3f   : > { %1753 = vperm.xlu1 %5713, %v935_v40   ;;  %1748 = vperm.xlu0 %5712, %v934_v41  }
  0x40   : > { %5696 = vmatprep.subr.msk.bf16.mxu1 %vm1297_vm2, %v6134_v39 }
  0x43   : > { %1763 = vperm.xlu1 %5713, %v937_v42   ;;  %1758 = vperm.xlu0 %5712, %v936_v44  }
  0x45   : > { %5086 = vmatmul.mubr.msk.bf16.gmra.mrb[24].mxu0 %vm535_vm0, %v441_v43 }
  0x46   : > { %5089 = vmatprep.mubr.msk.bf16.mxu0 %vm535_vm0, %v443_v45 }
  0x47   : > { %1773 = vperm.xlu1 %5713, %v939_v46   ;;  %1768 = vperm.xlu0 %5712, %v938_v47  }
  0x4b   : > { %1783 = vperm.xlu1 %5713, %v941_v48   ;;  %1778 = vperm.xlu0 %5712, %v940_v50  }
  0x4d   : > { %5090 = vmatmul.mubr.msk.bf16.gmra.mrb[28].mxu0 %vm535_vm0, %v445_v49 }
  0x4e   : > { %5095 = vmatprep.mubr.msk.bf16.mxu0 %vm855_vm1, %v1231_v17 }
  0x4f   : > { %1793 = vperm.xlu1 %5713, %v943_v51   ;;  %1788 = vperm.xlu0 %5712, %v942_v52  }
  0x53   : > { %1803 = vperm.xlu1 %5713, %v945_v53   ;;  %1798 = vperm.xlu0 %5712, %v944_v54   ;;  %v6167_v53 = vld [vmem:[%s7819_s2] sm:$0x3] }
  0x54   : > { %5692 = vmatprep.subr.msk.bf16.mxu0 %vm1297_vm2, %v6167_v53 }
  0x57   : > { %1813 = vperm.xlu1 %5713, %v947_v55   ;;  %1808 = vperm.xlu0 %5712, %v946_v56  }
  0x5b   : > { %1823 = vperm.xlu1 %5713, %v949_v57   ;;  %1818 = vperm.xlu0 %5712, %v948_v58  }
  0x5f   : > { %1833 = vperm.xlu1 %5713, %v951_v59   ;;  %1828 = vperm.xlu0 %5712, %v950_v60  }
  0x63   : > { %1843 = vperm.xlu1 %5713, %v953_v61   ;;  %1838 = vperm.xlu0 %5712, %v952_v62  }
  0x67   : > { %1853 = vperm.xlu1 %5713, %v955_v63   ;;  %1848 = vperm.xlu0 %5712, %v954_v0  }
  0x6b   : > { %1863 = vperm.xlu1 %5713, %v957_v1   ;;  %1858 = vperm.xlu0 %5712, %v956_v2  }
  0x6f   : > { %997 = vperm.xlu1 %5713, %v895_v3   ;;  %992 = vperm.xlu0 %5712, %v894_v4  }
  0x73   : > { %1007 = vperm.xlu1 %5713, %v897_v5   ;;  %1002 = vperm.xlu0 %5712, %v896_v6  }
  0x77   : > { %1017 = vperm.xlu1 %5713, %v899_v7   ;;  %1012 = vperm.xlu0 %5712, %v898_v8  }
  0x7b   : > { %1027 = vperm.xlu1 %5713, %v901_v9   ;;  %1022 = vperm.xlu0 %5712, %v900_v10   ;;  %v6214_v10 = vld [vmem:[%s7821_s4] ss:$0 sm:$0xff] }
  0x7f   : > { %1037 = vperm.xlu1 %5713, %v903_v12   ;;  %1032 = vperm.xlu0 %5712, %v902_v14  }
  0x83   : > { %1047 = vperm.xlu1 %5713, %v905_v18   ;;  %1042 = vperm.xlu0 %5712, %v904_v19  }
  0x87   : > { %1057 = vperm.xlu1 %5713, %v907_v20   ;;  %1052 = vperm.xlu0 %5712, %v906_v21  }
  0x8b   : > { %1067 = vperm.xlu1 %5713, %v909_v22   ;;  %1062 = vperm.xlu0 %5712, %v908_v23  }
  0x8e   : > { %v6093_v24 = vpop.permute.xlu1 %1082  ;;  %v6095_v25 = vpop.permute.xlu0 %1072 }
  0x92   : > { %v6097_v26 = vpop.permute.xlu1 %1087  ;;  %v6099_v27 = vpop.permute.xlu0 %1077 }
  0x96   : > { %v6101_v28 = vpop.permute.xlu1 %1097  ;;  %v6103_v29 = vpop.permute.xlu0 %1092 }
  0x9a   : > { %v6105_v30 = vpop.permute.xlu1 %1107  ;;  %v6107_v31 = vpop.permute.xlu0 %1102 }
  0x9e   : > { %v6109_v32 = vpop.permute.xlu1 %1117  ;;  %v6111_v33 = vpop.permute.xlu0 %1112 }
  0xa2   : > { %v6113_v34 = vpop.permute.xlu1 %1127  ;;  %v6115_v35 = vpop.permute.xlu0 %1122 }
  0xa6   : > { %v6128_v38 = vpop.permute.xlu1 %1137  ;;  %v6136_v40 = vpop.permute.xlu0 %1132 }
  0xa7   : > { %8023 = vst [vmem:[#allocation5_spill] sm:$0xff] %v6128_v38  ;;  %8024 = vst [vmem:[#allocation6_spill] sm:$0xff] %v6136_v40 }
  0xaa   : > { %v6140_v41 = vpop.permute.xlu1 %1147  ;;  %v6142_v42 = vpop.permute.xlu0 %1142 }
  0xab   : > { %8025 = vst [vmem:[#allocation7_spill] sm:$0xff] %v6140_v41  ;;  %8026 = vst [vmem:[#allocation8_spill] sm:$0xff] %v6142_v42 }
  0xae   : > { %v6144_v43 = vpop.permute.xlu1 %1713  ;;  %v6146_v44 = vpop.permute.xlu0 %1708 }
  0xaf   : > { %8027 = vst [vmem:[#allocation9_spill] sm:$0xff] %v6144_v43  ;;  %8028 = vst [vmem:[#allocation10_spill] sm:$0xff] %v6146_v44 }
  0xb2   : > { %v6148_v45 = vpop.permute.xlu1 %1723  ;;  %v6150_v46 = vpop.permute.xlu0 %1718 }
  0xb3   : > { %8029 = vst [vmem:[#allocation11_spill] sm:$0xff] %v6148_v45  ;;  %8030 = vst [vmem:[#allocation12_spill] sm:$0xff] %v6150_v46 }
  0xb6   : > { %v6152_v47 = vpop.permute.xlu1 %1733  ;;  %v6154_v48 = vpop.permute.xlu0 %1728 }
  0xb7   : > { %8031 = vst [vmem:[#allocation13_spill] sm:$0xff] %v6152_v47  ;;  %8032 = vst [vmem:[#allocation14_spill] sm:$0xff] %v6154_v48 }
  0xba   : > { %v6156_v49 = vpop.permute.xlu1 %1743  ;;  %v6158_v50 = vpop.permute.xlu0 %1738 }
  0xbb   : > { %8033 = vst [vmem:[#allocation15_spill] sm:$0xff] %v6156_v49  ;;  %8034 = vst [vmem:[#allocation16_spill] sm:$0xff] %v6158_v50 }
  0xbe   : > { %v6160_v51 = vpop.permute.xlu1 %1753  ;;  %v6162_v52 = vpop.permute.xlu0 %1748 }
  0xbf   : > { %8035 = vst [vmem:[#allocation17_spill] sm:$0xff] %v6160_v51  ;;  %8036 = vst [vmem:[#allocation18_spill] sm:$0xff] %v6162_v52 }
  0xc2   : > { %v6171_v54 = vpop.permute.xlu1 %1763  ;;  %v6173_v55 = vpop.permute.xlu0 %1758 }
  0xc3   : > { %8037 = vst [vmem:[#allocation19_spill] sm:$0xff] %v6171_v54  ;;  %8038 = vst [vmem:[#allocation20_spill] sm:$0xff] %v6173_v55 }
  0xc6   : > { %v6175_v56 = vpop.permute.xlu1 %1773  ;;  %v6177_v57 = vpop.permute.xlu0 %1768 }
  0xc7   : > { %8039 = vst [vmem:[#allocation21_spill] sm:$0xff] %v6175_v56  ;;  %8040 = vst [vmem:[#allocation22_spill] sm:$0xff] %v6177_v57 }
  0xca   : > { %v6179_v58 = vpop.permute.xlu1 %1783  ;;  %v6181_v59 = vpop.permute.xlu0 %1778 }
  0xcb   : > { %8041 = vst [vmem:[#allocation23_spill] sm:$0xff] %v6179_v58  ;;  %8042 = vst [vmem:[#allocation24_spill] sm:$0xff] %v6181_v59 }
  0xce   : > { %v6183_v60 = vpop.permute.xlu1 %1793  ;;  %v6185_v61 = vpop.permute.xlu0 %1788 }
  0xcf   : > { %8043 = vst [vmem:[#allocation25_spill] sm:$0xff] %v6183_v60  ;;  %8044 = vst [vmem:[#allocation26_spill] sm:$0xff] %v6185_v61 }
  0xd2   : > { %v6187_v62 = vpop.permute.xlu1 %1803  ;;  %v6189_v63 = vpop.permute.xlu0 %1798 }
  0xd3   : > { %8045 = vst [vmem:[#allocation27_spill] sm:$0xff] %v6187_v62  ;;  %8046 = vst [vmem:[#allocation28_spill] sm:$0xff] %v6189_v63 }
  0xd6   : > { %v6191_v0 = vpop.permute.xlu1 %1813  ;;  %v6193_v1 = vpop.permute.xlu0 %1808 }
  0xd7   : > { %8047 = vst [vmem:[#allocation29_spill] sm:$0xff] %v6191_v0  ;;  %8048 = vst [vmem:[#allocation30_spill] sm:$0xff] %v6193_v1 }
  0xda   : > { %v6195_v2 = vpop.permute.xlu1 %1823  ;;  %v6197_v3 = vpop.permute.xlu0 %1818 }
  0xdb   : > { %8049 = vst [vmem:[#allocation31_spill] sm:$0xff] %v6195_v2  ;;  %8050 = vst [vmem:[#allocation32_spill] sm:$0xff] %v6197_v3 }
  0xde   : > { %v6199_v4 = vpop.permute.xlu1 %1833  ;;  %v6201_v5 = vpop.permute.xlu0 %1828 }
  0xdf   : > { %8051 = vst [vmem:[#allocation33_spill] sm:$0xff] %v6199_v4  ;;  %8052 = vst [vmem:[#allocation34_spill] sm:$0xff] %v6201_v5 }
  0xe2   : > { %v6203_v6 = vpop.permute.xlu1 %1843  ;;  %v6205_v7 = vpop.permute.xlu0 %1838 }
  0xe3   : > { %8053 = vst [vmem:[#allocation35_spill] sm:$0xff] %v6203_v6  ;;  %8054 = vst [vmem:[#allocation36_spill] sm:$0xff] %v6205_v7 }
  0xe6   : > { %v6207_v8 = vpop.permute.xlu1 %1853  ;;  %v6209_v9 = vpop.permute.xlu0 %1848 }
  0xe7   : > { %8055 = vst [vmem:[#allocation37_spill] sm:$0xff] %v6207_v8  ;;  %8056 = vst [vmem:[#allocation38_spill] sm:$0xff] %v6209_v9 }
  0xe8   : > { %v5063_v12 = vpop.f32.mrb[0].mxu0 }
  0xe9   : > { %v754_v15 = vmul.f32 %v5063_v12, %v6214_v10  ;;  %v618_v16 = vpop.f32.mrb[1].mxu0 }
  0xea   : > { %v6216_v11 = vpop.permute.xlu1 %1863  ;;  %v6223_v14 = vpop.permute.xlu0 %1858  ;;  %v752_v17 = vmul.f32 %v6214_v10, %v618_v16 }
  0xeb   : > { %8057 = vst [vmem:[#allocation39_spill] sm:$0xff] %v6216_v11  ;;  %8058 = vst [vmem:[#allocation40_spill] sm:$0xff] %v6223_v14  ;;  %v5064_v18 = vpop.f32.mrb[2].mxu0  ;;  %v793_v19 = vadd.f32 %v6221_v13, %v754_v15 }
  0xec   : > { %v755_v20 = vmul.f32 %v5064_v18, %v6214_v10  ;;  %v621_v21 = vpop.f32.mrb[3].mxu0  ;;  %v791_v23 = vadd.f32 %v6221_v13, %v752_v17 }
  0xed   : > { %v753_v11 = vmul.f32 %v6214_v10, %v621_v21  ;;  %v825_v14 = vmax.f32 %v793_v19, 0.0 }
  0xee   : > { %v6229_v22 = vpop.permute.xlu1 %997  ;;  %v6233_v37 = vpop.permute.xlu0 %992  ;;  %v794_v12 = vadd.f32 %v6221_v13, %v755_v20  ;;  %v823_v8 = vmax.f32 %v791_v23, 0.0 }
  0xef   : > { %v792_v16 = vadd.f32 %v6221_v13, %v753_v11  ;;  %864 = vst.msk [vmem:[#allocation2 + $0x28] sm:$0xff] %vm855_vm1, %v825_v14 }
  0xf0   : > { %v826_v15 = vmax.f32 %v794_v12, 0.0  ;;  %862 = vst.msk [vmem:[#allocation2 + $0x18] sm:$0xff] %vm855_vm1, %v823_v8  ;;  %v5067_v9 = vpop.f32.mrb[4].mxu0 }
  0xf1   : > { %v824_v18 = vmax.f32 %v792_v16, 0.0  ;;  %v758_v17 = vmul.f32 %v5067_v9, %v6214_v10  ;;  %v634_v21 = vpop.f32.mrb[5].mxu0 }
  0xf2   : > { %v6239_v6 = vpop.permute.xlu1 %1007  ;;  %865 = vst.msk [vmem:[#allocation2 + $0x30] sm:$0xff] %vm855_vm1, %v826_v15  ;;  %v756_v19 = vmul.f32 %v6214_v10, %v634_v21  ;;  %v5068_v20 = vpop.f32.mrb[6].mxu0 }
  0xf3   : > { %863 = vst.msk [vmem:[#allocation2 + $0x20] sm:$0xff] %vm855_vm1, %v824_v18  ;;  %v6245_v11 = vpop.permute.xlu0 %1002  ;;  %v797_v14 = vadd.f32 %v6221_v13, %v758_v17  ;;  %v759_v8 = vmul.f32 %v5068_v20, %v6214_v10  ;;  %v637_v23 = vpop.f32.mrb[7].mxu0 }
  0xf4   : > { %v795_v12 = vadd.f32 %v6221_v13, %v756_v19  ;;  %v757_v16 = vmul.f32 %v6214_v10, %v637_v23 }
  0xf5   : > { %v829_v15 = vmax.f32 %v797_v14, 0.0  ;;  %v798_v9 = vadd.f32 %v6221_v13, %v759_v8 }
  0xf6   : > { %v827_v7 = vmax.f32 %v795_v12, 0.0  ;;  %v796_v18 = vadd.f32 %v6221_v13, %v757_v16  ;;  %v6253_v4 = vpop.permute.xlu1 %1017 }
  0xf7   : > { %868 = vst.msk [vmem:[#allocation2 + $0x48] sm:$0xff] %vm855_vm1, %v829_v15  ;;  %v6256_v21 = vld [vmem:[#allocation2 + $0x17] sm:$0xff]  ;;  %v830_v17 = vmax.f32 %v798_v9, 0.0  ;;  %v6265_v8 = vpop.permute.xlu0 %1012 }
  0xf8   : > { %v6262_v19 = vmul.f32 %v6256_v21, %v6233_v37  ;;  %866 = vst.msk [vmem:[#allocation2 + $0x38] sm:$0xff] %vm855_vm1, %v827_v7  ;;  %v828_v20 = vmax.f32 %v796_v18, 0.0  ;;  %v5071_v14 = vpop.f32.mrb[8].mxu0 }
  0xf9   : > { %v6258_v5 = vld [vmem:[#allocation2 + $0x2f] sm:$0xff]  ;;  %869 = vst.msk [vmem:[#allocation2 + $0x50] sm:$0xff] %vm855_vm1, %v830_v17  ;;  %v762_v7 = vmul.f32 %v5071_v14, %v6214_v10  ;;  %v650_v9 = vpop.f32.mrb[9].mxu0 }
  0xfa   : > { %8059 = vst [vmem:[#allocation41_spill] sm:$0xff] %v6262_v19  ;;  %v6267_v23 = vld [vmem:[#allocation2 + $0x1f] sm:$0xff]  ;;  %v6271_v12 = vmul.f32 %v6258_v5, %v6229_v22  ;;  %v6273_v16 = vld [vmem:[#allocation2 + $0x27] sm:$0xff]  ;;  %v6278_v15 = vmul.f32 %v6258_v5, %v6239_v6  ;;  %867 = vst.msk [vmem:[#allocation2 + $0x40] sm:$0xff] %vm855_vm1, %v828_v20  ;;  %v5072_v3 = vpop.f32.mrb[10].mxu0  ;;  %v760_v14 = vmul.f32 %v6214_v10, %v650_v9  ;;  %v6303_v58 = vpop.permute.xlu1 %1027 }
  0xfb   : > { %v6283_v18 = vmul.f32 %v6267_v23, %v6229_v22  ;;  %v6287_v2 = vmul.f32 %v6273_v16, %v6233_v37  ;;  %v6292_v17 = vmul.f32 %v6273_v16, %v6245_v11  ;;  %v801_v0 = vadd.f32 %v6221_v13, %v762_v7  ;;  %v653_v62 = vpop.f32.mrb[11].mxu0  ;;  %v1202_v63 = vld [vmem:[#allocation2 + $0x20] sm:$0xff]  ;;  %v1204_v59 = vld [vmem:[#allocation2 + $0x30] sm:$0xff]  ;;  %v6310_v60 = vpop.permute.xlu0 %1022  ;;  %v1203_v19 = vld [vmem:[#allocation2 + $0x28] sm:$0xff] }
  0xfc   : > { %8060 = vst [vmem:[#allocation42_spill] sm:$0xff] %v6271_v12  ;;  %8061 = vst [vmem:[#allocation43_spill] sm:$0xff] %v6278_v15  ;;  %v763_v1 = vmul.f32 %v5072_v3, %v6214_v10  ;;  %v799_v7 = vadd.f32 %v6221_v13, %v760_v14  ;;  %v1201_v3 = vld [vmem:[#allocation2 + $0x18] sm:$0xff]  ;;  %v761_v57 = vmul.f32 %v6214_v10, %v653_v62 }
  0xfd   : > { %8062 = vst [vmem:[#allocation44_spill] sm:$0xff] %v6283_v18  ;;  %8063 = vst [vmem:[#allocation45_spill] sm:$0xff] %v6287_v2  ;;  %v833_v56 = vmax.f32 %v801_v0, 0.0  ;;  %v6308_v54 = vpack.c.bf16 %v1202_v63, %v1201_v3  ;;  %v6315_v15 = vpack.c.bf16 %v1204_v59, %v1203_v19  ;;  %v1511_v0 = vsel %vm1297_vm2, %v6167_v53, 0  ;;  %v6335_v53 = vld [vmem:[%s7819_s2 + $0x4] sm:$0x3] }
  0xfe   : > { %8064 = vst [vmem:[#allocation46_spill] sm:$0xff] %v6292_v17  ;;  %v802_v9 = vadd.f32 %v6221_v13, %v763_v1  ;;  %v831_v20 = vmax.f32 %v799_v7, 0.0  ;;  %v800_v14 = vadd.f32 %v6221_v13, %v761_v57  ;;  %v6366_v18 = vpop.permute.xlu1 %1037 }
  0xff   : > { %v6312_v61 = vld [vmem:[#allocation2 + $0x37] sm:$0xff]  ;;  %872 = vst.msk [vmem:[#allocation2 + $0x68] sm:$0xff] %vm855_vm1, %v833_v56  ;;  %8065 = vst [vmem:[#allocation47_spill] sm:$0xff] %v6315_v15  ;;  %5096 = vmatmul.mubr.msk.bf16.vlgmr.msra.gmra.mrb[32].mxu0 %vm855_vm1, %v6308_v54  ;;  %v6382_v47 = vpop.permute.xlu0 %1032 }
 0x100   : > { %v834_v17 = vmax.f32 %v802_v9, 0.0  ;;  %v6321_v1 = vmul.f32 %v6312_v61, %v6245_v11  ;;  %v6323_v62 = vld [vmem:[#allocation2 + $0x4f] sm:$0xff]  ;;  %v6327_v63 = vmul.f32 %v6312_v61, %v6265_v8  ;;  %v5075_v56 = vpop.f32.mrb[12].mxu0  ;;  %870 = vst.msk [vmem:[#allocation2 + $0x58] sm:$0xff] %vm855_vm1, %v831_v20  ;;  %5099 = vmatprep.mubr.msk.bf16.mxu0 %vm855_vm1, %v6315_v15  ;;  %v832_v20 = vmax.f32 %v800_v14, 0.0  ;;  %5128 = vmatpush3.bf16.msra.mxu0 %v1511_v0  ;;  %v1205_v43 = vld [vmem:[#allocation2 + $0x38] sm:$0xff] }
 0x101   : > { %v6337_v59 = vld [vmem:[#allocation2 + $0x3f] sm:$0xff]  ;;  %v6341_v19 = vmul.f32 %v6323_v62, %v6253_v4  ;;  %v6343_v7 = vld [vmem:[#allocation2 + $0x47] sm:$0xff]  ;;  %v6349_v57 = vmul.f32 %v6323_v62, %v6303_v58  ;;  %v766_v9 = vmul.f32 %v5075_v56, %v6214_v10  ;;  %v666_v3 = vpop.f32.mrb[13].mxu0  ;;  %5693 = vmatprep.subr.msk.bf16.mxu0 %vm1297_vm2, %v6335_v53  ;;  %8075 = vst [vmem:[#allocation57_spill] sm:$0xff] %v6382_v47  ;;  %v1208_v48 = vld [vmem:[#allocation2 + $0x50] sm:$0xff] }
 0x102   : > { %8066 = vst [vmem:[#allocation48_spill] sm:$0xff] %v6321_v1  ;;  %8067 = vst [vmem:[#allocation49_spill] sm:$0xff] %v6327_v63  ;;  %v6356_v2 = vmul.f32 %v6337_v59, %v6239_v6  ;;  %v6360_v12 = vmul.f32 %v6337_v59, %v6253_v4  ;;  %v5076_v55 = vpop.f32.mrb[14].mxu0  ;;  %v6370_v56 = vmul.f32 %v6343_v7, %v6310_v60  ;;  %v1206_v49 = vld [vmem:[#allocation2 + $0x40] sm:$0xff]  ;;  %v1207_v0 = vld [vmem:[#allocation2 + $0x48] sm:$0xff] }
 0x103   : > { %8068 = vst [vmem:[#allocation50_spill] sm:$0xff] %v6341_v19  ;;  %8069 = vst [vmem:[#allocation51_spill] sm:$0xff] %v6343_v7  ;;  %v805_v51 = vadd.f32 %v6221_v13, %v766_v9  ;;  %v669_v52 = vpop.f32.mrb[15].mxu0  ;;  %v764_v9 = vmul.f32 %v6214_v10, %v666_v3  ;;  %v767_v1 = vmul.f32 %v5076_v55, %v6214_v10 }
 0x104   : > { %873 = vst.msk [vmem:[#allocation2 + $0x70] sm:$0xff] %vm855_vm1, %v834_v17  ;;  %8070 = vst [vmem:[#allocation52_spill] sm:$0xff] %v6349_v57  ;;  %v6364_v17 = vmul.f32 %v6343_v7, %v6265_v8  ;;  %v765_v14 = vmul.f32 %v6214_v10, %v669_v52 }
 0x105   : > { %8071 = vst [vmem:[#allocation53_spill] sm:$0xff] %v6356_v2  ;;  %8072 = vst [vmem:[#allocation54_spill] sm:$0xff] %v6360_v12  ;;  %v837_v46 = vmax.f32 %v805_v51, 0.0  ;;  %v803_v50 = vadd.f32 %v6221_v13, %v764_v9  ;;  %v6390_v2 = vpack.c.bf16 %v1206_v49, %v1205_v43  ;;  %v806_v51 = vadd.f32 %v6221_v13, %v767_v1 }
 0x106   : > { %8073 = vst [vmem:[#allocation55_spill] sm:$0xff] %v6364_v17  ;;  %8074 = vst [vmem:[#allocation56_spill] sm:$0xff] %v6370_v56  ;;  %v804_v9 = vadd.f32 %v6221_v13, %v765_v14  ;;  %v6401_v56 = vpop.permute.xlu1 %1047  ;;  %v6424_v14 = vpop.permute.xlu0 %1042  ;;  %v1211_v15 = vld [vmem:[#allocation2 + $0x68] sm:$0xff] }
 0x107   : > { %871 = vst.msk [vmem:[#allocation2 + $0x60] sm:$0xff] %vm855_vm1, %v832_v20  ;;  %8076 = vst [vmem:[#allocation58_spill] sm:$0xff] %v6390_v2  ;;  %v6393_v20 = vpack.c.bf16 %v1208_v48, %v1207_v0  ;;  %v6395_v3 = vld [vmem:[#allocation2 + $0x57] sm:$0xff]  ;;  %v835_v45 = vmax.f32 %v803_v50, 0.0  ;;  %5100 = vmatmul.mubr.msk.bf16.gmra.mrb[36].mxu0 %vm855_vm1, %v6390_v2  ;;  %v838_v55 = vmax.f32 %v806_v51, 0.0 }
 0x108   : > { %876 = vst.msk [vmem:[#allocation2 + $0x88] sm:$0xff] %vm855_vm1, %v837_v46  ;;  %8078 = vst [vmem:[#allocation60_spill] sm:$0xff] %v6395_v3  ;;  %v5079_v43 = vpop.f32.mrb[16].mxu0  ;;  %v6407_v46 = vmul.f32 %v6395_v3, %v6310_v60  ;;  %v6415_v49 = vmul.f32 %v6395_v3, %v6382_v47  ;;  %v836_v1 = vmax.f32 %v804_v9, 0.0 }
 0x109   : > { %8077 = vst [vmem:[#allocation59_spill] sm:$0xff] %v6393_v20  ;;  %8080 = vst [vmem:[#allocation62_spill] sm:$0xff] %v6401_v56  ;;  %5103 = vmatprep.mubr.msk.bf16.mxu0 %vm855_vm1, %v6393_v20  ;;  %v682_v52 = vpop.f32.mrb[17].mxu0  ;;  %v770_v63 = vmul.f32 %v5079_v43, %v6214_v10 }
 0x10a   : > { %8081 = vst [vmem:[#allocation63_spill] sm:$0xff] %v6407_v46  ;;  %8083 = vst [vmem:[#allocation65_spill] sm:$0xff] %v6415_v49  ;;  %v5080_v0 = vpop.f32.mrb[18].mxu0  ;;  %v768_v12 = vmul.f32 %v6214_v10, %v682_v52 }
 0x10b   : > { %v6397_v17 = vld [vmem:[#allocation2 + $0x6f] sm:$0xff]  ;;  %874 = vst.msk [vmem:[#allocation2 + $0x78] sm:$0xff] %vm855_vm1, %v835_v45  ;;  %8085 = vst [vmem:[#allocation67_spill] sm:$0xff] %v6424_v14  ;;  %v685_v44 = vpop.f32.mrb[19].mxu0  ;;  %v771_v9 = vmul.f32 %v5080_v0, %v6214_v10  ;;  %v809_v52 = vadd.f32 %v6221_v13, %v770_v63 }
 0x10c   : > { %8079 = vst [vmem:[#allocation61_spill] sm:$0xff] %v6397_v17  ;;  %v6411_v48 = vmul.f32 %v6397_v17, %v6366_v18  ;;  %v6419_v50 = vmul.f32 %v6397_v17, %v6401_v56  ;;  %877 = vst.msk [vmem:[#allocation2 + $0x90] sm:$0xff] %vm855_vm1, %v838_v55  ;;  %v807_v3 = vadd.f32 %v6221_v13, %v768_v12  ;;  %v1212_v0 = vld [vmem:[#allocation2 + $0x70] sm:$0xff]  ;;  %v1209_v17 = vld [vmem:[#allocation2 + $0x58] sm:$0xff]  ;;  %v6463_v12 = vpop.permute.xlu0 %1052 }
 0x10d   : > { %875 = vst.msk [vmem:[#allocation2 + $0x80] sm:$0xff] %vm855_vm1, %v836_v1  ;;  %v6459_v1 = vpop.permute.xlu1 %1057  ;;  %8093 = vst [vmem:[#allocation75_spill] sm:$0xff] %v6463_v12  ;;  %v810_v7 = vadd.f32 %v6221_v13, %v771_v9  ;;  %v769_v36 = vmul.f32 %v6214_v10, %v685_v44 }
 0x10e   : > { %8082 = vst [vmem:[#allocation64_spill] sm:$0xff] %v6411_v48  ;;  %8084 = vst [vmem:[#allocation66_spill] sm:$0xff] %v6419_v50  ;;  %v6426_v57 = vld [vmem:[#allocation2 + $0x5f] sm:$0xff]  ;;  %v6428_v19 = vld [vmem:[#allocation2 + $0x67] sm:$0xff]  ;;  %v839_v63 = vmax.f32 %v807_v3, 0.0 }
 0x10f   : > { %8086 = vst [vmem:[#allocation68_spill] sm:$0xff] %v6426_v57  ;;  %8087 = vst [vmem:[#allocation69_spill] sm:$0xff] %v6428_v19  ;;  %v6434_v20 = vmul.f32 %v6426_v57, %v6303_v58  ;;  %v6438_v45 = vmul.f32 %v6426_v57, %v6366_v18  ;;  %v6442_v51 = vmul.f32 %v6428_v19, %v6382_v47  ;;  %v1210_v2 = vld [vmem:[#allocation2 + $0x60] sm:$0xff]  ;;  %v841_v57 = vmax.f32 %v809_v52, 0.0 }
 0x110   : > { %v6449_v43 = vmul.f32 %v6428_v19, %v6424_v14  ;;  %8092 = vst [vmem:[#allocation74_spill] sm:$0xff] %v6459_v1  ;;  %v6467_v46 = vpack.c.bf16 %v1210_v2, %v1209_v17  ;;  %878 = vst.msk [vmem:[#allocation2 + $0x98] sm:$0xff] %vm855_vm1, %v839_v63  ;;  %v6473_v19 = vpack.c.bf16 %v1212_v0, %v1211_v15  ;;  %v842_v2 = vmax.f32 %v810_v7, 0.0 }
 0x111   : > { %8088 = vst [vmem:[#allocation70_spill] sm:$0xff] %v6434_v20  ;;  %8089 = vst [vmem:[#allocation71_spill] sm:$0xff] %v6438_v45  ;;  %v5083_v20 = vpop.f32.mrb[20].mxu0  ;;  %v808_v17 = vadd.f32 %v6221_v13, %v769_v36 }
 0x112   : > { %8090 = vst [vmem:[#allocation72_spill] sm:$0xff] %v6442_v51  ;;  %8091 = vst [vmem:[#allocation73_spill] sm:$0xff] %v6449_v43  ;;  %v6469_v55 = vld [vmem:[#allocation2 + $0x77] sm:$0xff]  ;;  %v774_v3 = vmul.f32 %v5083_v20, %v6214_v10  ;;  %v698_v52 = vpop.f32.mrb[21].mxu0  ;;  %5104 = vmatmul.mubr.msk.bf16.gmra.mrb[40].mxu0 %vm855_vm1, %v6467_v46 }
 0x113   : > { %8094 = vst [vmem:[#allocation76_spill] sm:$0xff] %v6467_v46  ;;  %8095 = vst [vmem:[#allocation77_spill] sm:$0xff] %v6469_v55  ;;  %v6478_v9 = vmul.f32 %v6469_v55, %v6424_v14  ;;  %v6482_v44 = vmul.f32 %v6469_v55, %v6463_v12  ;;  %v5084_v15 = vpop.f32.mrb[22].mxu0  ;;  %v6491_v20 = vld [vmem:[#allocation2 + $0x8f] sm:$0xff]  ;;  %5107 = vmatprep.mubr.msk.bf16.mxu0 %vm855_vm1, %v6473_v19  ;;  %v772_v7 = vmul.f32 %v6214_v10, %v698_v52  ;;  %v6517_v52 = vpop.permute.xlu0 %1062 }
 0x114   : > { %880 = vst.msk [vmem:[#allocation2 + $0xa8] sm:$0xff] %vm855_vm1, %v841_v57  ;;  %8096 = vst [vmem:[#allocation78_spill] sm:$0xff] %v6473_v19  ;;  %v6487_v57 = vpop.permute.xlu1 %1067  ;;  %v6489_v0 = vld [vmem:[#allocation2 + $0x7f] sm:$0xff]  ;;  %v6493_v63 = vld [vmem:[#allocation2 + $0x87] sm:$0xff]  ;;  %v813_v43 = vadd.f32 %v6221_v13, %v774_v3  ;;  %v775_v36 = vmul.f32 %v5084_v15, %v6214_v10  ;;  %v701_v50 = vpop.f32.mrb[23].mxu0  ;;  %v6510_v49 = vmul.f32 %v6491_v20, %v6459_v1  ;;  %v840_v15 = vmax.f32 %v808_v17, 0.0 }
 0x115   : > { %8097 = vst [vmem:[#allocation79_spill] sm:$0xff] %v6478_v9  ;;  %8098 = vst [vmem:[#allocation80_spill] sm:$0xff] %v6482_v44  ;;  %v6502_v51 = vmul.f32 %v6489_v0, %v6401_v56  ;;  %v6506_v48 = vmul.f32 %v6489_v0, %v6459_v1  ;;  %v6514_v3 = vmul.f32 %v6493_v63, %v6463_v12  ;;  %v1214_v46 = vld [vmem:[#allocation2 + $0x80] sm:$0xff]  ;;  %v1213_v56 = vld [vmem:[#allocation2 + $0x78] sm:$0xff] }
 0x116   : > { %8099 = vst [vmem:[#allocation81_spill] sm:$0xff] %v6487_v57  ;;  %8100 = vst [vmem:[#allocation82_spill] sm:$0xff] %v6489_v0  ;;  %v6521_v45 = vmul.f32 %v6493_v63, %v6517_v52  ;;  %v6525_v19 = vmul.f32 %v6491_v20, %v6487_v57  ;;  %v1216_v0 = vld [vmem:[#allocation2 + $0x90] sm:$0xff]  ;;  %v845_v17 = vmax.f32 %v813_v43, 0.0  ;;  %v814_v12 = vadd.f32 %v6221_v13, %v775_v36  ;;  %v1215_v1 = vld [vmem:[#allocation2 + $0x88] sm:$0xff] }
 0x117   : > { %8101 = vst [vmem:[#allocation83_spill] sm:$0xff] %v6491_v20  ;;  %8102 = vst [vmem:[#allocation84_spill] sm:$0xff] %v6493_v63  ;;  %v811_v20 = vadd.f32 %v6221_v13, %v772_v7  ;;  %v6538_v47 = vld [vmem:[#allocation2 + $0x97] sm:$0xff]  ;;  %v773_v55 = vmul.f32 %v6214_v10, %v701_v50  ;;  %v6542_v14 = vpack.c.bf16 %v1214_v46, %v1213_v56 }
 0x118   : > { %8103 = vst [vmem:[#allocation85_spill] sm:$0xff] %v6502_v51  ;;  %8104 = vst [vmem:[#allocation86_spill] sm:$0xff] %v6506_v48  ;;  %v6544_v43 = vpack.c.bf16 %v1216_v0, %v1215_v1  ;;  %v6548_v63 = vmul.f32 %v6538_v47, %v6517_v52 }
 0x119   : > { %8105 = vst [vmem:[#allocation87_spill] sm:$0xff] %v6510_v49  ;;  %8106 = vst [vmem:[#allocation88_spill] sm:$0xff] %v6514_v3  ;;  %v843_v7 = vmax.f32 %v811_v20, 0.0 }
 0x11a   : > { %881 = vst.msk [vmem:[#allocation2 + $0xb0] sm:$0xff] %vm855_vm1, %v842_v2  ;;  %8107 = vst [vmem:[#allocation89_spill] sm:$0xff] %v6517_v52  ;;  %v846_v2 = vmax.f32 %v814_v12, 0.0  ;;  %5108 = vmatmul.mubr.msk.bf16.gmra.mrb[44].mxu0 %vm855_vm1, %v6542_v14  ;;  %v958_v52 = vld [vmem:[#allocation2 + $0x7] sm:$0xff] }
 0x11b   : > { %8108 = vst [vmem:[#allocation90_spill] sm:$0xff] %v6521_v45  ;;  %8109 = vst [vmem:[#allocation91_spill] sm:$0xff] %v6525_v19  ;;  %v812_v19 = vadd.f32 %v6221_v13, %v773_v55  ;;  %5111 = vmatprep.mubr.msk.bf16.mxu0 %vm855_vm1, %v6544_v43 }
 0x11c   : > { %879 = vst.msk [vmem:[#allocation2 + $0xa0] sm:$0xff] %vm855_vm1, %v840_v15  ;;  %8110 = vst [vmem:[#allocation92_spill] sm:$0xff] %v6538_v47  ;;  %v5087_v15 = vpop.f32.mrb[24].mxu0 }
 0x11d   : > { %884 = vst.msk [vmem:[#allocation2 + $0xc8] sm:$0xff] %vm855_vm1, %v845_v17  ;;  %8111 = vst [vmem:[#allocation93_spill] sm:$0xff] %v6542_v14  ;;  %v778_v36 = vmul.f32 %v5087_v15, %v6214_v10  ;;  %v714_v45 = vpop.f32.mrb[25].mxu0  ;;  %v844_v55 = vmax.f32 %v812_v19, 0.0  ;;  %v2208_v19 = vmul.f32 %v6538_v47, %v6095_v25 }
 0x11e   : > { %8112 = vst [vmem:[#allocation94_spill] sm:$0xff] %v6544_v43  ;;  %8113 = vst [vmem:[#allocation95_spill] sm:$0xff] %v6548_v63  ;;  %v776_v56 = vmul.f32 %v6214_v10, %v714_v45  ;;  %v5088_v46 = vpop.f32.mrb[26].mxu0 }
 0x11f   : > { %882 = vst.msk [vmem:[#allocation2 + $0xb8] sm:$0xff] %vm855_vm1, %v843_v7  ;;  %885 = vst.msk [vmem:[#allocation2 + $0xd0] sm:$0xff] %vm855_vm1, %v846_v2  ;;  %v817_v50 = vadd.f32 %v6221_v13, %v778_v36  ;;  %v779_v1 = vmul.f32 %v5088_v46, %v6214_v10  ;;  %v717_v12 = vpop.f32.mrb[27].mxu0  ;;  %v1217_v7 = vld [vmem:[#allocation2 + $0x98] sm:$0xff] }
 0x120   : > { %v815_v20 = vadd.f32 %v6221_v13, %v776_v56  ;;  %v777_v45 = vmul.f32 %v6214_v10, %v717_v12  ;;  %883 = vst.msk [vmem:[#allocation2 + $0xc0] sm:$0xff] %vm855_vm1, %v844_v55  ;;  %v5091_v44 = vpop.f32.mrb[28].mxu0 }
 0x121   : > { %v6561_v0 = vld [vmem:[#allocation2 + $0xaf] sm:$0xff]  ;;  %v849_v17 = vmax.f32 %v817_v50, 0.0  ;;  %v818_v15 = vadd.f32 %v6221_v13, %v779_v1 }
 0x122   : > { %v1220_v2 = vld [vmem:[#allocation2 + $0xb0] sm:$0xff]  ;;  %v847_v36 = vmax.f32 %v815_v20, 0.0  ;;  %v816_v46 = vadd.f32 %v6221_v13, %v777_v45  ;;  %v2211_v56 = vmul.f32 %v6561_v0, %v6097_v26  ;;  %v1219_v45 = vld [vmem:[#allocation2 + $0xa8] sm:$0xff] }
 0x123   : > { %v6566_v3 = vld [vmem:[#allocation2 + $0x9f] sm:$0xff]  ;;  %v6572_v9 = vld [vmem:[#allocation2 + $0xa7] sm:$0xff]  ;;  %888 = vst.msk [vmem:[#allocation2 + $0xe8] sm:$0xff] %vm855_vm1, %v849_v17  ;;  %v850_v1 = vmax.f32 %v818_v15, 0.0  ;;  %v6591_v17 = vpack.c.bf16 %v1220_v2, %v1219_v45  ;;  %v782_v15 = vmul.f32 %v5091_v44, %v6214_v10 }
 0x124   : > { %8114 = vst [vmem:[#allocation96_spill] sm:$0xff] %v6566_v3  ;;  %v1218_v49 = vld [vmem:[#allocation2 + $0xa0] sm:$0xff]  ;;  %v6578_v50 = vmul.f32 %v6566_v3, %v6487_v57  ;;  %v2209_v55 = vmul.f32 %v6566_v3, %v6099_v27  ;;  %886 = vst.msk [vmem:[#allocation2 + $0xd8] sm:$0xff] %vm855_vm1, %v847_v36  ;;  %v848_v20 = vmax.f32 %v816_v46, 0.0  ;;  %v2210_v51 = vmul.f32 %v6572_v9, %v6093_v24  ;;  %v959_v57 = vld [vmem:[#allocation2 + $0xf] sm:$0xff] }
 0x125   : > { %v6581_v12 = vpack.c.bf16 %v1218_v49, %v1217_v7  ;;  %889 = vst.msk [vmem:[#allocation2 + $0xf0] sm:$0xff] %vm855_vm1, %v850_v1  ;;  %8117 = vst [vmem:[#allocation99_spill] sm:$0xff] %v6591_v17  ;;  %v730_v7 = vpop.f32.mrb[29].mxu0  ;;  %v2585_v46 = vsel %vm1297_vm2, %v6134_v39, 0  ;;  %v821_v44 = vadd.f32 %v6221_v13, %v782_v15  ;;  %v6612_v39 = vld [vmem:[%s7819_s2 + $0xa] sm:$0x3] }
 0x126   : > { %8115 = vst [vmem:[#allocation97_spill] sm:$0xff] %v6578_v50  ;;  %v2232_v49 = vpack.c.bf16 %v2209_v55, %v2208_v19  ;;  %887 = vst.msk [vmem:[#allocation2 + $0xe0] sm:$0xff] %vm855_vm1, %v848_v20  ;;  %v2233_v36 = vpack.c.bf16 %v2211_v56, %v2210_v51  ;;  %v780_v47 = vmul.f32 %v6214_v10, %v730_v7  ;;  %v5092_v48 = vpop.f32.mrb[30].mxu0  ;;  %v6600_v63 = vld [vmem:[#allocation2 + $0xb7] sm:$0xff]  ;;  %v6607_v1 = vld [vmem:[#allocation2 + $0xcf] sm:$0xff] }
 0x127   : > { %8116 = vst [vmem:[#allocation98_spill] sm:$0xff] %v6581_v12  ;;  %5112 = vmatmul.mubr.msk.bf16.gmra.mrb[48].mxu0 %vm855_vm1, %v6581_v12  ;;  %v783_v2 = vmul.f32 %v5092_v48, %v6214_v10  ;;  %v733_v19 = vpop.f32.mrb[31].mxu0  ;;  %v1221_v55 = vld [vmem:[#allocation2 + $0xb8] sm:$0xff]  ;;  %v853_v20 = vmax.f32 %v821_v44, 0.0  ;;  %v1222_v48 = vld [vmem:[#allocation2 + $0xc0] sm:$0xff]  ;;  %v2212_v15 = vmul.f32 %v6600_v63, %v6103_v29 }
 0x128   : > { %5115 = vmatprep.mubr.msk.bf16.mxu0 %vm855_vm1, %v6591_v17  ;;  %5213 = vmatprep.mubr.msk.bf16.mxu1 %vm855_vm1, %v2232_v49  ;;  %v819_v51 = vadd.f32 %v6221_v13, %v780_v47  ;;  %v781_v56 = vmul.f32 %v6214_v10, %v733_v19  ;;  %v6618_v49 = vld [vmem:[#allocation2 + $0xbf] sm:$0xff]  ;;  %v6622_v7 = vld [vmem:[#allocation2 + $0xc7] sm:$0xff]  ;;  %v6627_v10 = vpack.c.bf16 %v1222_v48, %v1221_v55 }
 0x129   : > { %5214 = vmatmul.mubr.msk.bf16.vlgmr.msra.gmra.mrb[0].mxu1 %vm855_vm1, %v2233_v36  ;;  %v822_v45 = vadd.f32 %v6221_v13, %v783_v2  ;;  %v2215_v36 = vmul.f32 %v6607_v1, %v6105_v30  ;;  %v2213_v44 = vmul.f32 %v6618_v49, %v6101_v28  ;;  %892 = vst.msk [vmem:[#allocation2 + $0x108] sm:$0xff] %vm855_vm1, %v853_v20  ;;  %v1223_v55 = vld [vmem:[#allocation2 + $0xc8] sm:$0xff] }
 0x12a   : > { %5230 = vmatpush3.bf16.msra.mxu1 %v2585_v46  ;;  %v851_v50 = vmax.f32 %v819_v51, 0.0  ;;  %v820_v47 = vadd.f32 %v6221_v13, %v781_v56  ;;  %8118 = vst [vmem:[#allocation100_spill] sm:$0xff] %v6627_v10  ;;  %v1224_v46 = vld [vmem:[#allocation2 + $0xd0] sm:$0xff]  ;;  %v2214_v19 = vmul.f32 %v6622_v7, %v6107_v31  ;;  %v6640_v13 = vmul.f32 %v6600_v63, %v6107_v31 }
 0x12b   : > { %5697 = vmatprep.subr.msk.bf16.mxu1 %vm1297_vm2, %v6612_v39  ;;  %v854_v2 = vmax.f32 %v822_v45, 0.0  ;;  %v6636_v17 = vld [vmem:[#allocation2 + $0xd7] sm:$0xff]  ;;  %v6644_v51 = vmul.f32 %v6618_v49, %v6105_v30  ;;  %v2234_v48 = vpack.c.bf16 %v2213_v44, %v2212_v15  ;;  %v6648_v20 = vpack.c.bf16 %v1224_v46, %v1223_v55 }
 0x12c   : > { %8119 = vst [vmem:[#allocation101_spill] sm:$0xff] %v6640_v13  ;;  %890 = vst.msk [vmem:[#allocation2 + $0xf8] sm:$0xff] %vm855_vm1, %v851_v50  ;;  %v852_v56 = vmax.f32 %v820_v47, 0.0  ;;  %v2235_v45 = vpack.c.bf16 %v2215_v36, %v2214_v19  ;;  %v6654_v43 = vld [vmem:[#allocation2 + $0xef] sm:$0xff]  ;;  %v2216_v50 = vmul.f32 %v6636_v17, %v6111_v33  ;;  %v6670_v47 = vmul.f32 %v6636_v17, %v6115_v35 }
 0x12d   : > { %8120 = vst [vmem:[#allocation102_spill] sm:$0xff] %v6644_v51  ;;  %893 = vst.msk [vmem:[#allocation2 + $0x110] sm:$0xff] %vm855_vm1, %v854_v2  ;;  %v6650_v12 = vld [vmem:[#allocation2 + $0xdf] sm:$0xff]  ;;  %v6652_v3 = vld [vmem:[#allocation2 + $0xe7] sm:$0xff]  ;;  %5217 = vmatprep.mubr.msk.bf16.mxu1 %vm855_vm1, %v2234_v48  ;;  %v2219_v19 = vmul.f32 %v6654_v43, %v6113_v34 }
 0x12e   : > { %8121 = vst [vmem:[#allocation103_spill] sm:$0xff] %v6648_v20  ;;  %891 = vst.msk [vmem:[#allocation2 + $0x100] sm:$0xff] %vm855_vm1, %v852_v56  ;;  %v2217_v15 = vmul.f32 %v6650_v12, %v6109_v32  ;;  %v1226_v36 = vld [vmem:[#allocation2 + $0xe0] sm:$0xff]  ;;  %v6674_v46 = vmul.f32 %v6650_v12, %v6113_v34  ;;  %v2218_v2 = vmul.f32 %v6652_v3, %v6115_v35  ;;  %v1225_v56 = vld [vmem:[#allocation2 + $0xd8] sm:$0xff] }
 0x12f   : > { %5116 = vmatmul.mubr.msk.bf16.gmra.mrb[52].mxu0 %vm855_vm1, %v6627_v10  ;;  %8122 = vst [vmem:[#allocation104_spill] sm:$0xff] %v6670_v47  ;;  %v6683_v48 = vpack.c.bf16 %v1226_v36, %v1225_v56  ;;  %v1228_v14 = vld [vmem:[#allocation2 + $0xf0] sm:$0xff]  ;;  %v1227_v13 = vld [vmem:[#allocation2 + $0xe8] sm:$0xff] }
 0x130   : > { %5119 = vmatprep.mubr.msk.bf16.mxu0 %vm855_vm1, %v6648_v20  ;;  %8123 = vst [vmem:[#allocation105_spill] sm:$0xff] %v6674_v46  ;;  %v2236_v44 = vpack.c.bf16 %v2217_v15, %v2216_v50  ;;  %v6688_v50 = vpack.c.bf16 %v1228_v14, %v1227_v13  ;;  %v1151_v46 = vmul.f32 %v6229_v22, %v959_v57  ;;  %v8179_v47 = vld [vmem:[#allocation14_spill] sm:$0xff] }
 0x131   : > { %5218 = vmatmul.mubr.msk.bf16.gmra.mrb[4].mxu1 %vm855_vm1, %v2235_v45  ;;  %8124 = vst [vmem:[#allocation106_spill] sm:$0xff] %v6683_v48  ;;  %v2237_v45 = vpack.c.bf16 %v2219_v19, %v2218_v2  ;;  %v1152_v22 = vmul.f32 %v6256_v21, %v6245_v11  ;;  %v1157_v57 = vmul.f32 %v6337_v59, %v6303_v58  ;;  %v2911_v11 = vsel %vm1297_vm2, %v6612_v39, 0  ;;  %v8127_v21 = vld [vmem:[#allocation74_spill] sm:$0xff]  ;;  %v8128_v59 = vld [vmem:[#allocation61_spill] sm:$0xff]  ;;  %v8132_v39 = vld [vmem:[#allocation75_spill] sm:$0xff] }
 0x132   : > { %5221 = vmatprep.mubr.msk.bf16.mxu1 %vm855_vm1, %v2236_v44 }
 0x133   : > { %v6686_v20 = vld [vmem:[#allocation2 + $0xf7] sm:$0xff] }
 0x134   : > { %v6694_v10 = vld [vmem:[#allocation2 + $0x10f] sm:$0xff]  ;;  %v2220_v36 = vmul.f32 %v6686_v20, %v6136_v40  ;;  %v6704_v14 = vmul.f32 %v6686_v20, %v6142_v42 }
 0x135   : > { %v6690_v15 = vld [vmem:[#allocation2 + $0xff] sm:$0xff]  ;;  %v6692_v51 = vld [vmem:[#allocation2 + $0x107] sm:$0xff]  ;;  %v2223_v55 = vmul.f32 %v6694_v10, %v6140_v41 }
 0x136   : > { %v2221_v44 = vmul.f32 %v6690_v15, %v6128_v38  ;;  %v6708_v13 = vmul.f32 %v6690_v15, %v6140_v41  ;;  %v1230_v2 = vld [vmem:[#allocation2 + $0x100] sm:$0xff]  ;;  %v2222_v56 = vmul.f32 %v6692_v51, %v6142_v42  ;;  %v1229_v38 = vld [vmem:[#allocation2 + $0xf8] sm:$0xff] }
 0x137   : > { %5120 = vmatmul.mubr.msk.bf16.gmra.mrb[56].mxu0 %vm855_vm1, %v6683_v48  ;;  %v1150_v48 = vmul.f32 %v6233_v37, %v958_v52  ;;  %v6721_v40 = vpack.c.bf16 %v1230_v2, %v1229_v38  ;;  %v1155_v37 = vmul.f32 %v6258_v5, %v6253_v4  ;;  %v1154_v38 = vmul.f32 %v6273_v16, %v6265_v8  ;;  %v8125_v8 = vld [vmem:[#allocation57_spill] sm:$0xff]  ;;  %v8126_v16 = vld [vmem:[#allocation51_spill] sm:$0xff] }
 0x138   : > { %5123 = vmatprep.mubr.msk.bf16.mxu0 %vm855_vm1, %v6688_v50  ;;  %v2238_v19 = vpack.c.bf16 %v2221_v44, %v2220_v36  ;;  %v1153_v44 = vmul.f32 %v6267_v23, %v6239_v6  ;;  %v1965_v6 = vsel %vm1297_vm2, %v6335_v53, 0  ;;  %v1156_v4 = vmul.f32 %v6312_v61, %v6310_v60  ;;  %v6759_v60 = vld [vmem:[%s7819_s2 + $0xc] sm:$0x3]  ;;  %v8134_v2 = vld [vmem:[#allocation47_spill] sm:$0xff]  ;;  %v6922_v42 = vld [vmem:[#allocation2 + $0x99] sm:$0xff] }
 0x139   : > { %5222 = vmatmul.mubr.msk.bf16.gmra.mrb[8].mxu1 %vm855_vm1, %v2237_v45  ;;  %v2239_v45 = vpack.c.bf16 %v2223_v55, %v2222_v56  ;;  %v1182_v36 = vpack.c.bf16 %v1151_v46, %v1150_v48  ;;  %v1184_v23 = vpack.c.bf16 %v1155_v37, %v1154_v38  ;;  %v1159_v5 = vmul.f32 %v6323_v62, %v6366_v18  ;;  %v8130_v18 = vld [vmem:[#allocation62_spill] sm:$0xff]  ;;  %v8131_v62 = vld [vmem:[#allocation68_spill] sm:$0xff]  ;;  %v8133_v55 = vld [vmem:[#allocation69_spill] sm:$0xff] }
 0x13a   : > { %5225 = vmatprep.mubr.msk.bf16.mxu1 %vm855_vm1, %v2238_v19  ;;  %v1183_v52 = vpack.c.bf16 %v1153_v44, %v1152_v22  ;;  %v1185_v58 = vpack.c.bf16 %v1157_v57, %v1156_v4  ;;  %v6753_v46 = vmul.f32 %v8128_v59, %v8127_v21  ;;  %v6763_v61 = vmul.f32 %v6572_v9, %v6095_v25  ;;  %v8135_v19 = vld [vmem:[#allocation3_spill] sm:$0xff] }
 0x13b   : > { %v6767_v53 = vmul.f32 %v8131_v62, %v8130_v18  ;;  %v6771_v48 = vmul.f32 %v8133_v55, %v8132_v39  ;;  %v6779_v56 = vmul.f32 %v6561_v0, %v6099_v27  ;;  %v6789_v44 = vmul.f32 %v6618_v49, %v6097_v26  ;;  %v6843_v59 = vld [vmem:[#allocation2 + $0x49] sm:$0xff]  ;;  %v8153_v62 = vld [vmem:[#allocation5_spill] sm:$0xff]  ;;  %v6890_v18 = vld [vmem:[#allocation2 + $0x71] sm:$0xff]  ;;  %8182 = vst [vmem:[#allocation14_spill] sm:$0xff] %v6922_v42 }
 0x13c   : > { %8129 = vst [vmem:[#allocation57_spill] sm:$0xff] %v6763_v61  ;;  %v6793_v37 = vmul.f32 %v6622_v7, %v6103_v29  ;;  %v6801_v22 = vmul.f32 %v6607_v1, %v6101_v28  ;;  %v6809_v49 = vmul.f32 %v6650_v12, %v6105_v30  ;;  %v6831_v12 = vmul.f32 %v6690_v15, %v6113_v34  ;;  %v6854_v15 = vld [vmem:[#allocation2 + $0x41] sm:$0xff]  ;;  %v6892_v30 = vld [vmem:[#allocation2 + $0x79] sm:$0xff]  ;;  %v8177_v57 = vld [vmem:[#allocation11_spill] sm:$0xff] }
 0x13d   : > { %8136 = vst [vmem:[#allocation51_spill] sm:$0xff] %v6779_v56  ;;  %8139 = vst [vmem:[#allocation61_spill] sm:$0xff] %v6789_v44  ;;  %v6849_v34 = vmul.f32 %v6694_v10, %v8153_v62  ;;  %v1188_v55 = vpack.c.bf16 %v6753_v46, %v6771_v48  ;;  %v8163_v46 = vld [vmem:[#allocation59_spill] sm:$0xff]  ;;  %v8164_v48 = vld [vmem:[#allocation84_spill] sm:$0xff]  ;;  %v6914_v38 = vmul.f32 %v6854_v15, %v8177_v57 }
 0x13e   : > { %8140 = vst [vmem:[#allocation62_spill] sm:$0xff] %v6793_v37  ;;  %8141 = vst [vmem:[#allocation68_spill] sm:$0xff] %v6801_v22  ;;  %v6918_v41 = vmul.f32 %v8179_v47, %v6843_v59  ;;  %v6942_v22 = vld [vmem:[#allocation2 + $0xa9] sm:$0xff]  ;;  %v6946_v44 = vld [vmem:[#allocation2 + $0xb9] sm:$0xff] }
 0x13f   : > { %5124 = vmatmul.mubr.msk.bf16.gmra.mrb[60].mxu0 %vm855_vm1, %v6721_v40  ;;  %8143 = vst [vmem:[#allocation69_spill] sm:$0xff] %v6809_v49  ;;  %8147 = vst [vmem:[#allocation107_spill] sm:$0xff] %v6831_v12  ;;  %v8186_v12 = vld [vmem:[#allocation16_spill] sm:$0xff]  ;;  %v8190_v49 = vld [vmem:[#allocation18_spill] sm:$0xff] }
 0x140   : > { %5129 = vmatprep.mubr.msk.bf16.mxu0 %vm855_vm1, %v1182_v36  ;;  %v6785_v36 = vmul.f32 %v6600_v63, %v6093_v24  ;;  %v6805_v63 = vmul.f32 %v6636_v17, %v6107_v31  ;;  %v8148_v17 = vld [vmem:[#allocation6_spill] sm:$0xff]  ;;  %8192 = vst [vmem:[#allocation112_spill] sm:$0xff] %v6942_v22  ;;  %8194 = vst [vmem:[#allocation114_spill] sm:$0xff] %v6946_v44 }
 0x141   : > { %5226 = vmatmul.mubr.msk.bf16.gmra.mrb[12].mxu1 %vm855_vm1, %v2239_v45  ;;  %v8137_v45 = vld [vmem:[#allocation58_spill] sm:$0xff]  ;;  %v6835_v4 = vmul.f32 %v6692_v51, %v8148_v17  ;;  %v6852_v51 = vld [vmem:[#allocation2 + $0x39] sm:$0xff] }
 0x142   : > { %5231 = vmatprep.mubr.msk.bf16.mxu1 %vm855_vm1, %v6308_v54  ;;  %v1158_v54 = vmul.f32 %v8126_v16, %v8125_v8  ;;  %8138 = vst [vmem:[#allocation74_spill] sm:$0xff] %v6785_v36  ;;  %8142 = vst [vmem:[#allocation75_spill] sm:$0xff] %v6805_v63  ;;  %v8150_v16 = vld [vmem:[#allocation67_spill] sm:$0xff] }
 0x143   : > { %8149 = vst [vmem:[#allocation6_spill] sm:$0xff] %v6835_v4  ;;  %8152 = vst [vmem:[#allocation67_spill] sm:$0xff] %v6843_v59  ;;  %v6924_v4 = vld [vmem:[#allocation2 + $0xa1] sm:$0xff]  ;;  %v6944_v36 = vld [vmem:[#allocation2 + $0xb1] sm:$0xff] }
 0x144   : > { %v1186_v8 = vpack.c.bf16 %v1159_v5, %v1158_v54  ;;  %v6856_v5 = vld [vmem:[#allocation2 + $0x51] sm:$0xff]  ;;  %v8161_v54 = vld [vmem:[#allocation81_spill] sm:$0xff]  ;;  %8183 = vst [vmem:[#allocation109_spill] sm:$0xff] %v6924_v4  ;;  %8193 = vst [vmem:[#allocation113_spill] sm:$0xff] %v6944_v36 }
 0x145   : > { %8155 = vst [vmem:[#allocation5_spill] sm:$0xff] %v6856_v5  ;;  %8166 = vst [vmem:[#allocation81_spill] sm:$0xff] %v6890_v18  ;;  %v8197_v59 = vld [vmem:[#allocation20_spill] sm:$0xff] }
 0x147   : > { %5130 = vmatmul.mubr.msk.bf16.vlgmr.msra.gmra.mrb[32].mxu0 %vm855_vm1, %v1183_v52  ;;  %v6815_v52 = vmul.f32 %v6652_v3, %v6111_v33 }
 0x148   : > { %5133 = vmatprep.mubr.msk.bf16.mxu0 %vm855_vm1, %v1184_v23  ;;  %5162 = vmatpush3.bf16.msra.mxu0 %v1965_v6  ;;  %v6819_v6 = vmul.f32 %v6654_v43, %v6109_v32  ;;  %v6823_v23 = vmul.f32 %v6686_v20, %v6115_v35  ;;  %v6839_v35 = vld [vmem:[#allocation2 + $0x29] sm:$0xff]  ;;  %v6841_v20 = vld [vmem:[#allocation2 + $0x31] sm:$0xff] }
 0x149   : > { %5232 = vmatmul.mubr.msk.bf16.vlgmr.msra.gmra.mrb[16].mxu1 %vm855_vm1, %v8134_v2  ;;  %5694 = vmatprep.subr.msk.bf16.mxu0 %vm1297_vm2, %v8135_v19  ;;  %8144 = vst [vmem:[#allocation47_spill] sm:$0xff] %v6815_v52  ;;  %v8156_v2 = vld [vmem:[#allocation89_spill] sm:$0xff] }
 0x14a   : > { %5264 = vmatpush3.bf16.msra.mxu1 %v2911_v11  ;;  %5235 = vmatprep.mubr.msk.bf16.mxu1 %vm855_vm1, %v8137_v45  ;;  %8145 = vst [vmem:[#allocation3_spill] sm:$0xff] %v6819_v6  ;;  %8146 = vst [vmem:[#allocation58_spill] sm:$0xff] %v6823_v23  ;;  %v8151_v11 = vld [vmem:[#allocation60_spill] sm:$0xff]  ;;  %v8157_v19 = vld [vmem:[#allocation77_spill] sm:$0xff] }
 0x14b   : > { %5698 = vmatprep.subr.msk.bf16.mxu1 %vm1297_vm2, %v6759_v60  ;;  %v1160_v21 = vmul.f32 %v8151_v11, %v8150_v16  ;;  %8154 = vst [vmem:[#allocation60_spill] sm:$0xff] %v6849_v34  ;;  %v6865_v10 = vmul.f32 %v8157_v19, %v8156_v2  ;;  %v6870_v45 = vld [vmem:[#allocation2 + $0x61] sm:$0xff]  ;;  %v6872_v16 = vld [vmem:[#allocation2 + $0x69] sm:$0xff]  ;;  %v6884_v2 = vmul.f32 %v8164_v48, %v6095_v25 }
 0x14c   : > { %8159 = vst [vmem:[#allocation77_spill] sm:$0xff] %v6870_v45  ;;  %8160 = vst [vmem:[#allocation108_spill] sm:$0xff] %v6872_v16  ;;  %v8168_v11 = vld [vmem:[#allocation10_spill] sm:$0xff]  ;;  %v8173_v25 = vld [vmem:[#allocation9_spill] sm:$0xff]  ;;  %v6940_v37 = vmul.f32 %v8190_v49, %v6872_v16  ;;  %v6958_v16 = vmul.f32 %v6892_v30, %v8197_v59 }
 0x14d   : > { %v1187_v39 = vpack.c.bf16 %v6767_v53, %v1160_v21  ;;  %v8162_v53 = vld [vmem:[#allocation82_spill] sm:$0xff]  ;;  %v6896_v31 = vmul.f32 %v8168_v11, %v6839_v35  ;;  %v6906_v48 = vmul.f32 %v8173_v25, %v6841_v20  ;;  %8178 = vst [vmem:[#allocation9_spill] sm:$0xff] %v6914_v38  ;;  %v8184_v34 = vld [vmem:[#allocation13_spill] sm:$0xff]  ;;  %v8188_v6 = vld [vmem:[#allocation15_spill] sm:$0xff] }
 0x14e   : > { %v6878_v21 = vmul.f32 %v8162_v53, %v8161_v54  ;;  %8167 = vst [vmem:[#allocation82_spill] sm:$0xff] %v6892_v30  ;;  %v8170_v54 = vld [vmem:[#allocation76_spill] sm:$0xff]  ;;  %v6900_v53 = vld [vmem:[#allocation2 + $0x81] sm:$0xff]  ;;  %v6928_v23 = vmul.f32 %v8184_v34, %v6856_v5  ;;  %v6936_v63 = vmul.f32 %v6870_v45, %v8188_v6  ;;  %8191 = vst [vmem:[#allocation111_spill] sm:$0xff] %v6940_v37 }
 0x14f   : > { %5134 = vmatmul.mubr.msk.bf16.gmra.mrb[36].mxu0 %vm855_vm1, %v1185_v58  ;;  %v6868_v58 = vld [vmem:[#allocation2 + $0x59] sm:$0xff]  ;;  %8169 = vst [vmem:[#allocation59_spill] sm:$0xff] %v6896_v31  ;;  %8171 = vst [vmem:[#allocation84_spill] sm:$0xff] %v6900_v53  ;;  %v6960_v49 = vld [vmem:[#allocation2 + $0xc1] sm:$0xff] }
 0x150   : > { %5137 = vmatprep.mubr.msk.bf16.mxu0 %vm855_vm1, %v1186_v8  ;;  %8158 = vst [vmem:[#allocation89_spill] sm:$0xff] %v6868_v58  ;;  %v8165_v8 = vld [vmem:[#allocation83_spill] sm:$0xff]  ;;  %8174 = vst [vmem:[#allocation10_spill] sm:$0xff] %v6906_v48  ;;  %v6932_v52 = vmul.f32 %v6868_v58, %v8186_v12  ;;  %v8195_v58 = vld [vmem:[#allocation17_spill] sm:$0xff] }
 0x151   : > { %5236 = vmatmul.mubr.msk.bf16.gmra.mrb[20].mxu1 %vm855_vm1, %v8163_v46  ;;  %v6888_v19 = vmul.f32 %v8165_v8, %v6099_v27  ;;  %v6902_v46 = vld [vmem:[#allocation2 + $0x89] sm:$0xff]  ;;  %v8175_v27 = vld [vmem:[#allocation12_spill] sm:$0xff]  ;;  %8185 = vst [vmem:[#allocation13_spill] sm:$0xff] %v6928_v23  ;;  %8189 = vst [vmem:[#allocation110_spill] sm:$0xff] %v6936_v63  ;;  %v6954_v45 = vmul.f32 %v8195_v58, %v6890_v18 }
 0x152   : > { %5239 = vmatprep.mubr.msk.bf16.mxu1 %vm855_vm1, %v8170_v54  ;;  %8172 = vst [vmem:[#allocation83_spill] sm:$0xff] %v6902_v46  ;;  %v6910_v8 = vmul.f32 %v6852_v51, %v8175_v27  ;;  %8180 = vst [vmem:[#allocation12_spill] sm:$0xff] %v6918_v41  ;;  %v6920_v54 = vld [vmem:[#allocation2 + $0x91] sm:$0xff]  ;;  %v6962_v5 = vld [vmem:[#allocation2 + $0xc9] sm:$0xff] }
 0x153   : > { %8181 = vst [vmem:[#allocation11_spill] sm:$0xff] %v6920_v54  ;;  %8187 = vst [vmem:[#allocation16_spill] sm:$0xff] %v6932_v52  ;;  %v8200_v31 = vld [vmem:[#allocation19_spill] sm:$0xff]  ;;  %v6978_v30 = vld [vmem:[#allocation2 + $0xd9] sm:$0xff] }
 0x154   : > { %8176 = vst [vmem:[#allocation76_spill] sm:$0xff] %v6910_v8  ;;  %8196 = vst [vmem:[#allocation17_spill] sm:$0xff] %v6954_v45  ;;  %v6970_v56 = vmul.f32 %v6900_v53, %v8200_v31  ;;  %v8202_v8 = vld [vmem:[#allocation22_spill] sm:$0xff]  ;;  %v6976_v48 = vld [vmem:[#allocation2 + $0xd1] sm:$0xff] }
 0x155   : > { %8198 = vst [vmem:[#allocation20_spill] sm:$0xff] %v6958_v16  ;;  %8199 = vst [vmem:[#allocation115_spill] sm:$0xff] %v6962_v5  ;;  %v6974_v38 = vmul.f32 %v8202_v8, %v6902_v46  ;;  %v6980_v18 = vld [vmem:[#allocation2 + $0xe1] sm:$0xff]  ;;  %v8209_v52 = vld [vmem:[#allocation24_spill] sm:$0xff] }
 0x156   : > { %8201 = vst [vmem:[#allocation116_spill] sm:$0xff] %v6970_v56  ;;  %8204 = vst [vmem:[#allocation118_spill] sm:$0xff] %v6976_v48  ;;  %v8207_v41 = vld [vmem:[#allocation21_spill] sm:$0xff]  ;;  %v6990_v63 = vmul.f32 %v6922_v42, %v8209_v52  ;;  %v8211_v23 = vld [vmem:[#allocation23_spill] sm:$0xff] }
 0x157   : > { %8203 = vst [vmem:[#allocation117_spill] sm:$0xff] %v6974_v38  ;;  %8205 = vst [vmem:[#allocation119_spill] sm:$0xff] %v6978_v30  ;;  %v6986_v61 = vmul.f32 %v8207_v41, %v6920_v54  ;;  %v6994_v46 = vmul.f32 %v6924_v4, %v8211_v23  ;;  %5138 = vmatmul.mubr.msk.bf16.gmra.mrb[40].mxu0 %vm855_vm1, %v1187_v39  ;;  %v6997_v53 = vld [vmem:[#allocation2 + $0xe9] sm:$0xff]  ;;  %v6999_v8 = vld [vmem:[#allocation2 + $0xf1] sm:$0xff] }
 0x158   : > { %8206 = vst [vmem:[#allocation120_spill] sm:$0xff] %v6980_v18  ;;  %8210 = vst [vmem:[#allocation121_spill] sm:$0xff] %v6990_v63  ;;  %v7001_v31 = vld [vmem:[#allocation2 + $0xf9] sm:$0xff]  ;;  %v8216_v37 = vld [vmem:[#allocation26_spill] sm:$0xff]  ;;  %5141 = vmatprep.mubr.msk.bf16.mxu0 %vm855_vm1, %v1188_v55 }
 0x159   : > { %8208 = vst [vmem:[#allocation21_spill] sm:$0xff] %v6986_v61  ;;  %8212 = vst [vmem:[#allocation122_spill] sm:$0xff] %v6994_v46  ;;  %v7007_v45 = vmul.f32 %v8216_v37, %v6942_v22  ;;  %v8218_v42 = vld [vmem:[#allocation25_spill] sm:$0xff]  ;;  %v8220_v4 = vld [vmem:[#allocation28_spill] sm:$0xff] }
 0x15a   : > { %8213 = vst [vmem:[#allocation123_spill] sm:$0xff] %v6997_v53  ;;  %8214 = vst [vmem:[#allocation124_spill] sm:$0xff] %v6999_v8  ;;  %v7011_v54 = vmul.f32 %v8218_v42, %v6944_v36  ;;  %v7015_v39 = vmul.f32 %v6946_v44, %v8220_v4  ;;  %v7018_v23 = vld [vmem:[#allocation2 + $0x101] sm:$0xff]  ;;  %v7020_v52 = vld [vmem:[#allocation2 + $0x109] sm:$0xff] }
 0x15b   : > { %8215 = vst [vmem:[#allocation125_spill] sm:$0xff] %v7001_v31  ;;  %8217 = vst [vmem:[#allocation126_spill] sm:$0xff] %v7007_v45  ;;  %v8222_v56 = vld [vmem:[#allocation27_spill] sm:$0xff]  ;;  %v8224_v36 = vld [vmem:[#allocation30_spill] sm:$0xff] }
 0x15c   : > { %8219 = vst [vmem:[#allocation25_spill] sm:$0xff] %v7011_v54  ;;  %8221 = vst [vmem:[#allocation127_spill] sm:$0xff] %v7015_v39  ;;  %v7028_v22 = vmul.f32 %v6960_v49, %v8222_v56  ;;  %v7032_v44 = vmul.f32 %v8224_v36, %v6962_v5  ;;  %v8225_v4 = vld [vmem:[#allocation78_spill] sm:$0xff]  ;;  %v7036_v55 = vld [vmem:[#allocation2 + $0x111] sm:$0xff] }
 0x15d   : > { %5240 = vmatmul.mubr.msk.bf16.gmra.mrb[24].mxu1 %vm855_vm1, %v8225_v4  ;;  %v8226_v6 = vld [vmem:[#allocation29_spill] sm:$0xff]  ;;  %v8227_v16 = vld [vmem:[#allocation32_spill] sm:$0xff]  ;;  %v8229_v46 = vld [vmem:[#allocation31_spill] sm:$0xff] }
 0x15e   : > { %8223 = vst [vmem:[#allocation27_spill] sm:$0xff] %v7028_v22  ;;  %v7042_v38 = vmul.f32 %v8226_v6, %v6976_v48  ;;  %v7046_v63 = vmul.f32 %v6978_v30, %v8227_v16  ;;  %v7050_v61 = vmul.f32 %v6980_v18, %v8229_v46  ;;  %v8231_v5 = vld [vmem:[#allocation93_spill] sm:$0xff]  ;;  %v8232_v37 = vld [vmem:[#allocation34_spill] sm:$0xff]  ;;  %v8236_v30 = vld [vmem:[#allocation36_spill] sm:$0xff]  ;;  %v1189_v18 = vpack.c.bf16 %v6878_v21, %v6865_v10 }
 0x15f   : > { %5243 = vmatprep.mubr.msk.bf16.mxu1 %vm855_vm1, %v8231_v5  ;;  %v7058_v45 = vmul.f32 %v8232_v37, %v6997_v53  ;;  %v8234_v54 = vld [vmem:[#allocation33_spill] sm:$0xff]  ;;  %v7066_v16 = vmul.f32 %v7001_v31, %v8236_v30  ;;  %v8237_v46 = vld [vmem:[#allocation35_spill] sm:$0xff]  ;;  %v8238_v39 = vld [vmem:[#allocation38_spill] sm:$0xff]  ;;  %v1170_v21 = vmul.f32 %v6572_v9, %v6103_v29  ;;  %v1174_v29 = vmul.f32 %v6622_v7, %v6111_v33 }
 0x160   : > { %8228 = vst [vmem:[#allocation30_spill] sm:$0xff] %v7046_v63  ;;  %8230 = vst [vmem:[#allocation78_spill] sm:$0xff] %v7050_v61  ;;  %v7062_v48 = vmul.f32 %v8234_v54, %v6999_v8  ;;  %v7074_v4 = vmul.f32 %v7018_v23, %v8237_v46  ;;  %v7078_v22 = vmul.f32 %v7020_v52, %v8238_v39  ;;  %v8239_v8 = vld [vmem:[#allocation37_spill] sm:$0xff]  ;;  %5142 = vmatmul.mubr.msk.bf16.gmra.mrb[44].mxu0 %vm855_vm1, %v1189_v18  ;;  %v8240_v53 = vld [vmem:[#allocation94_spill] sm:$0xff] }
 0x161   : > { %8233 = vst [vmem:[#allocation29_spill] sm:$0xff] %v7058_v45  ;;  %v7084_v31 = vmul.f32 %v7036_v55, %v8239_v8  ;;  %v1190_v63 = vpack.c.bf16 %v6888_v19, %v6884_v2  ;;  %v8241_v45 = vld [vmem:[#allocation96_spill] sm:$0xff]  ;;  %v8242_v10 = vld [vmem:[#allocation98_spill] sm:$0xff]  ;;  %v1171_v2 = vmul.f32 %v6561_v0, %v6101_v28  ;;  %v1175_v28 = vmul.f32 %v6607_v1, %v6109_v32  ;;  %v8247_v0 = vld [vmem:[#allocation101_spill] sm:$0xff] }
 0x162   : > { %8235 = vst [vmem:[#allocation93_spill] sm:$0xff] %v7062_v48  ;;  %v3803_v5 = vpack.c.bf16 %v7074_v4, %v7066_v16  ;;  %v1169_v48 = vmul.f32 %v8241_v45, %v6097_v26  ;;  %v8243_v19 = vld [vmem:[#allocation92_spill] sm:$0xff]  ;;  %v1178_v33 = vmul.f32 %v6652_v3, %v8148_v17  ;;  %v1179_v32 = vmul.f32 %v6654_v43, %v8153_v62  ;;  %v1674_v7 = vld [vmem:[#allocation2 + $0x9] sm:$0xff] }
 0x163   : > { %5145 = vmatprep.mubr.msk.bf16.mxu0 %vm855_vm1, %v1190_v63  ;;  %v1168_v18 = vmul.f32 %v8243_v19, %v6093_v24  ;;  %v1192_v63 = vpack.c.bf16 %v1171_v2, %v1170_v21  ;;  %v8245_v26 = vld [vmem:[#allocation100_spill] sm:$0xff]  ;;  %v1194_v9 = vpack.c.bf16 %v1175_v28, %v1174_v29  ;;  %v8246_v24 = vld [vmem:[#allocation102_spill] sm:$0xff]  ;;  %v1866_v3 = vmul.f32 %v8168_v11, %v1674_v7  ;;  %v2517_v17 = vld [vmem:[#allocation2 + $0x110] sm:$0xff] }
 0x164   : > { %v8248_v45 = vpack.c.bf16 %v8246_v24, %v8247_v0  ;;  %v1196_v1 = vpack.c.bf16 %v1179_v32, %v1178_v33  ;;  %v8252_v21 = vld [vmem:[#allocation104_spill] sm:$0xff]  ;;  %v2516_v28 = vld [vmem:[#allocation2 + $0x108] sm:$0xff]  ;;  %v2816_v33 = vmul.f32 %v6852_v51, %v8179_v47  ;;  %v2817_v32 = vmul.f32 %v6854_v15, %v8184_v34 }
 0x165   : > { %5244 = vmatmul.mubr.msk.bf16.gmra.mrb[28].mxu1 %vm855_vm1, %v8240_v53  ;;  %v1191_v61 = vpack.c.bf16 %v1169_v48, %v1168_v18  ;;  %v8244_v53 = vld [vmem:[#allocation99_spill] sm:$0xff]  ;;  %v8250_v48 = vld [vmem:[#allocation106_spill] sm:$0xff]  ;;  %v2780_v18 = vld [vmem:[#allocation2 + $0x19] sm:$0xff]  ;;  %v7148_v24 = vpack.c.bf16 %v2517_v17, %v2516_v28  ;;  %v2814_v7 = vmul.f32 %v8175_v27, %v6839_v35 }
 0x166   : > { %5247 = vmatprep.mubr.msk.bf16.mxu1 %vm855_vm1, %v8242_v10  ;;  %v8251_v10 = vld [vmem:[#allocation105_spill] sm:$0xff]  ;;  %v1675_v19 = vld [vmem:[#allocation2 + $0x11] sm:$0xff]  ;;  %v2812_v62 = vmul.f32 %v2780_v18, %v8168_v11 }
 0x167   : > { %v8253_v2 = vpack.c.bf16 %v8251_v10, %v8252_v21  ;;  %v1867_v43 = vmul.f32 %v8173_v25, %v1675_v19 }
 0x168   : > { %5146 = vmatmul.mubr.msk.bf16.gmra.mrb[48].mxu0 %vm855_vm1, %v1191_v61  ;;  %v8249_v61 = vld [vmem:[#allocation103_spill] sm:$0xff] }
 0x169   : > { %5149 = vmatprep.mubr.msk.bf16.mxu0 %vm855_vm1, %v1192_v63  ;;  %v2781_v63 = vld [vmem:[#allocation2 + $0x21] sm:$0xff]  ;;  %v1898_v29 = vpack.c.bf16 %v1867_v43, %v1866_v3 }
 0x16a   : > { %v1869_v11 = vmul.f32 %v2781_v63, %v8177_v57  ;;  %v8259_v3 = vld [vmem:[#allocation18_spill] sm:$0xff] }
 0x16d   : > { %5248 = vmatmul.mubr.msk.bf16.gmra.mrb[0].mxu1 %vm855_vm1, %v8244_v53  ;;  %v2813_v53 = vmul.f32 %v2781_v63, %v8173_v25  ;;  %v1871_v25 = vmul.f32 %v8184_v34, %v6841_v20  ;;  %v8256_v34 = vld [vmem:[#allocation15_spill] sm:$0xff] }
 0x16e   : > { %5251 = vmatprep.mubr.msk.bf16.mxu1 %vm855_vm1, %v8245_v26  ;;  %v8258_v63 = vld [vmem:[#allocation67_spill] sm:$0xff] }
 0x16f   : > { %v2844_v0 = vpack.c.bf16 %v2813_v53, %v2812_v62  ;;  %v1874_v43 = vmul.f32 %v8259_v3, %v8258_v63 }
 0x170   : > { %5150 = vmatmul.mubr.msk.bf16.gmra.mrb[52].mxu0 %vm855_vm1, %v8248_v45  ;;  %v1868_v45 = vmul.f32 %v2780_v18, %v8175_v27  ;;  %v1873_v27 = vmul.f32 %v6854_v15, %v8256_v34  ;;  %v8261_v15 = vld [vmem:[#allocation77_spill] sm:$0xff] }
 0x171   : > { %5153 = vmatprep.mubr.msk.bf16.mxu0 %vm855_vm1, %v1194_v9  ;;  %v8254_v9 = vpack.c.bf16 %v6708_v13, %v6704_v14  ;;  %v2815_v14 = vmul.f32 %v8177_v57, %v6841_v20  ;;  %v1870_v13 = vmul.f32 %v8179_v47, %v6839_v35  ;;  %v3237_v57 = vsel %vm1297_vm2, %v6759_v60, 0  ;;  %v7176_v47 = vld [vmem:[%s7819_s2 + $0xe] sm:$0x3]  ;;  %v8257_v60 = vld [vmem:[#allocation5_spill] sm:$0xff] }
 0x172   : > { %v2846_v20 = vpack.c.bf16 %v2817_v32, %v2816_v33  ;;  %v1872_v35 = vmul.f32 %v6852_v51, %v8186_v12  ;;  %v1875_v19 = vmul.f32 %v8195_v58, %v8257_v60  ;;  %v2819_v18 = vmul.f32 %v8256_v34, %v8257_v60  ;;  %v8260_v51 = vld [vmem:[#allocation89_spill] sm:$0xff]  ;;  %v8265_v33 = vld [vmem:[#allocation22_spill] sm:$0xff] }
 0x173   : > { %v1900_v10 = vpack.c.bf16 %v1871_v25, %v1870_v13  ;;  %v2845_v21 = vpack.c.bf16 %v2815_v14, %v2814_v7  ;;  %v2820_v17 = vmul.f32 %v8260_v51, %v8259_v3  ;;  %v2821_v62 = vmul.f32 %v8261_v15, %v8195_v58  ;;  %v8263_v58 = vld [vmem:[#allocation81_spill] sm:$0xff]  ;;  %v8264_v13 = vld [vmem:[#allocation108_spill] sm:$0xff]  ;;  %v8271_v3 = vld [vmem:[#allocation83_spill] sm:$0xff] }
 0x174   : > { %v1901_v53 = vpack.c.bf16 %v1873_v27, %v1872_v35  ;;  %v1902_v28 = vpack.c.bf16 %v1875_v19, %v1874_v43  ;;  %v1878_v32 = vmul.f32 %v8265_v33, %v8264_v13  ;;  %v8268_v27 = vld [vmem:[#allocation24_spill] sm:$0xff]  ;;  %v8269_v19 = vld [vmem:[#allocation23_spill] sm:$0xff]  ;;  %v8272_v43 = vld [vmem:[#allocation26_spill] sm:$0xff] }
 0x175   : > { %5252 = vmatmul.mubr.msk.bf16.gmra.mrb[4].mxu1 %vm855_vm1, %v8249_v61 }
 0x176   : > { %5255 = vmatprep.mubr.msk.bf16.mxu1 %vm855_vm1, %v8250_v48 }
 0x178   : > { %5154 = vmatmul.mubr.msk.bf16.gmra.mrb[56].mxu0 %vm855_vm1, %v8253_v2  ;;  %v8255_v2 = vld [vmem:[#allocation4_spill] sm:$0xff] }
 0x179   : > { %5157 = vmatprep.mubr.msk.bf16.mxu0 %vm855_vm1, %v1196_v1  ;;  %v1899_v1 = vpack.c.bf16 %v1869_v11, %v1868_v45  ;;  %v1876_v45 = vmul.f32 %v8260_v51, %v8197_v59  ;;  %v8262_v11 = vld [vmem:[#allocation19_spill] sm:$0xff]  ;;  %v1882_v51 = vmul.f32 %v8272_v43, %v8271_v3 }
 0x17a   : > { %v1877_v25 = vmul.f32 %v8261_v15, %v8262_v11  ;;  %v2823_v14 = vmul.f32 %v8262_v11, %v8263_v58  ;;  %v8275_v11 = vld [vmem:[#allocation28_spill] sm:$0xff] }
 0x17d   : > { %5256 = vmatmul.mubr.msk.bf16.gmra.mrb[8].mxu1 %vm855_vm1, %v6688_v50 }
 0x17e   : > { %5259 = vmatprep.mubr.msk.bf16.mxu1 %vm855_vm1, %v6721_v40 }
 0x180   : > { %5158 = vmatmul.mubr.msk.bf16.gmra.mrb[60].mxu0 %vm855_vm1, %v8254_v9 }
 0x181   : > { %5163 = vmatprep.mubr.msk.bf16.mxu0 %vm855_vm1, %v1898_v29  ;;  %v2818_v29 = vmul.f32 %v8186_v12, %v8258_v63  ;;  %v1879_v12 = vmul.f32 %v8207_v41, %v8263_v58 }
 0x183   : > { %v2847_v9 = vpack.c.bf16 %v2819_v18, %v2818_v29 }
 0x185   : > { %5260 = vmatmul.mubr.msk.bf16.gmra.mrb[12].mxu1 %vm855_vm1, %v7148_v24 }
 0x186   : > { %5265 = vmatprep.mubr.msk.bf16.mxu1 %vm855_vm1, %v2844_v0  ;;  %v2848_v0 = vpack.c.bf16 %v2821_v62, %v2820_v17  ;;  %v8273_v17 = vld [vmem:[#allocation14_spill] sm:$0xff]  ;;  %v8274_v62 = vld [vmem:[#allocation109_spill] sm:$0xff] }
 0x187   : > { %v2828_v15 = vmul.f32 %v8273_v17, %v8272_v43  ;;  %v1885_v58 = vmul.f32 %v8274_v62, %v8222_v56 }
 0x188   : > { %5164 = vmatmul.mubr.msk.bf16.vlgmr.msra.gmra.mrb[32].mxu0 %vm855_vm1, %v1899_v1  ;;  %v8266_v1 = vld [vmem:[#allocation82_spill] sm:$0xff] }
 0x189   : > { %5167 = vmatprep.mubr.msk.bf16.mxu0 %vm855_vm1, %v1900_v10  ;;  %5196 = vmatpush3.bf16.msra.mxu0 %v8255_v2  ;;  %v2824_v7 = vmul.f32 %v8266_v1, %v8265_v33  ;;  %v8267_v10 = vld [vmem:[#allocation84_spill] sm:$0xff]  ;;  %v1904_v2 = vpack.c.bf16 %v1879_v12, %v1878_v32  ;;  %v1880_v60 = vmul.f32 %v8266_v1, %v8268_v27  ;;  %v8278_v32 = vld [vmem:[#allocation114_spill] sm:$0xff] }
 0x18a   : > { %v1881_v18 = vmul.f32 %v8267_v10, %v8269_v19  ;;  %v2832_v1 = vmul.f32 %v8278_v32, %v8224_v36 }
 0x18c   : > { %v1905_v29 = vpack.c.bf16 %v1881_v18, %v1880_v60 }
 0x18d   : > { %5266 = vmatmul.mubr.msk.bf16.vlgmr.msra.gmra.mrb[16].mxu1 %vm855_vm1, %v2845_v21  ;;  %v2825_v21 = vmul.f32 %v8267_v10, %v8207_v41  ;;  %v8270_v41 = vld [vmem:[#allocation11_spill] sm:$0xff] }
 0x18e   : > { %5298 = vmatpush3.bf16.msra.mxu1 %v3237_v57  ;;  %5269 = vmatprep.mubr.msk.bf16.mxu1 %vm855_vm1, %v2846_v20  ;;  %v1903_v57 = vpack.c.bf16 %v1877_v25, %v1876_v45  ;;  %v2822_v20 = vmul.f32 %v8197_v59, %v8264_v13  ;;  %v1883_v59 = vmul.f32 %v8218_v42, %v8270_v41  ;;  %v8277_v13 = vld [vmem:[#allocation112_spill] sm:$0xff] }
 0x18f   : > { %5699 = vmatprep.subr.msk.bf16.mxu1 %vm1297_vm2, %v7176_v47  ;;  %v2850_v34 = vpack.c.bf16 %v2825_v21, %v2824_v7  ;;  %v2827_v63 = vmul.f32 %v8269_v19, %v8270_v41  ;;  %v1884_v25 = vmul.f32 %v8273_v17, %v8275_v11  ;;  %v1886_v33 = vmul.f32 %v8224_v36, %v8277_v13  ;;  %v8280_v36 = vld [vmem:[#allocation31_spill] sm:$0xff] }
 0x190   : > { %5168 = vmatmul.mubr.msk.bf16.gmra.mrb[36].mxu0 %vm855_vm1, %v1901_v53  ;;  %v2849_v35 = vpack.c.bf16 %v2823_v14, %v2822_v20  ;;  %v2829_v53 = vmul.f32 %v8274_v62, %v8218_v42  ;;  %v8276_v42 = vld [vmem:[#allocation113_spill] sm:$0xff]  ;;  %v2833_v7 = vmul.f32 %v6960_v49, %v8226_v6  ;;  %v2830_v21 = vmul.f32 %v8275_v11, %v8277_v13  ;;  %v8282_v19 = vld [vmem:[#allocation115_spill] sm:$0xff] }
 0x191   : > { %5171 = vmatprep.mubr.msk.bf16.mxu0 %vm855_vm1, %v1902_v28  ;;  %v2826_v28 = vmul.f32 %v8268_v27, %v8271_v3  ;;  %v1887_v12 = vmul.f32 %v8226_v6, %v8276_v42  ;;  %v2831_v14 = vmul.f32 %v8222_v56, %v8276_v42  ;;  %v1907_v10 = vpack.c.bf16 %v1885_v58, %v1884_v25  ;;  %v8281_v6 = vld [vmem:[#allocation118_spill] sm:$0xff]  ;;  %v8283_v41 = vld [vmem:[#allocation119_spill] sm:$0xff] }
 0x192   : > { %v2852_v45 = vpack.c.bf16 %v2829_v53, %v2828_v15  ;;  %v2854_v56 = vpack.c.bf16 %v2833_v7, %v2832_v1  ;;  %v1891_v27 = vmul.f32 %v8234_v54, %v8281_v6  ;;  %v2835_v60 = vmul.f32 %v8280_v36, %v8281_v6  ;;  %v8290_v7 = vld [vmem:[#allocation44_spill] sm:$0xff]  ;;  %v4831_v6 = vld [vmem:[%s7819_s2 + $0x10] sm:$0x3] }
 0x193   : > { %v2853_v20 = vpack.c.bf16 %v2831_v14, %v2830_v21  ;;  %v1890_v18 = vmul.f32 %v8232_v37, %v8282_v19  ;;  %v1892_v62 = vmul.f32 %v8283_v41, %v8236_v30  ;;  %v2841_v11 = vmul.f32 %v7018_v23, %v8239_v8  ;;  %v8288_v14 = vld [vmem:[#allocation40_spill] sm:$0xff] }
 0x195   : > { %5270 = vmatmul.mubr.msk.bf16.gmra.mrb[20].mxu1 %vm855_vm1, %v2847_v9  ;;  %v1906_v9 = vpack.c.bf16 %v1883_v59, %v1882_v51  ;;  %v2836_v59 = vmul.f32 %v8283_v41, %v8232_v37  ;;  %v1910_v51 = vpack.c.bf16 %v1891_v27, %v1890_v18  ;;  %v8302_v27 = vld [vmem:[#allocation53_spill] sm:$0xff]  ;;  %v8305_v18 = vld [vmem:[#allocation50_spill] sm:$0xff]  ;;  %v8306_v41 = vld [vmem:[#allocation55_spill] sm:$0xff] }
 0x196   : > { %5273 = vmatprep.mubr.msk.bf16.mxu1 %vm855_vm1, %v2848_v0  ;;  %v2851_v0 = vpack.c.bf16 %v2827_v63, %v2826_v28  ;;  %v8284_v63 = vld [vmem:[#allocation120_spill] sm:$0xff]  ;;  %v8286_v28 = vld [vmem:[#allocation123_spill] sm:$0xff] }
 0x197   : > { %v2837_v3 = vmul.f32 %v8284_v63, %v8234_v54  ;;  %v1893_v37 = vmul.f32 %v8284_v63, %v8237_v46  ;;  %v8285_v54 = vld [vmem:[#allocation124_spill] sm:$0xff]  ;;  %v2838_v58 = vmul.f32 %v8236_v30, %v8286_v28  ;;  %v2842_v30 = vmul.f32 %v7020_v52, %v8288_v14  ;;  %v8296_v52 = vld [vmem:[#allocation43_spill] sm:$0xff] }
 0x198   : > { %5172 = vmatmul.mubr.msk.bf16.gmra.mrb[40].mxu0 %vm855_vm1, %v1903_v57  ;;  %v1908_v57 = vpack.c.bf16 %v1887_v12, %v1886_v33  ;;  %v1895_v53 = vmul.f32 %v8239_v8, %v8285_v54  ;;  %v8309_v63 = vld [vmem:[#allocation56_spill] sm:$0xff] }
 0x199   : > { %5175 = vmatprep.mubr.msk.bf16.mxu0 %vm855_vm1, %v1904_v2  ;;  %v8279_v2 = vld [vmem:[#allocation32_spill] sm:$0xff]  ;;  %v2856_v15 = vpack.c.bf16 %v2837_v3, %v2836_v59  ;;  %v1911_v25 = vpack.c.bf16 %v1893_v37, %v1892_v62  ;;  %v8307_v59 = vpack.c.bf16 %v8305_v18, %v8306_v41  ;;  %v8353_v41 = vld [vmem:[#allocation107_spill] sm:$0xff] }
 0x19a   : > { %v8317_v37 = vld [vmem:[#allocation64_spill] sm:$0xff] }
 0x19b   : > { %v3136_v18 = vld [vmem:[#allocation2 + $0x117] sm:$0xff] }
 0x19d   : > { %5274 = vmatmul.mubr.msk.bf16.gmra.mrb[24].mxu1 %vm855_vm1, %v2849_v35  ;;  %v1888_v35 = vmul.f32 %v8278_v32, %v8279_v2 }
 0x19e   : > { %5277 = vmatprep.mubr.msk.bf16.mxu1 %vm855_vm1, %v2850_v34  ;;  %v1889_v34 = vmul.f32 %v6960_v49, %v8280_v36  ;;  %v2834_v49 = vmul.f32 %v8279_v2, %v8282_v19  ;;  %v8300_v36 = vld [vmem:[#allocation49_spill] sm:$0xff] }
 0x1a0   : > { %5176 = vmatmul.mubr.msk.bf16.gmra.mrb[44].mxu0 %vm855_vm1, %v1905_v29  ;;  %v1909_v43 = vpack.c.bf16 %v1889_v34, %v1888_v35  ;;  %v2855_v17 = vpack.c.bf16 %v2835_v60, %v2834_v49  ;;  %v2839_v29 = vmul.f32 %v8237_v46, %v8285_v54  ;;  %v8299_v35 = vld [vmem:[#allocation54_spill] sm:$0xff]  ;;  %v8303_v60 = vld [vmem:[#allocation48_spill] sm:$0xff]  ;;  %v8312_v49 = vld [vmem:[#allocation65_spill] sm:$0xff] }
 0x1a1   : > { %5179 = vmatprep.mubr.msk.bf16.mxu0 %vm855_vm1, %v1906_v9  ;;  %v1894_v9 = vmul.f32 %v8238_v39, %v8286_v28  ;;  %v8301_v34 = vpack.c.bf16 %v8299_v35, %v8300_v36  ;;  %v8304_v19 = vpack.c.bf16 %v8302_v27, %v8303_v60  ;;  %v8318_v54 = vld [vmem:[#allocation72_spill] sm:$0xff]  ;;  %v8321_v28 = vld [vmem:[#allocation73_spill] sm:$0xff]  ;;  %v8348_v36 = vld [vmem:[#allocation75_spill] sm:$0xff] }
 0x1a2   : > { %v2857_v12 = vpack.c.bf16 %v2839_v29, %v2838_v58  ;;  %v8320_v29 = vld [vmem:[#allocation66_spill] sm:$0xff]  ;;  %v8327_v58 = vld [vmem:[#allocation79_spill] sm:$0xff]  ;;  %v8347_v35 = vld [vmem:[#allocation69_spill] sm:$0xff] }
 0x1a3   : > { %v1912_v42 = vpack.c.bf16 %v1895_v53, %v1894_v9  ;;  %v8319_v53 = vpack.c.bf16 %v8317_v37, %v8318_v54  ;;  %v8322_v9 = vpack.c.bf16 %v8320_v29, %v8321_v28  ;;  %v8350_v27 = vld [vmem:[#allocation3_spill] sm:$0xff]  ;;  %v3435_v28 = vld [vmem:[#allocation2 + $0x40] sm:$0xff] }
 0x1a4   : > { %v8351_v60 = vld [vmem:[#allocation47_spill] sm:$0xff] }
 0x1a5   : > { %5278 = vmatmul.mubr.msk.bf16.gmra.mrb[28].mxu1 %vm855_vm1, %v2851_v0  ;;  %v8287_v0 = vld [vmem:[#allocation125_spill] sm:$0xff]  ;;  %v3433_v37 = vld [vmem:[#allocation2 + $0x30] sm:$0xff] }
 0x1a6   : > { %5281 = vmatprep.mubr.msk.bf16.mxu1 %vm855_vm1, %v2852_v45  ;;  %v2840_v45 = vmul.f32 %v8287_v0, %v8238_v39  ;;  %v1896_v13 = vmul.f32 %v8287_v0, %v8288_v14  ;;  %v8289_v39 = vld [vmem:[#allocation39_spill] sm:$0xff]  ;;  %v8323_v0 = vld [vmem:[#allocation86_spill] sm:$0xff] }
 0x1a7   : > { %v1897_v33 = vmul.f32 %v7018_v23, %v8289_v39  ;;  %v2843_v8 = vmul.f32 %v7036_v55, %v8289_v39  ;;  %v8293_v23 = vld [vmem:[#allocation42_spill] sm:$0xff]  ;;  %v3531_v55 = vsel %vm1297_vm2, %v7176_v47, 0  ;;  %v8308_v47 = vld [vmem:[#allocation52_spill] sm:$0xff] }
 0x1a8   : > { %5180 = vmatmul.mubr.msk.bf16.gmra.mrb[48].mxu0 %vm855_vm1, %v1907_v10  ;;  %v2858_v46 = vpack.c.bf16 %v2841_v11, %v2840_v45  ;;  %v8291_v10 = vld [vmem:[#allocation41_spill] sm:$0xff]  ;;  %v8310_v3 = vpack.c.bf16 %v8308_v47, %v8309_v63  ;;  %v8324_v45 = vld [vmem:[#allocation80_spill] sm:$0xff] }
 0x1a9   : > { %5183 = vmatprep.mubr.msk.bf16.mxu0 %vm855_vm1, %v1908_v57  ;;  %v1913_v32 = vpack.c.bf16 %v1897_v33, %v1896_v13  ;;  %v2859_v1 = vpack.c.bf16 %v2843_v8, %v2842_v30  ;;  %v8292_v21 = vpack.c.bf16 %v8290_v7, %v8291_v10  ;;  %v8294_v57 = vld [vmem:[#allocation45_spill] sm:$0xff]  ;;  %v8325_v11 = vpack.c.bf16 %v8323_v0, %v8324_v45  ;;  %v8332_v33 = vld [vmem:[#allocation91_spill] sm:$0xff]  ;;  %v8333_v30 = vld [vmem:[#allocation90_spill] sm:$0xff] }
 0x1aa   : > { %v8334_v8 = vpack.c.bf16 %v8332_v33, %v8333_v30  ;;  %v8338_v10 = vld [vmem:[#allocation51_spill] sm:$0xff]  ;;  %v3137_v63 = vld [vmem:[#allocation2 + $0x11f] sm:$0xff]  ;;  %v3440_v33 = vld [vmem:[#allocation2 + $0x68] sm:$0xff] }
 0x1ab   : > { %v3434_v0 = vld [vmem:[#allocation2 + $0x38] sm:$0xff] }
 0x1ac   : > { %v3465_v45 = vpack.c.bf16 %v3435_v28, %v3434_v0  ;;  %v8386_v28 = vld [vmem:[#allocation126_spill] sm:$0xff]  ;;  %v8388_v0 = vld [vmem:[#allocation27_spill] sm:$0xff] }
 0x1ad   : > { %5282 = vmatmul.mubr.msk.bf16.gmra.mrb[0].mxu1 %vm855_vm1, %v2853_v20  ;;  %v8295_v20 = vpack.c.bf16 %v8293_v23, %v8294_v57  ;;  %v8341_v57 = vld [vmem:[#allocation61_spill] sm:$0xff] }
 0x1ae   : > { %5285 = vmatprep.mubr.msk.bf16.mxu1 %vm855_vm1, %v2854_v56  ;;  %v8297_v56 = vld [vmem:[#allocation46_spill] sm:$0xff] }
 0x1af   : > { %v8298_v2 = vpack.c.bf16 %v8296_v52, %v8297_v56  ;;  %v8344_v56 = vld [vmem:[#allocation68_spill] sm:$0xff] }
 0x1b0   : > { %5184 = vmatmul.mubr.msk.bf16.gmra.mrb[52].mxu0 %vm855_vm1, %v1909_v43  ;;  %v8311_v43 = vld [vmem:[#allocation71_spill] sm:$0xff] }
 0x1b1   : > { %5187 = vmatprep.mubr.msk.bf16.mxu0 %vm855_vm1, %v1910_v51  ;;  %v8313_v51 = vpack.c.bf16 %v8311_v43, %v8312_v49  ;;  %v8357_v43 = vld [vmem:[#allocation6_spill] sm:$0xff] }
 0x1b5   : > { %5286 = vmatmul.mubr.msk.bf16.gmra.mrb[4].mxu1 %vm855_vm1, %v2855_v17  ;;  %v8314_v17 = vld [vmem:[#allocation70_spill] sm:$0xff] }
 0x1b6   : > { %5289 = vmatprep.mubr.msk.bf16.mxu1 %vm855_vm1, %v2856_v15  ;;  %v8315_v15 = vld [vmem:[#allocation63_spill] sm:$0xff] }
 0x1b7   : > { %v8316_v62 = vpack.c.bf16 %v8314_v17, %v8315_v15  ;;  %v8360_v15 = vld [vmem:[#allocation7_spill] sm:$0xff] }
 0x1b8   : > { %5188 = vmatmul.mubr.msk.bf16.gmra.mrb[56].mxu0 %vm855_vm1, %v1911_v25  ;;  %v8326_v25 = vld [vmem:[#allocation85_spill] sm:$0xff] }
 0x1b9   : > { %5191 = vmatprep.mubr.msk.bf16.mxu0 %vm855_vm1, %v1912_v42  ;;  %v8328_v42 = vpack.c.bf16 %v8326_v25, %v8327_v58  ;;  %v3436_v25 = vld [vmem:[#allocation2 + $0x48] sm:$0xff] }
 0x1bd   : > { %5290 = vmatmul.mubr.msk.bf16.gmra.mrb[8].mxu1 %vm855_vm1, %v2857_v12  ;;  %v8329_v12 = vld [vmem:[#allocation87_spill] sm:$0xff] }
 0x1be   : > { %5293 = vmatprep.mubr.msk.bf16.mxu1 %vm855_vm1, %v2858_v46  ;;  %v8330_v46 = vld [vmem:[#allocation88_spill] sm:$0xff] }
 0x1bf   : > { %v8331_v13 = vpack.c.bf16 %v8329_v12, %v8330_v46  ;;  %v3441_v12 = vld [vmem:[#allocation2 + $0x70] sm:$0xff]  ;;  %v3438_v46 = vld [vmem:[#allocation2 + $0x58] sm:$0xff] }
 0x1c0   : > { %5192 = vmatmul.mubr.msk.bf16.gmra.mrb[60].mxu0 %vm855_vm1, %v1913_v32  ;;  %v8335_v32 = vld [vmem:[#allocation97_spill] sm:$0xff]  ;;  %v3468_v30 = vpack.c.bf16 %v3441_v12, %v3440_v33 }
 0x1c1   : > { %5197 = vmatprep.mubr.msk.bf16.mxu0 %vm855_vm1, %v8292_v21  ;;  %v8339_v21 = vld [vmem:[#allocation57_spill] sm:$0xff] }
 0x1c2   : > { %v8340_v23 = vpack.c.bf16 %v8338_v10, %v8339_v21  ;;  %v3447_v21 = vld [vmem:[#allocation2 + $0xa0] sm:$0xff] }
 0x1c5   : > { %5294 = vmatmul.mubr.msk.bf16.gmra.mrb[12].mxu1 %vm855_vm1, %v2859_v1  ;;  %v8336_v1 = vld [vmem:[#allocation95_spill] sm:$0xff] }
 0x1c6   : > { %5299 = vmatprep.mubr.msk.bf16.mxu1 %vm855_vm1, %v8295_v20  ;;  %v8337_v7 = vpack.c.bf16 %v8335_v32, %v8336_v1  ;;  %v8342_v20 = vld [vmem:[#allocation74_spill] sm:$0xff]  ;;  %v3445_v32 = vld [vmem:[#allocation2 + $0x90] sm:$0xff] }
 0x1c7   : > { %v8343_v52 = vpack.c.bf16 %v8341_v57, %v8342_v20  ;;  %v3446_v57 = vld [vmem:[#allocation2 + $0x98] sm:$0xff] }
 0x1c8   : > { %5198 = vmatmul.mubr.msk.bf16.vlgmr.msra.gmra.mrb[32].mxu0 %vm855_vm1, %v8298_v2  ;;  %v8345_v2 = vld [vmem:[#allocation62_spill] sm:$0xff]  ;;  %v3471_v20 = vpack.c.bf16 %v3447_v21, %v3446_v57 }
 0x1c9   : > { %5201 = vmatprep.mubr.msk.bf16.mxu0 %vm855_vm1, %v8301_v34  ;;  %v8349_v34 = vpack.c.bf16 %v8347_v35, %v8348_v36  ;;  %v8362_v35 = vld [vmem:[#allocation59_spill] sm:$0xff] }
 0x1cd   : > { %5300 = vmatmul.mubr.msk.bf16.vlgmr.msra.gmra.mrb[16].mxu1 %vm855_vm1, %v8304_v19  ;;  %v8352_v19 = vpack.c.bf16 %v8350_v27, %v8351_v60  ;;  %v8365_v27 = vld [vmem:[#allocation76_spill] sm:$0xff] }
 0x1ce   : > { %5332 = vmatpush3.bf16.msra.mxu1 %v3531_v55  ;;  %5303 = vmatprep.mubr.msk.bf16.mxu1 %vm855_vm1, %v8307_v59  ;;  %v8346_v55 = vpack.c.bf16 %v8344_v56, %v8345_v2  ;;  %v8354_v59 = vld [vmem:[#allocation58_spill] sm:$0xff]  ;;  %v4178_v2 = vld [vmem:[%s7820_s3] sm:$0x3] }
 0x1cf   : > { %5700 = vmatprep.subr.msk.bf16.mxu1 %vm1297_vm2, %v4831_v6  ;;  %v8355_v47 = vpack.c.bf16 %v8353_v41, %v8354_v59  ;;  %5701 = vmatprep.subr.msk.bf16.mxu0 %vm1297_vm2, %v4178_v2  ;;  %v8371_v41 = vld [vmem:[#allocation16_spill] sm:$0xff] }
 0x1d0   : > { %5202 = vmatmul.mubr.msk.bf16.gmra.mrb[36].mxu0 %vm855_vm1, %v8310_v3  ;;  %v8356_v3 = vld [vmem:[#allocation60_spill] sm:$0xff] }
 0x1d1   : > { %5205 = vmatprep.mubr.msk.bf16.mxu0 %vm855_vm1, %v8313_v51  ;;  %v8358_v49 = vpack.c.bf16 %v8356_v3, %v8357_v43  ;;  %v8359_v51 = vld [vmem:[#allocation8_spill] sm:$0xff] }
 0x1d2   : > { %v3168_v17 = vmul.f32 %v3136_v18, %v8359_v51  ;;  %v8376_v43 = vld [vmem:[#allocation116_spill] sm:$0xff] }
 0x1d5   : > { %5304 = vmatmul.mubr.msk.bf16.gmra.mrb[20].mxu1 %vm855_vm1, %v8316_v62  ;;  %v3169_v62 = vmul.f32 %v3137_v63, %v8360_v15  ;;  %v8374_v63 = vld [vmem:[#allocation111_spill] sm:$0xff]  ;;  %v8380_v15 = vld [vmem:[#allocation117_spill] sm:$0xff] }
 0x1d6   : > { %5307 = vmatprep.mubr.msk.bf16.mxu1 %vm855_vm1, %v8319_v53  ;;  %v3432_v53 = vld [vmem:[#allocation2 + $0x28] sm:$0xff] }
 0x1d7   : > { %v3185_v54 = vpack.c.bf16 %v3169_v62, %v3168_v17  ;;  %v3464_v29 = vpack.c.bf16 %v3433_v37, %v3432_v53  ;;  %v8379_v17 = vld [vmem:[#allocation21_spill] sm:$0xff]  ;;  %v8382_v37 = vld [vmem:[#allocation122_spill] sm:$0xff] }
 0x1d8   : > { %5206 = vmatmul.mubr.msk.bf16.gmra.mrb[40].mxu0 %vm855_vm1, %v8322_v9  ;;  %v3437_v9 = vld [vmem:[#allocation2 + $0x50] sm:$0xff]  ;;  %v8381_v62 = vpack.c.bf16 %v8379_v17, %v8380_v15 }
 0x1d9   : > { %5209 = vmatprep.mubr.msk.bf16.mxu0 %vm855_vm1, %v8325_v11  ;;  %v3857_v11 = vsel %vm1297_vm2, %v4831_v6, 0  ;;  %v3466_v58 = vpack.c.bf16 %v3437_v9, %v3436_v25  ;;  %v3442_v6 = vld [vmem:[#allocation2 + $0x78] sm:$0xff]  ;;  %v8391_v25 = vpack.c.bf16 %v7042_v38, %v7032_v44  ;;  %v8398_v38 = vpack.c.bf16 %v7084_v31, %v7078_v22 }
 0x1dd   : > { %5308 = vmatmul.mubr.msk.bf16.gmra.mrb[24].mxu1 %vm855_vm1, %v8328_v42  ;;  %v3439_v42 = vld [vmem:[#allocation2 + $0x60] sm:$0xff] }
 0x1de   : > { %5311 = vmatprep.mubr.msk.bf16.mxu1 %vm855_vm1, %v8331_v13  ;;  %v3467_v13 = vpack.c.bf16 %v3439_v42, %v3438_v46  ;;  %v8393_v42 = vld [vmem:[#allocation30_spill] sm:$0xff]  ;;  %v8395_v46 = vld [vmem:[#allocation93_spill] sm:$0xff] }
 0x1e0   : > { %5210 = vmatmul.mubr.msk.bf16.gmra.mrb[44].mxu0 %vm855_vm1, %v8334_v8  ;;  %v3443_v8 = vld [vmem:[#allocation2 + $0x80] sm:$0xff] }
 0x1e1   : > { %v3469_v1 = vpack.c.bf16 %v3443_v8, %v3442_v6  ;;  %v3756_v8 = vld [vmem:[#allocation2 + $0x119] sm:$0xff] }
 0x1e2   : > { %v3788_v6 = vmul.f32 %v3756_v8, %v8288_v14 }
 0x1e5   : > { %5312 = vmatmul.mubr.msk.bf16.gmra.mrb[28].mxu1 %vm855_vm1, %v8337_v7  ;;  %v3444_v7 = vld [vmem:[#allocation2 + $0x88] sm:$0xff] }
 0x1e6   : > { %5315 = vmatprep.mubr.msk.bf16.mxu1 %vm855_vm1, %v8340_v23  ;;  %v3470_v10 = vpack.c.bf16 %v3445_v32, %v3444_v7  ;;  %v3449_v23 = vld [vmem:[#allocation2 + $0xb0] sm:$0xff] }
 0x1ed   : > { %5316 = vmatmul.mubr.msk.bf16.gmra.mrb[0].mxu1 %vm855_vm1, %v8343_v52  ;;  %v3448_v52 = vld [vmem:[#allocation2 + $0xa8] sm:$0xff] }
 0x1ee   : > { %5319 = vmatprep.mubr.msk.bf16.mxu1 %vm855_vm1, %v8346_v55  ;;  %v3472_v56 = vpack.c.bf16 %v3449_v23, %v3448_v52  ;;  %v4228_v55 = vsel %vm1297_vm2, %v4178_v2, 0 }
 0x1ef   : > { %5400 = vmatpush3.bf16.msra.mxu0 %v4228_v55 }
 0x1f5   : > { %5320 = vmatmul.mubr.msk.bf16.gmra.mrb[4].mxu1 %vm855_vm1, %v8349_v34  ;;  %v8364_v34 = vld [vmem:[#allocation9_spill] sm:$0xff] }
 0x1f6   : > { %5323 = vmatprep.mubr.msk.bf16.mxu1 %vm855_vm1, %v8352_v19  ;;  %v8366_v60 = vpack.c.bf16 %v8364_v34, %v8365_v27  ;;  %v8367_v19 = vld [vmem:[#allocation13_spill] sm:$0xff] }
 0x1fd   : > { %5324 = vmatmul.mubr.msk.bf16.gmra.mrb[8].mxu1 %vm855_vm1, %v8355_v47  ;;  %v8373_v47 = vld [vmem:[#allocation17_spill] sm:$0xff] }
 0x1fe   : > { %5327 = vmatprep.mubr.msk.bf16.mxu1 %vm855_vm1, %v8358_v49  ;;  %v8375_v3 = vpack.c.bf16 %v8373_v47, %v8374_v63  ;;  %v8377_v49 = vld [vmem:[#allocation20_spill] sm:$0xff]  ;;  %v7547_v47 = vld [vmem:[%s7823_s6] ss:$0 sm:$0xff] }
 0x1ff   : > { %v8378_v51 = vpack.c.bf16 %v8376_v43, %v8377_v49  ;;  %v7552_v43 = vld [vmem:[%s7824_s7] ss:$0 sm:$0xff] }
 0x205   : > { %5328 = vmatmul.mubr.msk.bf16.gmra.mrb[12].mxu1 %vm855_vm1, %v3185_v54  ;;  %v8383_v54 = vld [vmem:[#allocation121_spill] sm:$0xff] }
 0x206   : > { %5333 = vmatprep.mubr.msk.bf16.mxu1 %vm855_vm1, %v3464_v29  ;;  %v8384_v53 = vpack.c.bf16 %v8382_v37, %v8383_v54  ;;  %v8385_v29 = vld [vmem:[#allocation25_spill] sm:$0xff] }
 0x207   : > { %v8387_v9 = vpack.c.bf16 %v8385_v29, %v8386_v28 }
 0x20d   : > { %5334 = vmatmul.mubr.msk.bf16.vlgmr.msra.gmra.mrb[16].mxu1 %vm855_vm1, %v3465_v45  ;;  %v8389_v45 = vld [vmem:[#allocation127_spill] sm:$0xff] }
 0x20e   : > { %5366 = vmatpush3.bf16.msra.mxu1 %v3857_v11  ;;  %5337 = vmatprep.mubr.msk.bf16.mxu1 %vm855_vm1, %v3466_v58  ;;  %v8390_v11 = vpack.c.bf16 %v8388_v0, %v8389_v45  ;;  %v8392_v58 = vld [vmem:[#allocation78_spill] sm:$0xff] }
 0x20f   : > { %v8394_v12 = vpack.c.bf16 %v8392_v58, %v8393_v42 }
 0x215   : > { %5338 = vmatmul.mubr.msk.bf16.gmra.mrb[20].mxu1 %vm855_vm1, %v3467_v13  ;;  %v8396_v13 = vld [vmem:[#allocation29_spill] sm:$0xff] }
 0x216   : > { %5341 = vmatprep.mubr.msk.bf16.mxu1 %vm855_vm1, %v3468_v30  ;;  %v8397_v33 = vpack.c.bf16 %v8395_v46, %v8396_v13  ;;  %v3757_v30 = vld [vmem:[#allocation2 + $0x121] sm:$0xff] }
 0x217   : > { %v3789_v32 = vmul.f32 %v3757_v30, %v8289_v39 }
 0x219   : > { %v3805_v16 = vpack.c.bf16 %v3789_v32, %v3788_v6 }
 0x21d   : > { %5342 = vmatmul.mubr.msk.bf16.gmra.mrb[24].mxu1 %vm855_vm1, %v3469_v1 }
 0x21e   : > { %5345 = vmatprep.mubr.msk.bf16.mxu1 %vm855_vm1, %v3470_v10 }
 0x225   : > { %5346 = vmatmul.mubr.msk.bf16.gmra.mrb[28].mxu1 %vm855_vm1, %v3471_v20 }
 0x226   : > { %5349 = vmatprep.mubr.msk.bf16.mxu1 %vm855_vm1, %v3472_v56 }
 0x22d   : > { %5350 = vmatmul.mubr.msk.bf16.gmra.mrb[0].mxu1 %vm855_vm1, %v8245_v26  ;;  %v3462_v26 = vld [vmem:[#allocation2 + $0x118] sm:$0xff] }
 0x22e   : > { %5353 = vmatprep.mubr.msk.bf16.mxu1 %vm855_vm1, %v8249_v61  ;;  %v3463_v61 = vld [vmem:[#allocation2 + $0x120] sm:$0xff] }
 0x235   : > { %5354 = vmatmul.mubr.msk.bf16.gmra.mrb[4].mxu1 %vm855_vm1, %v8250_v48  ;;  %v3479_v48 = vpack.c.bf16 %v3463_v61, %v3462_v26 }
 0x236   : > { %5357 = vmatprep.mubr.msk.bf16.mxu1 %vm855_vm1, %v6688_v50  ;;  %v8361_v50 = vld [vmem:[#allocation10_spill] sm:$0xff] }
 0x237   : > { %v8363_v36 = vpack.c.bf16 %v8361_v50, %v8362_v35 }
 0x23d   : > { %5358 = vmatmul.mubr.msk.bf16.gmra.mrb[8].mxu1 %vm855_vm1, %v6721_v40  ;;  %v8368_v40 = vld [vmem:[#allocation12_spill] sm:$0xff] }
 0x23e   : > { %5361 = vmatprep.mubr.msk.bf16.mxu1 %vm855_vm1, %v7148_v24  ;;  %v8369_v18 = vpack.c.bf16 %v8367_v19, %v8368_v40  ;;  %v8370_v24 = vld [vmem:[#allocation110_spill] sm:$0xff] }
 0x23f   : > { %v8372_v59 = vpack.c.bf16 %v8370_v24, %v8371_v41 }
 0x245   : > { %5362 = vmatmul.mubr.msk.bf16.gmra.mrb[12].mxu1 %vm855_vm1, %v3479_v48 }
 0x246   : > { %5367 = vmatprep.mubr.msk.bf16.mxu1 %vm855_vm1, %v8363_v36 }
 0x24d   : > { %5368 = vmatmul.mubr.msk.bf16.vlgmr.msra.gmra.mrb[16].mxu1 %vm855_vm1, %v8366_v60 }
 0x24e   : > { %5371 = vmatprep.mubr.msk.bf16.mxu1 %vm855_vm1, %v8369_v18 }
 0x255   : > { %5372 = vmatmul.mubr.msk.bf16.gmra.mrb[20].mxu1 %vm855_vm1, %v8372_v59 }
 0x256   : > { %5375 = vmatprep.mubr.msk.bf16.mxu1 %vm855_vm1, %v8375_v3 }
 0x25d   : > { %5376 = vmatmul.mubr.msk.bf16.gmra.mrb[24].mxu1 %vm855_vm1, %v8378_v51 }
 0x25e   : > { %5379 = vmatprep.mubr.msk.bf16.mxu1 %vm855_vm1, %v8381_v62 }
 0x265   : > { %5380 = vmatmul.mubr.msk.bf16.gmra.mrb[28].mxu1 %vm855_vm1, %v8384_v53 }
 0x266   : > { %5383 = vmatprep.mubr.msk.bf16.mxu1 %vm855_vm1, %v8387_v9 }
 0x26d   : > { %5384 = vmatmul.mubr.msk.bf16.gmra.mrb[0].mxu1 %vm855_vm1, %v8390_v11 }
 0x26e   : > { %5387 = vmatprep.mubr.msk.bf16.mxu1 %vm855_vm1, %v8391_v25 }
 0x275   : > { %5388 = vmatmul.mubr.msk.bf16.gmra.mrb[4].mxu1 %vm855_vm1, %v8394_v12 }
 0x276   : > { %5391 = vmatprep.mubr.msk.bf16.mxu1 %vm855_vm1, %v8397_v33 }
 0x27b   : > { %v7497_v44 = vpop.f32.mrb[48].mxu0 }
 0x27c   : > { %v7505_v1 = vpop.f32.mrb[49].mxu0 }
 0x27d   : > { %5392 = vmatmul.mubr.msk.bf16.gmra.mrb[8].mxu1 %vm855_vm1, %v3803_v5  ;;  %v7507_v7 = vpop.f32.mrb[50].mxu0 }
 0x27e   : > { %5395 = vmatprep.mubr.msk.bf16.mxu1 %vm855_vm1, %v8398_v38  ;;  %v7509_v10 = vpop.f32.mrb[51].mxu0 }
 0x283   : > { %v7512_v4 = vpop.f32.mrb[52].mxu0 }
 0x284   : > { %v7514_v5 = vpop.f32.mrb[53].mxu0 }
 0x285   : > { %5396 = vmatmul.mubr.msk.bf16.gmra.mrb[12].mxu1 %vm855_vm1, %v3805_v16  ;;  %v7516_v22 = vpop.f32.mrb[54].mxu0 }
 0x286   : > { %v7518_v31 = vpop.f32.mrb[55].mxu0 }
 0x28b   : > { %v7520_v39 = vpop.f32.mrb[56].mxu0 }
 0x28c   : > { %v7522_v14 = vpop.f32.mrb[57].mxu0 }
 0x28d   : > { %v7524_v21 = vpop.f32.mrb[58].mxu0 }
 0x28e   : > { %v7526_v23 = vpop.f32.mrb[59].mxu0 }
 0x293   : > { %v7528_v57 = vpop.f32.mrb[60].mxu0 }
 0x294   : > { %v7530_v20 = vpop.f32.mrb[61].mxu0 }
 0x295   : > { %v7532_v52 = vpop.f32.mrb[62].mxu0 }
 0x296   : > { %v7534_v56 = vpop.f32.mrb[63].mxu0 }
 0x29b   : > { %v5199_v2 = vpop.f32.mrb[32].mxu0 }
 0x29c   : > { %v2327_v55 = vpop.f32.mrb[33].mxu0 }
 0x29d   : > { %v5200_v26 = vpop.f32.mrb[34].mxu0 }
 0x29e   : > { %v2330_v61 = vpop.f32.mrb[35].mxu0 }
 0x2a3   : > { %v5203_v48 = vpop.f32.mrb[36].mxu0 }
 0x2a4   : > { %v2343_v50 = vpop.f32.mrb[37].mxu0 }
 0x2a5   : > { %v5204_v35 = vpop.f32.mrb[38].mxu0 }
 0x2a6   : > { %v2346_v36 = vpop.f32.mrb[39].mxu0 }
 0x2ab   : > { %v5207_v34 = vpop.f32.mrb[40].mxu0 }
 0x2ac   : > { %v2359_v27 = vpop.f32.mrb[41].mxu0 }
 0x2ad   : > { %v5208_v60 = vpop.f32.mrb[42].mxu0 }
 0x2ae   : > { %v2362_v19 = vpop.f32.mrb[43].mxu0 }
 0x2b3   : > { %v7536_v40 = vpop.f32.mrb[44].mxu0 }
 0x2b4   : > { %v7538_v18 = vpop.f32.mrb[45].mxu0 }
 0x2b5   : > { %v7540_v24 = vpop.f32.mrb[46].mxu0 }
 0x2b6   : > { %v7542_v41 = vpop.f32.mrb[47].mxu0 }
 0x320   : > { %v5369_v59 = vpop.f32.mrb[16].mxu1 }
 0x321   : > { %v5435_v63 = vadd.f32 %v5369_v59, %v5199_v2  ;;  %v3893_v3 = vpop.f32.mrb[17].mxu1 }
 0x322   : > { %v5436_v49 = vadd.f32 %v3893_v3, %v2327_v55  ;;  %v5370_v51 = vpop.f32.mrb[18].mxu1 }
 0x323   : > { %v4061_v17 = vmul.f32 %v5435_v63, %v7547_v47  ;;  %v5437_v15 = vadd.f32 %v5370_v51, %v5200_v26  ;;  %v3896_v62 = vpop.f32.mrb[19].mxu1 }
 0x324   : > { %v4059_v37 = vmul.f32 %v5436_v49, %v7547_v47  ;;  %v5438_v54 = vadd.f32 %v3896_v62, %v2330_v61 }
 0x325   : > { %v4100_v53 = vadd.f32 %v7552_v43, %v4061_v17  ;;  %v4062_v29 = vmul.f32 %v5437_v15, %v7547_v47 }
 0x326   : > { %v4098_v28 = vadd.f32 %v7552_v43, %v4059_v37  ;;  %v4060_v9 = vmul.f32 %v5438_v54, %v7547_v47 }
 0x327   : > { %v4101_v0 = vadd.f32 %v7552_v43, %v4062_v29  ;;  %v4132_v25 = vmax.f32 %v4100_v53, 0.0 }
 0x328   : > { %v4099_v45 = vadd.f32 %v7552_v43, %v4060_v9  ;;  %v5373_v11 = vpop.f32.mrb[20].mxu1  ;;  %v4130_v46 = vmax.f32 %v4098_v28, 0.0 }
 0x329   : > { %v4133_v58 = vmax.f32 %v4101_v0, 0.0  ;;  %v5439_v42 = vadd.f32 %v5373_v11, %v5203_v48  ;;  %v3909_v12 = vpop.f32.mrb[21].mxu1 }
 0x32a   : > { %v4131_v13 = vmax.f32 %v4099_v45, 0.0  ;;  %v5440_v33 = vadd.f32 %v3909_v12, %v2343_v50  ;;  %v5374_v30 = vpop.f32.mrb[22].mxu1 }
 0x32b   : > { %v4163_v8 = vpack.c.bf16 %v4133_v58, %v4132_v25  ;;  %v4065_v38 = vmul.f32 %v5439_v42, %v7547_v47  ;;  %v5441_v32 = vadd.f32 %v5374_v30, %v5204_v35  ;;  %v3912_v6 = vpop.f32.mrb[23].mxu1 }
 0x32c   : > { %v4162_v16 = vpack.c.bf16 %v4131_v13, %v4130_v46  ;;  %v4063_v2 = vmul.f32 %v5440_v33, %v7547_v47  ;;  %v5442_v55 = vadd.f32 %v3912_v6, %v2346_v36 }
 0x32d   : > { %v4104_v26 = vadd.f32 %v7552_v43, %v4065_v38  ;;  %v4066_v61 = vmul.f32 %v5441_v32, %v7547_v47 }
 0x32e   : > { %v4102_v48 = vadd.f32 %v7552_v43, %v4063_v2  ;;  %v4064_v59 = vmul.f32 %v5442_v55, %v7547_v47  ;;  %5401 = vmatprep.mubr.msk.bf16.mxu0 %vm855_vm1, %v4162_v16 }
 0x32f   : > { %v4105_v50 = vadd.f32 %v7552_v43, %v4066_v61  ;;  %5402 = vmatmul.mubr.msk.bf16.vlgmr.msra.gmra.mrb[64].mxu0 %vm855_vm1, %v4163_v8  ;;  %v4136_v3 = vmax.f32 %v4104_v26, 0.0 }
 0x330   : > { %v4103_v35 = vadd.f32 %v7552_v43, %v4064_v59  ;;  %v5377_v63 = vpop.f32.mrb[24].mxu1  ;;  %v4134_v17 = vmax.f32 %v4102_v48, 0.0 }
 0x331   : > { %v4137_v49 = vmax.f32 %v4105_v50, 0.0  ;;  %v5443_v36 = vadd.f32 %v5377_v63, %v5207_v34  ;;  %v3925_v51 = vpop.f32.mrb[25].mxu1 }
 0x332   : > { %v4135_v15 = vmax.f32 %v4103_v35, 0.0  ;;  %v5444_v62 = vadd.f32 %v3925_v51, %v2359_v27  ;;  %v5378_v37 = vpop.f32.mrb[26].mxu1 }
 0x333   : > { %v4165_v54 = vpack.c.bf16 %v4137_v49, %v4136_v3  ;;  %v4069_v53 = vmul.f32 %v5443_v36, %v7547_v47  ;;  %v5445_v29 = vadd.f32 %v5378_v37, %v5208_v60  ;;  %v3928_v28 = vpop.f32.mrb[27].mxu1 }
 0x334   : > { %v4164_v9 = vpack.c.bf16 %v4135_v15, %v4134_v17  ;;  %v4067_v0 = vmul.f32 %v5444_v62, %v7547_v47  ;;  %v5446_v45 = vadd.f32 %v3928_v28, %v2362_v19 }
 0x335   : > { %v4108_v11 = vadd.f32 %v7552_v43, %v4069_v53  ;;  %v4070_v25 = vmul.f32 %v5445_v29, %v7547_v47 }
 0x336   : > { %v4106_v34 = vadd.f32 %v7552_v43, %v4067_v0  ;;  %v4068_v58 = vmul.f32 %v5446_v45, %v7547_v47  ;;  %5405 = vmatprep.mubr.msk.bf16.mxu0 %vm855_vm1, %v4164_v9 }
 0x337   : > { %v4109_v27 = vadd.f32 %v7552_v43, %v4070_v25  ;;  %5406 = vmatmul.mubr.msk.bf16.gmra.mrb[68].mxu0 %vm855_vm1, %v4165_v54  ;;  %v4140_v12 = vmax.f32 %v4108_v11, 0.0 }
 0x338   : > { %v4107_v60 = vadd.f32 %v7552_v43, %v4068_v58  ;;  %v5381_v42 = vpop.f32.mrb[28].mxu1  ;;  %v4138_v33 = vmax.f32 %v4106_v34, 0.0 }
 0x339   : > { %v4141_v46 = vmax.f32 %v4109_v27, 0.0  ;;  %v5447_v19 = vadd.f32 %v5381_v42, %v7536_v40  ;;  %v3941_v13 = vpop.f32.mrb[29].mxu1 }
 0x33a   : > { %v4139_v30 = vmax.f32 %v4107_v60, 0.0  ;;  %v5448_v8 = vadd.f32 %v3941_v13, %v7538_v18  ;;  %v5382_v38 = vpop.f32.mrb[30].mxu1 }
 0x33b   : > { %v4167_v32 = vpack.c.bf16 %v4141_v46, %v4140_v12  ;;  %v4073_v6 = vmul.f32 %v5447_v19, %v7547_v47  ;;  %v5449_v16 = vadd.f32 %v5382_v38, %v7540_v24  ;;  %v3944_v2 = vpop.f32.mrb[31].mxu1 }
 0x33c   : > { %v4166_v55 = vpack.c.bf16 %v4139_v30, %v4138_v33  ;;  %v4071_v26 = vmul.f32 %v5448_v8, %v7547_v47  ;;  %v5450_v61 = vadd.f32 %v3944_v2, %v7542_v41 }
 0x33d   : > { %v4112_v48 = vadd.f32 %v7552_v43, %v4073_v6  ;;  %v4074_v40 = vmul.f32 %v5449_v16, %v7547_v47 }
 0x33e   : > { %v4110_v59 = vadd.f32 %v7552_v43, %v4071_v26  ;;  %v4072_v18 = vmul.f32 %v5450_v61, %v7547_v47  ;;  %5409 = vmatprep.mubr.msk.bf16.mxu0 %vm855_vm1, %v4166_v55 }
 0x33f   : > { %v4113_v50 = vadd.f32 %v7552_v43, %v4074_v40  ;;  %5410 = vmatmul.mubr.msk.bf16.gmra.mrb[72].mxu0 %vm855_vm1, %v4167_v32  ;;  %v4144_v63 = vmax.f32 %v4112_v48, 0.0 }
 0x340   : > { %v4111_v24 = vadd.f32 %v7552_v43, %v4072_v18  ;;  %v5385_v35 = vpop.f32.mrb[0].mxu1  ;;  %v4142_v36 = vmax.f32 %v4110_v59, 0.0 }
 0x341   : > { %v4145_v3 = vmax.f32 %v4113_v50, 0.0  ;;  %v5451_v41 = vadd.f32 %v5385_v35, %v7497_v44  ;;  %v3957_v49 = vpop.f32.mrb[1].mxu1 }
 0x342   : > { %v4143_v51 = vmax.f32 %v4111_v24, 0.0  ;;  %v5452_v17 = vadd.f32 %v3957_v49, %v7505_v1  ;;  %v5386_v15 = vpop.f32.mrb[2].mxu1 }
 0x343   : > { %v4169_v62 = vpack.c.bf16 %v4145_v3, %v4144_v63  ;;  %v4077_v37 = vmul.f32 %v5451_v41, %v7547_v47  ;;  %v5453_v54 = vadd.f32 %v5386_v15, %v7507_v7  ;;  %v3960_v53 = vpop.f32.mrb[3].mxu1 }
 0x344   : > { %v4168_v29 = vpack.c.bf16 %v4143_v51, %v4142_v36  ;;  %v4075_v28 = vmul.f32 %v5452_v17, %v7547_v47  ;;  %v5454_v9 = vadd.f32 %v3960_v53, %v7509_v10 }
 0x345   : > { %v4116_v0 = vadd.f32 %v7552_v43, %v4077_v37  ;;  %v4078_v44 = vmul.f32 %v5453_v54, %v7547_v47 }
 0x346   : > { %v4114_v45 = vadd.f32 %v7552_v43, %v4075_v28  ;;  %v4076_v1 = vmul.f32 %v5454_v9, %v7547_v47  ;;  %5413 = vmatprep.mubr.msk.bf16.mxu0 %vm855_vm1, %v4168_v29 }
 0x347   : > { %v4117_v11 = vadd.f32 %v7552_v43, %v4078_v44  ;;  %5414 = vmatmul.mubr.msk.bf16.gmra.mrb[76].mxu0 %vm855_vm1, %v4169_v62  ;;  %v4148_v34 = vmax.f32 %v4116_v0, 0.0 }
 0x348   : > { %v4115_v7 = vadd.f32 %v7552_v43, %v4076_v1  ;;  %v5389_v25 = vpop.f32.mrb[4].mxu1  ;;  %v4146_v60 = vmax.f32 %v4114_v45, 0.0 }
 0x349   : > { %v4149_v58 = vmax.f32 %v4117_v11, 0.0  ;;  %v5455_v10 = vadd.f32 %v5389_v25, %v7512_v4  ;;  %v3973_v27 = vpop.f32.mrb[5].mxu1 }
 0x34a   : > { %v4147_v42 = vmax.f32 %v4115_v7, 0.0  ;;  %v5456_v12 = vadd.f32 %v3973_v27, %v7514_v5  ;;  %v5390_v46 = vpop.f32.mrb[6].mxu1 }
 0x34b   : > { %v4171_v19 = vpack.c.bf16 %v4149_v58, %v4148_v34  ;;  %v4081_v13 = vmul.f32 %v5455_v10, %v7547_v47  ;;  %v5457_v33 = vadd.f32 %v5390_v46, %v7516_v22  ;;  %v3976_v30 = vpop.f32.mrb[7].mxu1 }
 0x34c   : > { %v4170_v8 = vpack.c.bf16 %v4147_v42, %v4146_v60  ;;  %v4079_v38 = vmul.f32 %v5456_v12, %v7547_v47  ;;  %v5458_v32 = vadd.f32 %v3976_v30, %v7518_v31  ;;  %v5747_v30 = vld [vmem:[%s5867_s18 + $0x8] sm:$0xff]  }
 0x34d   : > { %v4120_v6 = vadd.f32 %v7552_v43, %v4081_v13  ;;  %v4082_v4 = vmul.f32 %v5457_v33, %v7547_v47 }
 0x34e   : > { %v4118_v16 = vadd.f32 %v7552_v43, %v4079_v38  ;;  %v4080_v5 = vmul.f32 %v5458_v32, %v7547_v47  ;;  %5417 = vmatprep.mubr.msk.bf16.mxu0 %vm855_vm1, %v4170_v8  ;;  %v4471_v8 = vunpack.c.l.bf16 %v5747_v30  ;;  %v5748_v32 = vld [vmem:[%s5867_s18] sm:$0xff]  }
 0x34f   : > { %v4121_v2 = vadd.f32 %v7552_v43, %v4082_v4  ;;  %5418 = vmatmul.mubr.msk.bf16.gmra.mrb[80].mxu0 %vm855_vm1, %v4171_v19  ;;  %v4152_v26 = vmax.f32 %v4120_v6, 0.0  ;;  %v4469_v6 = vunpack.c.l.bf16 %v5748_v32 }
 0x350   : > { %v4119_v22 = vadd.f32 %v7552_v43, %v4080_v5  ;;  %v5393_v55 = vpop.f32.mrb[8].mxu1  ;;  %v4150_v40 = vmax.f32 %v4118_v16, 0.0 }
 0x351   : > { %v4153_v61 = vmax.f32 %v4121_v2, 0.0  ;;  %v5459_v31 = vadd.f32 %v5393_v55, %v7520_v39  ;;  %v3989_v48 = vpop.f32.mrb[9].mxu1 }
 0x352   : > { %v4151_v59 = vmax.f32 %v4119_v22, 0.0  ;;  %v5460_v18 = vadd.f32 %v3989_v48, %v7522_v14  ;;  %v5394_v50 = vpop.f32.mrb[10].mxu1  ;;  %v4472_v22 = vunpack.c.h.bf16 %v5747_v30 }
 0x353   : > { %v4173_v24 = vpack.c.bf16 %v4153_v61, %v4152_v26  ;;  %v4085_v35 = vmul.f32 %v5459_v31, %v7547_v47  ;;  %v5461_v63 = vadd.f32 %v5394_v50, %v7524_v21  ;;  %v3992_v3 = vpop.f32.mrb[11].mxu1  ;;  %v4470_v26 = vunpack.c.h.bf16 %v5748_v32 }
 0x354   : > { %v4172_v41 = vpack.c.bf16 %v4151_v59, %v4150_v40  ;;  %v4083_v49 = vmul.f32 %v5460_v18, %v7547_v47  ;;  %v5462_v36 = vadd.f32 %v3992_v3, %v7526_v23 }
 0x355   : > { %v4124_v51 = vadd.f32 %v7552_v43, %v4085_v35  ;;  %v4086_v39 = vmul.f32 %v5461_v63, %v7547_v47 }
 0x356   : > { %v4122_v17 = vadd.f32 %v7552_v43, %v4083_v49  ;;  %v4084_v14 = vmul.f32 %v5462_v36, %v7547_v47  ;;  %5421 = vmatprep.mubr.msk.bf16.mxu0 %vm855_vm1, %v4172_v41  ;;  %v5749_v36 = vld [vmem:[%s5867_s18 + $0x18] sm:$0xff]  }
 0x357   : > { %v4125_v15 = vadd.f32 %v7552_v43, %v4086_v39  ;;  %5422 = vmatmul.mubr.msk.bf16.gmra.mrb[84].mxu0 %vm855_vm1, %v4173_v24  ;;  %v4156_v37 = vmax.f32 %v4124_v51, 0.0  ;;  %v4475_v51 = vunpack.c.l.bf16 %v5749_v36 }
 0x358   : > { %v4123_v21 = vadd.f32 %v7552_v43, %v4084_v14  ;;  %v5397_v62 = vpop.f32.mrb[12].mxu1  ;;  %v4154_v29 = vmax.f32 %v4122_v17, 0.0 }
 0x359   : > { %v4157_v54 = vmax.f32 %v4125_v15, 0.0  ;;  %v5463_v23 = vadd.f32 %v5397_v62, %v7528_v57  ;;  %v4005_v53 = vpop.f32.mrb[13].mxu1  ;;  %v5750_v15 = vld [vmem:[%s5867_s18 + $0x10] sm:$0xff]  }
 0x35a   : > { %v4155_v28 = vmax.f32 %v4123_v21, 0.0  ;;  %v5464_v9 = vadd.f32 %v4005_v53, %v7530_v20  ;;  %v5398_v0 = vpop.f32.mrb[14].mxu1  ;;  %v4473_v21 = vunpack.c.l.bf16 %v5750_v15 }
 0x35b   : > { %v4175_v44 = vpack.c.bf16 %v4157_v54, %v4156_v37  ;;  %v4089_v45 = vmul.f32 %v5463_v23, %v7547_v47  ;;  %v5465_v1 = vadd.f32 %v5398_v0, %v7532_v52  ;;  %v4008_v11 = vpop.f32.mrb[15].mxu1  ;;  %v4476_v23 = vunpack.c.h.bf16 %v5749_v36 }
 0x35c   : > { %v4174_v7 = vpack.c.bf16 %v4155_v28, %v4154_v29  ;;  %v4087_v25 = vmul.f32 %v5464_v9, %v7547_v47  ;;  %v5466_v34 = vadd.f32 %v4008_v11, %v7534_v56  ;;  %v4474_v9 = vunpack.c.h.bf16 %v5750_v15 }
 0x35d   : > { %v4128_v58 = vadd.f32 %v7552_v43, %v4089_v45  ;;  %v4090_v57 = vmul.f32 %v5465_v1, %v7547_v47 }
 0x35e   : > { %v4126_v10 = vadd.f32 %v7552_v43, %v4087_v25  ;;  %v4088_v20 = vmul.f32 %v5466_v34, %v7547_v47  ;;  %5425 = vmatprep.mubr.msk.bf16.mxu0 %vm855_vm1, %v4174_v7  ;;  %v7657_v47 = vld [vmem:[%s7825_s8] ss:$0 sm:$0xff] }
 0x35f   : > { %v4129_v27 = vadd.f32 %v7552_v43, %v4090_v57  ;;  %5426 = vmatmul.mubr.msk.bf16.gmra.mrb[88].mxu0 %vm855_vm1, %v4175_v44  ;;  %v4160_v60 = vmax.f32 %v4128_v58, 0.0 }
 0x360   : > { %v4127_v52 = vadd.f32 %v7552_v43, %v4088_v20  ;;  %v4158_v42 = vmax.f32 %v4126_v10, 0.0  ;;  %v7662_v43 = vld [vmem:[%s7826_s9] ss:$0 sm:$0xff]  ;;  %v5751_v20 = vld [vmem:[%s5867_s18 + $0x28] sm:$0xff]  }
 0x361   : > { %v4161_v56 = vmax.f32 %v4129_v27, 0.0  ;;  %v4479_v27 = vunpack.c.l.bf16 %v5751_v20 }
 0x362   : > { %v4159_v12 = vmax.f32 %v4127_v52, 0.0 }
 0x363   : > { %v4177_v46 = vpack.c.bf16 %v4161_v56, %v4160_v60 }
 0x364   : > { %v4176_v19 = vpack.c.bf16 %v4159_v12, %v4158_v42  ;;  %v5752_v42 = vld [vmem:[%s5867_s18 + $0x20] sm:$0xff]  }
 0x365   : > { %v4477_v12 = vunpack.c.l.bf16 %v5752_v42  ;;  %v4478_v32 = vunpack.c.h.bf16 %v5752_v42 }
 0x366   : > { %5429 = vmatprep.mubr.msk.bf16.mxu0 %vm855_vm1, %v4176_v19 }
 0x367   : > { %5430 = vmatmul.mubr.msk.bf16.gmra.mrb[92].mxu0 %vm855_vm1, %v4177_v46 }
 0x402   : > { %v5403_v13 = vpop.f32.mrb[64].mxu0 }
 0x403   : > { %v4400_v33 = vmul.f32 %v5403_v13, %v7657_v47  ;;  %v4264_v38 = vpop.f32.mrb[65].mxu0 }
 0x404   : > { %v4398_v4 = vmul.f32 %v7657_v47, %v4264_v38  ;;  %v5404_v16 = vpop.f32.mrb[66].mxu0 }
 0x405   : > { %v4439_v5 = vadd.f32 %v7662_v43, %v4400_v33  ;;  %v4401_v2 = vmul.f32 %v5404_v16, %v7657_v47  ;;  %v4267_v55 = vpop.f32.mrb[67].mxu0  ;;  %v4480_v33 = vunpack.c.h.bf16 %v5751_v20 }
 0x406   : > { %v4437_v61 = vadd.f32 %v7662_v43, %v4398_v4  ;;  %v4399_v31 = vmul.f32 %v7657_v47, %v4267_v55 }
 0x407   : > { %v4503_v48 = vadd.f32 %v4471_v8, %v4439_v5  ;;  %v4440_v40 = vadd.f32 %v7662_v43, %v4401_v2 }
 0x408   : > { %v4501_v59 = vadd.f32 %v4469_v6, %v4437_v61  ;;  %v4438_v18 = vadd.f32 %v7662_v43, %v4399_v31 }
 0x409   : > { %v4535_v50 = vmax.f32 %v4503_v48, 0.0  ;;  %v4504_v24 = vadd.f32 %v4472_v22, %v4440_v40  ;;  %v5753_v40 = vld [vmem:[%s5867_s18 + $0x38] sm:$0xff]  }
 0x40a   : > { %v4533_v35 = vmax.f32 %v4501_v59, 0.0  ;;  %v4502_v63 = vadd.f32 %v4470_v26, %v4438_v18  ;;  %v5407_v3 = vpop.f32.mrb[68].mxu0  ;;  %v4483_v59 = vunpack.c.l.bf16 %v5753_v40  ;;  %v4484_v36 = vunpack.c.h.bf16 %v5753_v40 }
 0x40b   : > { %4567 = vst.msk [vmem:[%s7677_s26 + $0x10] sm:$0xff] %vm535_vm0, %v4535_v50  ;;  %v4536_v41 = vmax.f32 %v4504_v24, 0.0  ;;  %v4404_v49 = vmul.f32 %v5407_v3, %v7657_v47  ;;  %v4280_v39 = vpop.f32.mrb[69].mxu0 }
 0x40c   : > { %4565 = vst.msk [vmem:[%s7677_s26] sm:$0xff] %vm535_vm0, %v4533_v35  ;;  %v4534_v17 = vmax.f32 %v4502_v63, 0.0  ;;  %v4402_v14 = vmul.f32 %v7657_v47, %v4280_v39  ;;  %v5408_v62 = vpop.f32.mrb[70].mxu0  ;;  %v5754_v35 = vld [vmem:[%s5867_s18 + $0x30] sm:$0xff]  }
 0x40d   : > { %4568 = vst.msk [vmem:[%s7677_s26 + $0x18] sm:$0xff] %vm535_vm0, %v4536_v41  ;;  %v4443_v37 = vadd.f32 %v7662_v43, %v4404_v49  ;;  %v4405_v54 = vmul.f32 %v5408_v62, %v7657_v47  ;;  %v4283_v53 = vpop.f32.mrb[71].mxu0  ;;  %v4481_v63 = vunpack.c.l.bf16 %v5754_v35 }
 0x40e   : > { %4566 = vst.msk [vmem:[%s7677_s26 + $0x8] sm:$0xff] %vm535_vm0, %v4534_v17  ;;  %v4441_v29 = vadd.f32 %v7662_v43, %v4402_v14  ;;  %v4403_v28 = vmul.f32 %v7657_v47, %v4283_v53  ;;  %v4482_v14 = vunpack.c.h.bf16 %v5754_v35 }
 0x40f   : > { %v4507_v0 = vadd.f32 %v4475_v51, %v4443_v37  ;;  %v4444_v44 = vadd.f32 %v7662_v43, %v4405_v54 }
 0x410   : > { %v4505_v45 = vadd.f32 %v4473_v21, %v4441_v29  ;;  %v4442_v1 = vadd.f32 %v7662_v43, %v4403_v28 }
 0x411   : > { %v4539_v11 = vmax.f32 %v4507_v0, 0.0  ;;  %v4508_v7 = vadd.f32 %v4476_v23, %v4444_v44  ;;  %v5755_v44 = vld [vmem:[%s5867_s18 + $0x48] sm:$0xff]  }
 0x412   : > { %v4537_v25 = vmax.f32 %v4505_v45, 0.0  ;;  %v4506_v34 = vadd.f32 %v4474_v9, %v4442_v1  ;;  %v5411_v58 = vpop.f32.mrb[72].mxu0  ;;  %v4487_v45 = vunpack.c.l.bf16 %v5755_v44  ;;  %v4488_v20 = vunpack.c.h.bf16 %v5755_v44 }
 0x413   : > { %4571 = vst.msk [vmem:[%s7677_s26 + $0x30] sm:$0xff] %vm535_vm0, %v4539_v11  ;;  %v4540_v57 = vmax.f32 %v4508_v7, 0.0  ;;  %v4408_v10 = vmul.f32 %v5411_v58, %v7657_v47  ;;  %v4296_v52 = vpop.f32.mrb[73].mxu0 }
 0x414   : > { %4569 = vst.msk [vmem:[%s7677_s26 + $0x20] sm:$0xff] %vm535_vm0, %v4537_v25  ;;  %v4538_v60 = vmax.f32 %v4506_v34, 0.0  ;;  %v4406_v56 = vmul.f32 %v7657_v47, %v4296_v52  ;;  %v5412_v46 = vpop.f32.mrb[74].mxu0  ;;  %v5756_v25 = vld [vmem:[%s5867_s18 + $0x40] sm:$0xff]  }
 0x415   : > { %4572 = vst.msk [vmem:[%s7677_s26 + $0x38] sm:$0xff] %vm535_vm0, %v4540_v57  ;;  %v4447_v19 = vadd.f32 %v7662_v43, %v4408_v10  ;;  %v4409_v13 = vmul.f32 %v5412_v46, %v7657_v47  ;;  %v4299_v30 = vpop.f32.mrb[75].mxu0  ;;  %v4485_v34 = vunpack.c.l.bf16 %v5756_v25 }
 0x416   : > { %4570 = vst.msk [vmem:[%s7677_s26 + $0x28] sm:$0xff] %vm535_vm0, %v4538_v60  ;;  %v4445_v8 = vadd.f32 %v7662_v43, %v4406_v56  ;;  %v4407_v38 = vmul.f32 %v7657_v47, %v4299_v30  ;;  %v4486_v56 = vunpack.c.h.bf16 %v5756_v25 }
 0x417   : > { %v4511_v6 = vadd.f32 %v4479_v27, %v4447_v19  ;;  %v4448_v4 = vadd.f32 %v7662_v43, %v4409_v13 }
 0x418   : > { %v4509_v16 = vadd.f32 %v4477_v12, %v4445_v8  ;;  %v4446_v5 = vadd.f32 %v7662_v43, %v4407_v38 }
 0x419   : > { %v4543_v2 = vmax.f32 %v4511_v6, 0.0  ;;  %v4512_v22 = vadd.f32 %v4480_v33, %v4448_v4  ;;  %v5757_v4 = vld [vmem:[%s5867_s18 + $0x58] sm:$0xff]  }
 0x41a   : > { %v4541_v55 = vmax.f32 %v4509_v16, 0.0  ;;  %v4510_v26 = vadd.f32 %v4478_v32, %v4446_v5  ;;  %v5415_v61 = vpop.f32.mrb[76].mxu0  ;;  %v4491_v16 = vunpack.c.l.bf16 %v5757_v4  ;;  %v4492_v40 = vunpack.c.h.bf16 %v5757_v4 }
 0x41b   : > { %4575 = vst.msk [vmem:[%s7677_s26 + $0x50] sm:$0xff] %vm535_vm0, %v4543_v2  ;;  %v4544_v31 = vmax.f32 %v4512_v22, 0.0  ;;  %v4412_v48 = vmul.f32 %v5415_v61, %v7657_v47  ;;  %v4312_v18 = vpop.f32.mrb[77].mxu0 }
 0x41c   : > { %4573 = vst.msk [vmem:[%s7677_s26 + $0x40] sm:$0xff] %vm535_vm0, %v4541_v55  ;;  %v4542_v50 = vmax.f32 %v4510_v26, 0.0  ;;  %v4410_v24 = vmul.f32 %v7657_v47, %v4312_v18  ;;  %v5416_v3 = vpop.f32.mrb[78].mxu0  ;;  %v5758_v55 = vld [vmem:[%s5867_s18 + $0x50] sm:$0xff]  }
 0x41d   : > { %4576 = vst.msk [vmem:[%s7677_s26 + $0x58] sm:$0xff] %vm535_vm0, %v4544_v31  ;;  %v4451_v41 = vadd.f32 %v7662_v43, %v4412_v48  ;;  %v4413_v49 = vmul.f32 %v5416_v3, %v7657_v47  ;;  %v4315_v51 = vpop.f32.mrb[79].mxu0  ;;  %v4489_v26 = vunpack.c.l.bf16 %v5758_v55 }
 0x41e   : > { %4574 = vst.msk [vmem:[%s7677_s26 + $0x48] sm:$0xff] %vm535_vm0, %v4542_v50  ;;  %v4449_v39 = vadd.f32 %v7662_v43, %v4410_v24  ;;  %v4411_v17 = vmul.f32 %v7657_v47, %v4315_v51  ;;  %v4490_v24 = vunpack.c.h.bf16 %v5758_v55 }
 0x41f   : > { %v4515_v15 = vadd.f32 %v4483_v59, %v4451_v41  ;;  %v4452_v21 = vadd.f32 %v7662_v43, %v4413_v49 }
 0x420   : > { %v4513_v62 = vadd.f32 %v4481_v63, %v4449_v39  ;;  %v4450_v37 = vadd.f32 %v7662_v43, %v4411_v17 }
 0x421   : > { %v4547_v54 = vmax.f32 %v4515_v15, 0.0  ;;  %v4516_v23 = vadd.f32 %v4484_v36, %v4452_v21  ;;  %v5759_v21 = vld [vmem:[%s5867_s18 + $0x68] sm:$0xff]  }
 0x422   : > { %v4545_v53 = vmax.f32 %v4513_v62, 0.0  ;;  %v4514_v29 = vadd.f32 %v4482_v14, %v4450_v37  ;;  %v5419_v28 = vpop.f32.mrb[80].mxu0  ;;  %v4495_v62 = vunpack.c.l.bf16 %v5759_v21  ;;  %v4496_v44 = vunpack.c.h.bf16 %v5759_v21 }
 0x423   : > { %4579 = vst.msk [vmem:[%s7677_s26 + $0x70] sm:$0xff] %vm535_vm0, %v4547_v54  ;;  %v4548_v9 = vmax.f32 %v4516_v23, 0.0  ;;  %v4416_v0 = vmul.f32 %v5419_v28, %v7657_v47  ;;  %v4328_v1 = vpop.f32.mrb[81].mxu0 }
 0x424   : > { %4577 = vst.msk [vmem:[%s7677_s26 + $0x60] sm:$0xff] %vm535_vm0, %v4545_v53  ;;  %v4546_v11 = vmax.f32 %v4514_v29, 0.0  ;;  %v4414_v7 = vmul.f32 %v7657_v47, %v4328_v1  ;;  %v5420_v58 = vpop.f32.mrb[82].mxu0  ;;  %v5760_v53 = vld [vmem:[%s5867_s18 + $0x60] sm:$0xff]  }
 0x425   : > { %4580 = vst.msk [vmem:[%s7677_s26 + $0x78] sm:$0xff] %vm535_vm0, %v4548_v9  ;;  %v4455_v57 = vadd.f32 %v7662_v43, %v4416_v0  ;;  %v4417_v10 = vmul.f32 %v5420_v58, %v7657_v47  ;;  %v4331_v27 = vpop.f32.mrb[83].mxu0  ;;  %v4493_v29 = vunpack.c.l.bf16 %v5760_v53 }
 0x426   : > { %4578 = vst.msk [vmem:[%s7677_s26 + $0x68] sm:$0xff] %vm535_vm0, %v4546_v11  ;;  %v4453_v52 = vadd.f32 %v7662_v43, %v4414_v7  ;;  %v4415_v60 = vmul.f32 %v7657_v47, %v4331_v27  ;;  %v4494_v7 = vunpack.c.h.bf16 %v5760_v53 }
 0x427   : > { %v4519_v42 = vadd.f32 %v4487_v45, %v4455_v57  ;;  %v4456_v12 = vadd.f32 %v7662_v43, %v4417_v10 }
 0x428   : > { %v4517_v46 = vadd.f32 %v4485_v34, %v4453_v52  ;;  %v4454_v19 = vadd.f32 %v7662_v43, %v4415_v60 }
 0x429   : > { %v4551_v13 = vmax.f32 %v4519_v42, 0.0  ;;  %v4520_v33 = vadd.f32 %v4488_v20, %v4456_v12  ;;  %v5761_v12 = vld [vmem:[%s5867_s18 + $0x78] sm:$0xff]  }
 0x42a   : > { %v4549_v30 = vmax.f32 %v4517_v46, 0.0  ;;  %v4518_v8 = vadd.f32 %v4486_v56, %v4454_v19  ;;  %v5423_v38 = vpop.f32.mrb[84].mxu0  ;;  %v4499_v46 = vunpack.c.l.bf16 %v5761_v12  ;;  %v4500_v4 = vunpack.c.h.bf16 %v5761_v12 }
 0x42b   : > { %4583 = vst.msk [vmem:[%s7677_s26 + $0x90] sm:$0xff] %vm535_vm0, %v4551_v13  ;;  %v4552_v32 = vmax.f32 %v4520_v33, 0.0  ;;  %v4420_v6 = vmul.f32 %v5423_v38, %v7657_v47  ;;  %v4344_v5 = vpop.f32.mrb[85].mxu0 }
 0x42c   : > { %4581 = vst.msk [vmem:[%s7677_s26 + $0x80] sm:$0xff] %vm535_vm0, %v4549_v30  ;;  %v4550_v2 = vmax.f32 %v4518_v8, 0.0  ;;  %v4418_v22 = vmul.f32 %v7657_v47, %v4344_v5  ;;  %v5424_v61 = vpop.f32.mrb[86].mxu0  ;;  %v5762_v30 = vld [vmem:[%s5867_s18 + $0x70] sm:$0xff]  }
 0x42d   : > { %4584 = vst.msk [vmem:[%s7677_s26 + $0x98] sm:$0xff] %vm535_vm0, %v4552_v32  ;;  %v4459_v31 = vadd.f32 %v7662_v43, %v4420_v6  ;;  %v4421_v48 = vmul.f32 %v5424_v61, %v7657_v47  ;;  %v4347_v59 = vpop.f32.mrb[87].mxu0  ;;  %v4497_v8 = vunpack.c.l.bf16 %v5762_v30 }
 0x42e   : > { %4582 = vst.msk [vmem:[%s7677_s26 + $0x88] sm:$0xff] %vm535_vm0, %v4550_v2  ;;  %v4457_v18 = vadd.f32 %v7662_v43, %v4418_v22  ;;  %v4419_v50 = vmul.f32 %v7657_v47, %v4347_v59  ;;  %v4498_v22 = vunpack.c.h.bf16 %v5762_v30 }
 0x42f   : > { %v4523_v35 = vadd.f32 %v4491_v16, %v4459_v31  ;;  %v4460_v63 = vadd.f32 %v7662_v43, %v4421_v48 }
 0x430   : > { %v4521_v3 = vadd.f32 %v4489_v26, %v4457_v18  ;;  %v4458_v41 = vadd.f32 %v7662_v43, %v4419_v50 }
 0x431   : > { %v4555_v49 = vmax.f32 %v4523_v35, 0.0  ;;  %v4524_v36 = vadd.f32 %v4492_v40, %v4460_v63 }
 0x432   : > { %v4553_v51 = vmax.f32 %v4521_v3, 0.0  ;;  %v4522_v39 = vadd.f32 %v4490_v24, %v4458_v41  ;;  %v5427_v17 = vpop.f32.mrb[88].mxu0 }
 0x433   : > { %4587 = vst.msk [vmem:[%s7677_s26 + $0xb0] sm:$0xff] %vm535_vm0, %v4555_v49  ;;  %v4556_v14 = vmax.f32 %v4524_v36, 0.0  ;;  %v4424_v15 = vmul.f32 %v5427_v17, %v7657_v47  ;;  %v4360_v37 = vpop.f32.mrb[89].mxu0 }
 0x434   : > { %4585 = vst.msk [vmem:[%s7677_s26 + $0xa0] sm:$0xff] %vm535_vm0, %v4553_v51  ;;  %v4554_v54 = vmax.f32 %v4522_v39, 0.0  ;;  %v4422_v23 = vmul.f32 %v7657_v47, %v4360_v37  ;;  %v5428_v28 = vpop.f32.mrb[90].mxu0 }
 0x435   : > { %4588 = vst.msk [vmem:[%s7677_s26 + $0xb8] sm:$0xff] %vm535_vm0, %v4556_v14  ;;  %v4463_v9 = vadd.f32 %v7662_v43, %v4424_v15  ;;  %v4425_v0 = vmul.f32 %v5428_v28, %v7657_v47  ;;  %v4363_v45 = vpop.f32.mrb[91].mxu0 }
 0x436   : > { %4586 = vst.msk [vmem:[%s7677_s26 + $0xa8] sm:$0xff] %vm535_vm0, %v4554_v54  ;;  %v4461_v1 = vadd.f32 %v7662_v43, %v4422_v23  ;;  %v4423_v11 = vmul.f32 %v7657_v47, %v4363_v45 }
 0x437   : > { %v4527_v25 = vadd.f32 %v4495_v62, %v4463_v9  ;;  %v4464_v34 = vadd.f32 %v7662_v43, %v4425_v0 }
 0x438   : > { %v4525_v58 = vadd.f32 %v4493_v29, %v4461_v1  ;;  %v4462_v57 = vadd.f32 %v7662_v43, %v4423_v11 }
 0x439   : > { %v4559_v10 = vmax.f32 %v4527_v25, 0.0  ;;  %v4528_v20 = vadd.f32 %v4496_v44, %v4464_v34 }
 0x43a   : > { %v4557_v27 = vmax.f32 %v4525_v58, 0.0  ;;  %v4526_v52 = vadd.f32 %v4494_v7, %v4462_v57  ;;  %v5431_v60 = vpop.f32.mrb[92].mxu0 }
 0x43b   : > { %4591 = vst.msk [vmem:[%s7677_s26 + $0xd0] sm:$0xff] %vm535_vm0, %v4559_v10  ;;  %v4560_v56 = vmax.f32 %v4528_v20, 0.0  ;;  %v4428_v42 = vmul.f32 %v5431_v60, %v7657_v47  ;;  %v4376_v19 = vpop.f32.mrb[93].mxu0 }
 0x43c   : > { %4589 = vst.msk [vmem:[%s7677_s26 + $0xc0] sm:$0xff] %vm535_vm0, %v4557_v27  ;;  %v4558_v13 = vmax.f32 %v4526_v52, 0.0  ;;  %v4426_v33 = vmul.f32 %v7657_v47, %v4376_v19  ;;  %v5432_v38 = vpop.f32.mrb[94].mxu0 }
 0x43d   : > { %4592 = vst.msk [vmem:[%s7677_s26 + $0xd8] sm:$0xff] %vm535_vm0, %v4560_v56  ;;  %v4467_v32 = vadd.f32 %v7662_v43, %v4428_v42  ;;  %v4429_v6 = vmul.f32 %v5432_v38, %v7657_v47  ;;  %v4379_v16 = vpop.f32.mrb[95].mxu0 }
 0x43e   : > { %4590 = vst.msk [vmem:[%s7677_s26 + $0xc8] sm:$0xff] %vm535_vm0, %v4558_v13  ;;  %v4465_v5 = vadd.f32 %v7662_v43, %v4426_v33  ;;  %v4427_v2 = vmul.f32 %v7657_v47, %v4379_v16 }
 0x43f   : > { %v4531_v55 = vadd.f32 %v4499_v46, %v4467_v32  ;;  %v4468_v26 = vadd.f32 %v7662_v43, %v4429_v6 }
 0x440   : > { %v4529_v61 = vadd.f32 %v4497_v8, %v4465_v5  ;;  %v4466_v31 = vadd.f32 %v7662_v43, %v4427_v2 }
 0x441   : > { %v4563_v48 = vmax.f32 %v4531_v55, 0.0  ;;  %v4532_v40 = vadd.f32 %v4500_v4, %v4468_v26 }
 0x442   : > { %v4561_v59 = vmax.f32 %v4529_v61, 0.0  ;;  %v4530_v18 = vadd.f32 %v4498_v22, %v4466_v31 }
 0x443   : > { %4595 = vst.msk [vmem:[%s7677_s26 + $0xf0] sm:$0xff] %vm535_vm0, %v4563_v48  ;;  %v4564_v50 = vmax.f32 %v4532_v40, 0.0 }
 0x444   : > { %4593 = vst.msk [vmem:[%s7677_s26 + $0xe0] sm:$0xff] %vm535_vm0, %v4561_v59  ;;  %v4562_v24 = vmax.f32 %v4530_v18, 0.0 }
 0x445   : > { %4596 = vst.msk [vmem:[%s7677_s26 + $0xf8] sm:$0xff] %vm535_vm0, %v4564_v50 }
 0x446   : > { %4594 = vst.msk [vmem:[%s7677_s26 + $0xe8] sm:$0xff] %vm535_vm0, %v4562_v24 }
 0x447 PF: > { %s22_s21 = sadd.s32 1, %s5769_s21  }
 0x448   : > { %p19_p4 = scmp.ge.s32.totalorder %s22_s21, 4  }
 0x44a   :  { %21 = sbr.rel (!%p19_p4) target bundleno = 1 (0x1), region = 106 }

</bundles_post_ra>
